<compile_context>
chip_gen: v6e
topology: v6e:2x2x1
jax: 0.10.0
libtpu: 0.0.40
codegen_flags: <defaults>
</compile_context>

<pallas_src>
import jax
import jax.numpy as jnp
from jax.experimental import pallas as pl
from jax.experimental.pallas import tpu as pltpu


# ------------------------------ tile helpers ---------------------------------

def _row_tile(m, target=512):
    """Largest divisor of m that is <= target and a multiple of 8 (else m)."""
    if m <= target:
        return m
    for cand in range(min(target, m), 7, -1):
        if m % cand == 0 and cand % 8 == 0:
            return cand
    return m


def _col_tile(n, target=512):
    """Largest divisor of n that is <= target and a multiple of 128 (else n)."""
    if n <= target:
        return n
    for cand in range(min(target, n), 127, -1):
        if n % cand == 0 and cand % 128 == 0:
            return cand
    return n


# ------------------------------ Pallas kernels --------------------------------

def _matmul_kernel(x_ref, w_ref, o_ref):
    o_ref[...] = jnp.dot(x_ref[...], w_ref[...],
                         preferred_element_type=jnp.float32)


def _bn_relu_matmul_kernel(x_ref, s_ref, t_ref, w_ref, o_ref):
    # Fused prologue: apply the previous layer's BatchNorm affine + ReLU on the
    # fly (per-channel scale/shift), then feed the MXU. Avoids materializing the
    # normalized activation in HBM.
    x = jnp.maximum(x_ref[...] * s_ref[...] + t_ref[...], 0.0)
    o_ref[...] = jnp.dot(x, w_ref[...], preferred_element_type=jnp.float32)


def matmul_fused(x, w, scale=None, shift=None):
    """(M, K) @ (K, N) with optional fused per-channel affine+ReLU on x."""
    M, K = x.shape
    _, N = w.shape
    tm, tn = _row_tile(M), _col_tile(N)
    grid = (M // tm, N // tn)
    x_spec = pl.BlockSpec((tm, K), lambda i, j: (i, 0))
    w_spec = pl.BlockSpec((K, tn), lambda i, j: (0, j))
    o_spec = pl.BlockSpec((tm, tn), lambda i, j: (i, j))
    cp = pltpu.CompilerParams(dimension_semantics=("parallel", "parallel"))
    out_shape = jax.ShapeDtypeStruct((M, N), jnp.float32)
    if scale is None:
        return pl.pallas_call(
            _matmul_kernel, out_shape=out_shape, grid=grid,
            in_specs=[x_spec, w_spec], out_specs=o_spec,
            compiler_params=cp,
        )(x, w)
    v_spec = pl.BlockSpec((1, K), lambda i, j: (0, 0))
    return pl.pallas_call(
        _bn_relu_matmul_kernel, out_shape=out_shape, grid=grid,
        in_specs=[x_spec, v_spec, v_spec, w_spec], out_specs=o_spec,
        compiler_params=cp,
    )(x, scale.reshape(1, K), shift.reshape(1, K), w)


def _stats_kernel(x_ref, sum_ref, ssq_ref):
    @pl.when(pl.program_id(0) == 0)
    def _():
        sum_ref[...] = jnp.zeros_like(sum_ref)
        ssq_ref[...] = jnp.zeros_like(ssq_ref)
    x = x_ref[...]
    sum_ref[...] += jnp.sum(x, axis=0, keepdims=True)
    ssq_ref[...] += jnp.sum(x * x, axis=0, keepdims=True)


def channel_stats(x2d):
    """Tiled per-channel sum and sum-of-squares over a (M, C) slab."""
    M, C = x2d.shape
    tm = _row_tile(M)
    return pl.pallas_call(
        _stats_kernel,
        out_shape=(jax.ShapeDtypeStruct((1, C), jnp.float32),
                   jax.ShapeDtypeStruct((1, C), jnp.float32)),
        grid=(M // tm,),
        in_specs=[pl.BlockSpec((tm, C), lambda i: (i, 0))],
        out_specs=(pl.BlockSpec((1, C), lambda i: (0, 0)),
                   pl.BlockSpec((1, C), lambda i: (0, 0))),
        compiler_params=pltpu.CompilerParams(dimension_semantics=("arbitrary",)),
    )(x2d)


def _tanh_kernel(x_ref, o_ref):
    o_ref[...] = jnp.tanh(x_ref[...])


def tanh_lane_dense(x):
    """Tanh over x, reshaped so the lane axis is 128-wide (unmasked stores)."""
    shape = x.shape
    total = x.size
    if total % 128 == 0:
        x2 = x.reshape(total // 128, 128)
    else:
        x2 = x.reshape(-1, shape[-1])
    R, C = x2.shape
    tr = _row_tile(R, 1024)
    y = pl.pallas_call(
        _tanh_kernel,
        out_shape=jax.ShapeDtypeStruct((R, C), jnp.float32),
        grid=(R // tr,),
        in_specs=[pl.BlockSpec((tr, C), lambda i: (i, 0))],
        out_specs=pl.BlockSpec((tr, C), lambda i: (i, 0)),
        compiler_params=pltpu.CompilerParams(dimension_semantics=("parallel",)),
    )(x2)
    return y.reshape(shape)


# -------------------------- ConvTranspose2d assembly ---------------------------
# The matmul above produces, for every input pixel, the K*K*Cout "column"
# contributions of the transposed convolution.  The overlap-add below scatters
# them into the 2x-upsampled output (pure data movement, left to XLA glue).

def _weight_matrix(w):
    # PyTorch ConvTranspose2d weight (Cin, Cout, K, K) -> (Cin, K*K*Cout),
    # column index = (kh*K + kw)*Cout + cout.
    Cin, Cout, K, _ = w.shape
    return jnp.transpose(w, (0, 2, 3, 1)).reshape(Cin, K * K * Cout)


def _overlap_add_stride2(cols, N, H, W, Cout, bias):
    """col2im for ConvTranspose2d(kernel=4, stride=2, padding=1).

    cols: (N*H*W, 16*Cout) with column order (kh, kw, cout).
    Output pixel (2m+rh, 2n+rw) receives exactly 4 contributions; each output
    parity phase is a sum of 4 shifted slices of the (zero-padded) columns.
    """
    K = 4
    cols = cols.reshape(N, H, W, K, K, Cout)
    cp = jnp.pad(cols, ((0, 0), (1, 1), (1, 1), (0, 0), (0, 0), (0, 0)))
    # (padded spatial offset, kernel tap) pairs per output parity:
    #   even output index 2m   <- (i=m,   k=1) and (i=m-1, k=3)
    #   odd  output index 2m+1 <- (i=m,   k=2) and (i=m+1, k=0)
    taps = (((1, 1), (0, 3)), ((1, 2), (2, 0)))
    rows = []
    for rh in (0, 1):
        phase_row = []
        for rw in (0, 1):
            acc = None
            for dh, kh in taps[rh]:
                for dw, kw in taps[rw]:
                    term = cp[:, dh:dh + H, dw:dw + W, kh, kw, :]
                    acc = term if acc is None else acc + term
            phase_row.append(acc)                       # (N, H, W, C)
        rows.append(jnp.stack(phase_row, axis=3))       # (N, H, W, 2, C)
    out = jnp.stack(rows, axis=2)                       # (N, H, 2, W, 2, C)
    out = out.reshape(N, 2 * H, 2 * W, Cout)
    return out + bias.reshape(1, 1, 1, Cout)


# --------------------------------- Generator -----------------------------------

def init_generator_params(key, noise_dim, channels_img, features_g):
    dims = [noise_dim, features_g * 16, features_g * 8,
            features_g * 4, features_g * 2, channels_img]
    params = []
    for i in range(5):
        key, kw, kb = jax.random.split(key, 3)
        layer = {
            "w": 0.02 * jax.random.normal(kw, (dims[i], dims[i + 1], 4, 4),
                                          jnp.float32),
            "b": 0.02 * jax.random.normal(kb, (dims[i + 1],), jnp.float32),
        }
        if i < 4:  # layers 0-3 have BatchNorm2d (affine init: gamma=1, beta=0)
            layer["gamma"] = jnp.ones((dims[i + 1],), jnp.float32)
            layer["beta"] = jnp.zeros((dims[i + 1],), jnp.float32)
        params.append(layer)
    return params


def generator_forward(params, x_nchw):
    """x_nchw: (N, noise_dim, 1, 1)  ->  (N, channels_img, 64, 64) in NCHW."""
    N = x_nchw.shape[0]
    x0 = x_nchw.astype(jnp.float32).reshape(N, -1)            # (N, noise_dim)

    # Layer 0: ConvTranspose(4, stride=1, pad=0) on 1x1 input == plain matmul.
    p0 = params[0]
    C0 = p0["b"].shape[0]
    cols = matmul_fused(x0, _weight_matrix(p0["w"]))           # (N, 16*C0)
    act = cols.reshape(N, 4, 4, C0) + p0["b"].reshape(1, 1, 1, C0)
    H = W = 4

    # Layers 1..4: previous layer's BatchNorm(train)+ReLU is fused into this
    # layer's matmul prologue; the conv itself is matmul + overlap-add.
    for li in range(1, 5):
        prev, cur = params[li - 1], params[li]
        Cin = act.shape[-1]
        M = N * H * W
        x2d = act.reshape(M, Cin)

        s, ssq = channel_stats(x2d)                            # Pallas reduction
        mean = s / M
        var = jnp.maximum(ssq / M - mean * mean, 0.0)          # biased (train) var
        scale = prev["gamma"].reshape(1, Cin) * jax.lax.rsqrt(var + 1e-5)
        shift = prev["beta"].reshape(1, Cin) - mean * scale

        Cout = cur["b"].shape[0]
        cols = matmul_fused(x2d, _weight_matrix(cur["w"]), scale, shift)
        act = _overlap_add_stride2(cols, N, H, W, Cout, cur["b"])
        H, W = 2 * H, 2 * W

    out = tanh_lane_dense(act)                                 # (N, 64, 64, C)
    return jnp.transpose(out, (0, 3, 1, 2))                    # -> NCHW


# ----------------------------------- main ---------------------------------------

if __name__ == "__main__":
    noise_dim, channels_img, features_g = 32, 3, 4
    batch = 2

    key = jax.random.PRNGKey(0)
    key, kx = jax.random.split(key)
    x = jax.random.normal(kx, (batch, noise_dim, 1, 1), jnp.float32)
    params = init_generator_params(key, noise_dim, channels_img, features_g)

    fwd = jax.jit(generator_forward)
    out = jax.block_until_ready(fwd(params, x))

    assert out.shape == (batch, channels_img, 64, 64), out.shape
    assert bool(jnp.all(jnp.isfinite(out)))
    assert bool(jnp.all(jnp.abs(out) <= 1.0 + 1e-6))  # tanh range
    print("KERNEL_OK")
</pallas_src>

<mosaic_0001>
module attributes {stable_mosaic.version = 11 : i64} {
  func.func @_matmul_kernel(%arg0: i32, %arg1: i32, %arg2: memref<2x32xf32, #tpu.memory_space<vmem>>, %arg3: memref<32x512xf32, #tpu.memory_space<vmem>>, %arg4: memref<2x512xf32, #tpu.memory_space<vmem>>) attributes {dimension_semantics = [#tpu.dimension_semantics<parallel>, #tpu.dimension_semantics<parallel>], iteration_bounds = array<i64: 1, 2>, scalar_prefetch = 0 : i64, scratch_operands = 0 : i64, tpu.core_type = #tpu.core_type<tc>, window_params = [{transform_indices = @transform_0, window_bounds = array<i64: 2, 32>}, {transform_indices = @transform_1, window_bounds = array<i64: 32, 512>}, {transform_indices = @transform_2, window_bounds = array<i64: 2, 512>}]} {
    %c0 = arith.constant 0 : index
    %c0_0 = arith.constant 0 : index
    %0 = vector.load %arg2[%c0, %c0_0] : memref<2x32xf32, #tpu.memory_space<vmem>>, vector<2x32xf32>
    %c0_1 = arith.constant 0 : index
    %c0_2 = arith.constant 0 : index
    %1 = vector.load %arg3[%c0_1, %c0_2] : memref<32x512xf32, #tpu.memory_space<vmem>>, vector<32x512xf32>
    %cst = arith.constant dense<0.000000e+00> : vector<2x512xf32>
    %2 = tpu.matmul %0, %1, %cst {dimension_numbers = #tpu.dot_dimension_numbers<[1], [0], [0], [1], [0, 0, 1, 1], [], []>} : vector<2x32xf32>, vector<32x512xf32>, vector<2x512xf32> -> vector<2x512xf32>
    %c0_3 = arith.constant 0 : index
    %c0_4 = arith.constant 0 : index
    %3 = vector.load %arg4[%c0_3, %c0_4] : memref<2x512xf32, #tpu.memory_space<vmem>>, vector<2x512xf32>
    tpu.vector_store %arg4[%c0_3, %c0_4], %2 {strides = array<i32>} : memref<2x512xf32, #tpu.memory_space<vmem>>, vector<2x512xf32>,
    return
  }
  func.func @transform_0(%arg0: i32, %arg1: i32) -> (i32, i32) {
    %c0_i32 = arith.constant 0 : i32
    %c0_i32_0 = arith.constant 0 : i32
    return %arg0, %c0_i32 : i32, i32
  }
  func.func @transform_1(%arg0: i32, %arg1: i32) -> (i32, i32) {
    %c0_i32 = arith.constant 0 : i32
    %c0_i32_0 = arith.constant 0 : i32
    return %c0_i32, %arg1 : i32, i32
  }
  func.func @transform_2(%arg0: i32, %arg1: i32) -> (i32, i32) {
    %c0_i32 = arith.constant 0 : i32
    return %arg0, %arg1 : i32, i32
  }
}

module attributes {stable_mosaic.version = 11 : i64} {
  func.func @_stats_kernel(%arg0: i32, %arg1: memref<32x64xf32, #tpu.memory_space<vmem>>, %arg2: memref<1x64xf32, #tpu.memory_space<vmem>>, %arg3: memref<1x64xf32, #tpu.memory_space<vmem>>) attributes {dimension_semantics = [#tpu.dimension_semantics<arbitrary>], iteration_bounds = array<i64: 1>, scalar_prefetch = 0 : i64, scratch_operands = 0 : i64, tpu.core_type = #tpu.core_type<tc>, window_params = [{transform_indices = @transform_0, window_bounds = array<i64: 32, 64>}, {pipeline_mode = #tpu.pipeline_mode<synchronous>, transform_indices = @transform_1, window_bounds = array<i64: 1, 64>}, {pipeline_mode = #tpu.pipeline_mode<synchronous>, transform_indices = @transform_2, window_bounds = array<i64: 1, 64>}]} {
    %c0_i32 = arith.constant 0 : i32
    %0 = arith.cmpi eq, %arg0, %c0_i32 : i32
    %1 = arith.extui %0 : i1 to i32
    %c0_i32_0 = arith.constant 0 : i32
    %2 = arith.cmpi ne, %1, %c0_i32_0 : i32
    scf.if %2 {
      %cst_11 = arith.constant 0.000000e+00 : f32
      %15 = vector.broadcast %cst_11 : f32 to vector<1x64xf32>
      %c0_12 = arith.constant 0 : index
      %c0_13 = arith.constant 0 : index
      %16 = vector.load %arg2[%c0_12, %c0_13] : memref<1x64xf32, #tpu.memory_space<vmem>>, vector<1x64xf32>
      tpu.vector_store %arg2[%c0_12, %c0_13], %15 {strides = array<i32>} : memref<1x64xf32, #tpu.memory_space<vmem>>, vector<1x64xf32>,
      %cst_14 = arith.constant 0.000000e+00 : f32
      %17 = vector.broadcast %cst_14 : f32 to vector<1x64xf32>
      %c0_15 = arith.constant 0 : index
      %c0_16 = arith.constant 0 : index
      %18 = vector.load %arg3[%c0_15, %c0_16] : memref<1x64xf32, #tpu.memory_space<vmem>>, vector<1x64xf32>
      tpu.vector_store %arg3[%c0_15, %c0_16], %17 {strides = array<i32>} : memref<1x64xf32, #tpu.memory_space<vmem>>, vector<1x64xf32>,
    } else {
    }
    %c0 = arith.constant 0 : index
    %c0_1 = arith.constant 0 : index
    %3 = vector.load %arg1[%c0, %c0_1] : memref<32x64xf32, #tpu.memory_space<vmem>>, vector<32x64xf32>
    %c0_2 = arith.constant 0 : index
    %c0_3 = arith.constant 0 : index
    %4 = vector.load %arg2[%c0_2, %c0_3] : memref<1x64xf32, #tpu.memory_space<vmem>>, vector<1x64xf32>
    %cst = arith.constant dense<0.000000e+00> : vector<64xf32>
    %5 = vector.multi_reduction <add>, %3, %cst [0] : vector<32x64xf32> to vector<64xf32>
    %6 = vector.shape_cast %5 : vector<64xf32> to vector<1x64xf32>
    %7 = arith.addf %4, %6 : vector<1x64xf32>
    %c0_4 = arith.constant 0 : index
    %c0_5 = arith.constant 0 : index
    %8 = vector.load %arg2[%c0_4, %c0_5] : memref<1x64xf32, #tpu.memory_space<vmem>>, vector<1x64xf32>
    tpu.vector_store %arg2[%c0_4, %c0_5], %7 {strides = array<i32>} : memref<1x64xf32, #tpu.memory_space<vmem>>, vector<1x64xf32>,
    %c0_6 = arith.constant 0 : index
    %c0_7 = arith.constant 0 : index
    %9 = vector.load %arg3[%c0_6, %c0_7] : memref<1x64xf32, #tpu.memory_space<vmem>>, vector<1x64xf32>
    %10 = arith.mulf %3, %3 : vector<32x64xf32>
    %cst_8 = arith.constant dense<0.000000e+00> : vector<64xf32>
    %11 = vector.multi_reduction <add>, %10, %cst_8 [0] : vector<32x64xf32> to vector<64xf32>
    %12 = vector.shape_cast %11 : vector<64xf32> to vector<1x64xf32>
    %13 = arith.addf %9, %12 : vector<1x64xf32>
    %c0_9 = arith.constant 0 : index
    %c0_10 = arith.constant 0 : index
    %14 = vector.load %arg3[%c0_9, %c0_10] : memref<1x64xf32, #tpu.memory_space<vmem>>, vector<1x64xf32>
    tpu.vector_store %arg3[%c0_9, %c0_10], %13 {strides = array<i32>} : memref<1x64xf32, #tpu.memory_space<vmem>>, vector<1x64xf32>,
    return
  }
  func.func @transform_0(%arg0: i32) -> (i32, i32) {
    %c0_i32 = arith.constant 0 : i32
    %c0_i32_0 = arith.constant 0 : i32
    return %arg0, %c0_i32 : i32, i32
  }
  func.func @transform_1(%arg0: i32) -> (i32, i32) {
    %c0_i32 = arith.constant 0 : i32
    %c0_i32_0 = arith.constant 0 : i32
    %c0_i32_1 = arith.constant 0 : i32
    return %c0_i32, %c0_i32_0 : i32, i32
  }
  func.func @transform_2(%arg0: i32) -> (i32, i32) {
    %c0_i32 = arith.constant 0 : i32
    %c0_i32_0 = arith.constant 0 : i32
    %c0_i32_1 = arith.constant 0 : i32
    return %c0_i32, %c0_i32_0 : i32, i32
  }
}

module attributes {stable_mosaic.version = 11 : i64} {
  func.func @_bn_relu_matmul_kernel(%arg0: i32, %arg1: i32, %arg2: memref<32x64xf32, #tpu.memory_space<vmem>>, %arg3: memref<1x64xf32, #tpu.memory_space<vmem>>, %arg4: memref<1x64xf32, #tpu.memory_space<vmem>>, %arg5: memref<64x512xf32, #tpu.memory_space<vmem>>, %arg6: memref<32x512xf32, #tpu.memory_space<vmem>>) attributes {dimension_semantics = [#tpu.dimension_semantics<parallel>, #tpu.dimension_semantics<parallel>], iteration_bounds = array<i64: 1, 1>, scalar_prefetch = 0 : i64, scratch_operands = 0 : i64, tpu.core_type = #tpu.core_type<tc>, window_params = [{transform_indices = @transform_0, window_bounds = array<i64: 32, 64>}, {pipeline_mode = #tpu.pipeline_mode<synchronous>, transform_indices = @transform_1, window_bounds = array<i64: 1, 64>}, {pipeline_mode = #tpu.pipeline_mode<synchronous>, transform_indices = @transform_2, window_bounds = array<i64: 1, 64>}, {transform_indices = @transform_3, window_bounds = array<i64: 64, 512>}, {transform_indices = @transform_4, window_bounds = array<i64: 32, 512>}]} {
    %c0 = arith.constant 0 : index
    %c0_0 = arith.constant 0 : index
    %0 = vector.load %arg2[%c0, %c0_0] : memref<32x64xf32, #tpu.memory_space<vmem>>, vector<32x64xf32>
    %c0_1 = arith.constant 0 : index
    %c0_2 = arith.constant 0 : index
    %1 = vector.load %arg3[%c0_1, %c0_2] : memref<1x64xf32, #tpu.memory_space<vmem>>, vector<1x64xf32>
    %2 = vector.broadcast %1 : vector<1x64xf32> to vector<32x64xf32>
    %3 = arith.mulf %0, %2 : vector<32x64xf32>
    %c0_3 = arith.constant 0 : index
    %c0_4 = arith.constant 0 : index
    %4 = vector.load %arg4[%c0_3, %c0_4] : memref<1x64xf32, #tpu.memory_space<vmem>>, vector<1x64xf32>
    %5 = vector.broadcast %4 : vector<1x64xf32> to vector<32x64xf32>
    %6 = arith.addf %3, %5 : vector<32x64xf32>
    %cst = arith.constant 0.000000e+00 : f32
    %7 = vector.broadcast %cst : f32 to vector<32x64xf32>
    %8 = arith.maximumf %6, %7 : vector<32x64xf32>
    %c0_5 = arith.constant 0 : index
    %c0_6 = arith.constant 0 : index
    %9 = vector.load %arg5[%c0_5, %c0_6] : memref<64x512xf32, #tpu.memory_space<vmem>>, vector<64x512xf32>
    %cst_7 = arith.constant dense<0.000000e+00> : vector<32x512xf32>
    %10 = tpu.matmul %8, %9, %cst_7 {dimension_numbers = #tpu.dot_dimension_numbers<[1], [0], [0], [1], [0, 0, 1, 1], [], []>} : vector<32x64xf32>, vector<64x512xf32>, vector<32x512xf32> -> vector<32x512xf32>
    %c0_8 = arith.constant 0 : index
    %c0_9 = arith.constant 0 : index
    %11 = vector.load %arg6[%c0_8, %c0_9] : memref<32x512xf32, #tpu.memory_space<vmem>>, vector<32x512xf32>
    tpu.vector_store %arg6[%c0_8, %c0_9], %10 {strides = array<i32>} : memref<32x512xf32, #tpu.memory_space<vmem>>, vector<32x512xf32>,
    return
  }
  func.func @transform_0(%arg0: i32, %arg1: i32) -> (i32, i32) {
    %c0_i32 = arith.constant 0 : i32
    %c0_i32_0 = arith.constant 0 : i32
    return %arg0, %c0_i32 : i32, i32
  }
  func.func @transform_1(%arg0: i32, %arg1: i32) -> (i32, i32) {
    %c0_i32 = arith.constant 0 : i32
    %c0_i32_0 = arith.constant 0 : i32
    %c0_i32_1 = arith.constant 0 : i32
    return %c0_i32, %c0_i32_0 : i32, i32
  }
  func.func @transform_2(%arg0: i32, %arg1: i32) -> (i32, i32) {
    %c0_i32 = arith.constant 0 : i32
    %c0_i32_0 = arith.constant 0 : i32
    %c0_i32_1 = arith.constant 0 : i32
    return %c0_i32, %c0_i32_0 : i32, i32
  }
  func.func @transform_3(%arg0: i32, %arg1: i32) -> (i32, i32) {
    %c0_i32 = arith.constant 0 : i32
    %c0_i32_0 = arith.constant 0 : i32
    return %c0_i32, %arg1 : i32, i32
  }
  func.func @transform_4(%arg0: i32, %arg1: i32) -> (i32, i32) {
    %c0_i32 = arith.constant 0 : i32
    return %arg0, %arg1 : i32, i32
  }
}

module attributes {stable_mosaic.version = 11 : i64} {
  func.func @_bn_relu_matmul_kernel(%arg0: i32, %arg1: i32, %arg2: memref<128x32xf32, #tpu.memory_space<vmem>>, %arg3: memref<1x32xf32, #tpu.memory_space<vmem>>, %arg4: memref<1x32xf32, #tpu.memory_space<vmem>>, %arg5: memref<32x256xf32, #tpu.memory_space<vmem>>, %arg6: memref<128x256xf32, #tpu.memory_space<vmem>>) attributes {dimension_semantics = [#tpu.dimension_semantics<parallel>, #tpu.dimension_semantics<parallel>], iteration_bounds = array<i64: 1, 1>, scalar_prefetch = 0 : i64, scratch_operands = 0 : i64, tpu.core_type = #tpu.core_type<tc>, window_params = [{transform_indices = @transform_0, window_bounds = array<i64: 128, 32>}, {pipeline_mode = #tpu.pipeline_mode<synchronous>, transform_indices = @transform_1, window_bounds = array<i64: 1, 32>}, {pipeline_mode = #tpu.pipeline_mode<synchronous>, transform_indices = @transform_2, window_bounds = array<i64: 1, 32>}, {transform_indices = @transform_3, window_bounds = array<i64: 32, 256>}, {transform_indices = @transform_4, window_bounds = array<i64: 128, 256>}]} {
    %c0 = arith.constant 0 : index
    %c0_0 = arith.constant 0 : index
    %0 = vector.load %arg2[%c0, %c0_0] : memref<128x32xf32, #tpu.memory_space<vmem>>, vector<128x32xf32>
    %c0_1 = arith.constant 0 : index
    %c0_2 = arith.constant 0 : index
    %1 = vector.load %arg3[%c0_1, %c0_2] : memref<1x32xf32, #tpu.memory_space<vmem>>, vector<1x32xf32>
    %2 = vector.broadcast %1 : vector<1x32xf32> to vector<128x32xf32>
    %3 = arith.mulf %0, %2 : vector<128x32xf32>
    %c0_3 = arith.constant 0 : index
    %c0_4 = arith.constant 0 : index
    %4 = vector.load %arg4[%c0_3, %c0_4] : memref<1x32xf32, #tpu.memory_space<vmem>>, vector<1x32xf32>
    %5 = vector.broadcast %4 : vector<1x32xf32> to vector<128x32xf32>
    %6 = arith.addf %3, %5 : vector<128x32xf32>
    %cst = arith.constant 0.000000e+00 : f32
    %7 = vector.broadcast %cst : f32 to vector<128x32xf32>
    %8 = arith.maximumf %6, %7 : vector<128x32xf32>
    %c0_5 = arith.constant 0 : index
    %c0_6 = arith.constant 0 : index
    %9 = vector.load %arg5[%c0_5, %c0_6] : memref<32x256xf32, #tpu.memory_space<vmem>>, vector<32x256xf32>
    %cst_7 = arith.constant dense<0.000000e+00> : vector<128x256xf32>
    %10 = tpu.matmul %8, %9, %cst_7 {dimension_numbers = #tpu.dot_dimension_numbers<[1], [0], [0], [1], [0, 0, 1, 1], [], []>} : vector<128x32xf32>, vector<32x256xf32>, vector<128x256xf32> -> vector<128x256xf32>
    %c0_8 = arith.constant 0 : index
    %c0_9 = arith.constant 0 : index
    %11 = vector.load %arg6[%c0_8, %c0_9] : memref<128x256xf32, #tpu.memory_space<vmem>>, vector<128x256xf32>
    tpu.vector_store %arg6[%c0_8, %c0_9], %10 {strides = array<i32>} : memref<128x256xf32, #tpu.memory_space<vmem>>, vector<128x256xf32>,
    return
  }
  func.func @transform_0(%arg0: i32, %arg1: i32) -> (i32, i32) {
    %c0_i32 = arith.constant 0 : i32
    %c0_i32_0 = arith.constant 0 : i32
    return %arg0, %c0_i32 : i32, i32
  }
  func.func @transform_1(%arg0: i32, %arg1: i32) -> (i32, i32) {
    %c0_i32 = arith.constant 0 : i32
    %c0_i32_0 = arith.constant 0 : i32
    %c0_i32_1 = arith.constant 0 : i32
    return %c0_i32, %c0_i32_0 : i32, i32
  }
  func.func @transform_2(%arg0: i32, %arg1: i32) -> (i32, i32) {
    %c0_i32 = arith.constant 0 : i32
    %c0_i32_0 = arith.constant 0 : i32
    %c0_i32_1 = arith.constant 0 : i32
    return %c0_i32, %c0_i32_0 : i32, i32
  }
  func.func @transform_3(%arg0: i32, %arg1: i32) -> (i32, i32) {
    %c0_i32 = arith.constant 0 : i32
    %c0_i32_0 = arith.constant 0 : i32
    return %c0_i32, %arg1 : i32, i32
  }
  func.func @transform_4(%arg0: i32, %arg1: i32) -> (i32, i32) {
    %c0_i32 = arith.constant 0 : i32
    return %arg0, %arg1 : i32, i32
  }
}

module attributes {stable_mosaic.version = 11 : i64} {
  func.func @_stats_kernel(%arg0: i32, %arg1: memref<128x32xf32, #tpu.memory_space<vmem>>, %arg2: memref<1x32xf32, #tpu.memory_space<vmem>>, %arg3: memref<1x32xf32, #tpu.memory_space<vmem>>) attributes {dimension_semantics = [#tpu.dimension_semantics<arbitrary>], iteration_bounds = array<i64: 1>, scalar_prefetch = 0 : i64, scratch_operands = 0 : i64, tpu.core_type = #tpu.core_type<tc>, window_params = [{transform_indices = @transform_0, window_bounds = array<i64: 128, 32>}, {pipeline_mode = #tpu.pipeline_mode<synchronous>, transform_indices = @transform_1, window_bounds = array<i64: 1, 32>}, {pipeline_mode = #tpu.pipeline_mode<synchronous>, transform_indices = @transform_2, window_bounds = array<i64: 1, 32>}]} {
    %c0_i32 = arith.constant 0 : i32
    %0 = arith.cmpi eq, %arg0, %c0_i32 : i32
    %1 = arith.extui %0 : i1 to i32
    %c0_i32_0 = arith.constant 0 : i32
    %2 = arith.cmpi ne, %1, %c0_i32_0 : i32
    scf.if %2 {
      %cst_11 = arith.constant 0.000000e+00 : f32
      %15 = vector.broadcast %cst_11 : f32 to vector<1x32xf32>
      %c0_12 = arith.constant 0 : index
      %c0_13 = arith.constant 0 : index
      %16 = vector.load %arg2[%c0_12, %c0_13] : memref<1x32xf32, #tpu.memory_space<vmem>>, vector<1x32xf32>
      tpu.vector_store %arg2[%c0_12, %c0_13], %15 {strides = array<i32>} : memref<1x32xf32, #tpu.memory_space<vmem>>, vector<1x32xf32>,
      %cst_14 = arith.constant 0.000000e+00 : f32
      %17 = vector.broadcast %cst_14 : f32 to vector<1x32xf32>
      %c0_15 = arith.constant 0 : index
      %c0_16 = arith.constant 0 : index
      %18 = vector.load %arg3[%c0_15, %c0_16] : memref<1x32xf32, #tpu.memory_space<vmem>>, vector<1x32xf32>
      tpu.vector_store %arg3[%c0_15, %c0_16], %17 {strides = array<i32>} : memref<1x32xf32, #tpu.memory_space<vmem>>, vector<1x32xf32>,
    } else {
    }
    %c0 = arith.constant 0 : index
    %c0_1 = arith.constant 0 : index
    %3 = vector.load %arg1[%c0, %c0_1] : memref<128x32xf32, #tpu.memory_space<vmem>>, vector<128x32xf32>
    %c0_2 = arith.constant 0 : index
    %c0_3 = arith.constant 0 : index
    %4 = vector.load %arg2[%c0_2, %c0_3] : memref<1x32xf32, #tpu.memory_space<vmem>>, vector<1x32xf32>
    %cst = arith.constant dense<0.000000e+00> : vector<32xf32>
    %5 = vector.multi_reduction <add>, %3, %cst [0] : vector<128x32xf32> to vector<32xf32>
    %6 = vector.shape_cast %5 : vector<32xf32> to vector<1x32xf32>
    %7 = arith.addf %4, %6 : vector<1x32xf32>
    %c0_4 = arith.constant 0 : index
    %c0_5 = arith.constant 0 : index
    %8 = vector.load %arg2[%c0_4, %c0_5] : memref<1x32xf32, #tpu.memory_space<vmem>>, vector<1x32xf32>
    tpu.vector_store %arg2[%c0_4, %c0_5], %7 {strides = array<i32>} : memref<1x32xf32, #tpu.memory_space<vmem>>, vector<1x32xf32>,
    %c0_6 = arith.constant 0 : index
    %c0_7 = arith.constant 0 : index
    %9 = vector.load %arg3[%c0_6, %c0_7] : memref<1x32xf32, #tpu.memory_space<vmem>>, vector<1x32xf32>
    %10 = arith.mulf %3, %3 : vector<128x32xf32>
    %cst_8 = arith.constant dense<0.000000e+00> : vector<32xf32>
    %11 = vector.multi_reduction <add>, %10, %cst_8 [0] : vector<128x32xf32> to vector<32xf32>
    %12 = vector.shape_cast %11 : vector<32xf32> to vector<1x32xf32>
    %13 = arith.addf %9, %12 : vector<1x32xf32>
    %c0_9 = arith.constant 0 : index
    %c0_10 = arith.constant 0 : index
    %14 = vector.load %arg3[%c0_9, %c0_10] : memref<1x32xf32, #tpu.memory_space<vmem>>, vector<1x32xf32>
    tpu.vector_store %arg3[%c0_9, %c0_10], %13 {strides = array<i32>} : memref<1x32xf32, #tpu.memory_space<vmem>>, vector<1x32xf32>,
    return
  }
  func.func @transform_0(%arg0: i32) -> (i32, i32) {
    %c0_i32 = arith.constant 0 : i32
    %c0_i32_0 = arith.constant 0 : i32
    return %arg0, %c0_i32 : i32, i32
  }
  func.func @transform_1(%arg0: i32) -> (i32, i32) {
    %c0_i32 = arith.constant 0 : i32
    %c0_i32_0 = arith.constant 0 : i32
    %c0_i32_1 = arith.constant 0 : i32
    return %c0_i32, %c0_i32_0 : i32, i32
  }
  func.func @transform_2(%arg0: i32) -> (i32, i32) {
    %c0_i32 = arith.constant 0 : i32
    %c0_i32_0 = arith.constant 0 : i32
    %c0_i32_1 = arith.constant 0 : i32
    return %c0_i32, %c0_i32_0 : i32, i32
  }
}

module attributes {stable_mosaic.version = 11 : i64} {
  func.func @_stats_kernel(%arg0: i32, %arg1: memref<512x16xf32, #tpu.memory_space<vmem>>, %arg2: memref<1x16xf32, #tpu.memory_space<vmem>>, %arg3: memref<1x16xf32, #tpu.memory_space<vmem>>) attributes {dimension_semantics = [#tpu.dimension_semantics<arbitrary>], iteration_bounds = array<i64: 1>, scalar_prefetch = 0 : i64, scratch_operands = 0 : i64, tpu.core_type = #tpu.core_type<tc>, window_params = [{transform_indices = @transform_0, window_bounds = array<i64: 512, 16>}, {pipeline_mode = #tpu.pipeline_mode<synchronous>, transform_indices = @transform_1, window_bounds = array<i64: 1, 16>}, {pipeline_mode = #tpu.pipeline_mode<synchronous>, transform_indices = @transform_2, window_bounds = array<i64: 1, 16>}]} {
    %c0_i32 = arith.constant 0 : i32
    %0 = arith.cmpi eq, %arg0, %c0_i32 : i32
    %1 = arith.extui %0 : i1 to i32
    %c0_i32_0 = arith.constant 0 : i32
    %2 = arith.cmpi ne, %1, %c0_i32_0 : i32
    scf.if %2 {
      %cst_11 = arith.constant 0.000000e+00 : f32
      %15 = vector.broadcast %cst_11 : f32 to vector<1x16xf32>
      %c0_12 = arith.constant 0 : index
      %c0_13 = arith.constant 0 : index
      %16 = vector.load %arg2[%c0_12, %c0_13] : memref<1x16xf32, #tpu.memory_space<vmem>>, vector<1x16xf32>
      tpu.vector_store %arg2[%c0_12, %c0_13], %15 {strides = array<i32>} : memref<1x16xf32, #tpu.memory_space<vmem>>, vector<1x16xf32>,
      %cst_14 = arith.constant 0.000000e+00 : f32
      %17 = vector.broadcast %cst_14 : f32 to vector<1x16xf32>
      %c0_15 = arith.constant 0 : index
      %c0_16 = arith.constant 0 : index
      %18 = vector.load %arg3[%c0_15, %c0_16] : memref<1x16xf32, #tpu.memory_space<vmem>>, vector<1x16xf32>
      tpu.vector_store %arg3[%c0_15, %c0_16], %17 {strides = array<i32>} : memref<1x16xf32, #tpu.memory_space<vmem>>, vector<1x16xf32>,
    } else {
    }
    %c0 = arith.constant 0 : index
    %c0_1 = arith.constant 0 : index
    %3 = vector.load %arg1[%c0, %c0_1] : memref<512x16xf32, #tpu.memory_space<vmem>>, vector<512x16xf32>
    %c0_2 = arith.constant 0 : index
    %c0_3 = arith.constant 0 : index
    %4 = vector.load %arg2[%c0_2, %c0_3] : memref<1x16xf32, #tpu.memory_space<vmem>>, vector<1x16xf32>
    %cst = arith.constant dense<0.000000e+00> : vector<16xf32>
    %5 = vector.multi_reduction <add>, %3, %cst [0] : vector<512x16xf32> to vector<16xf32>
    %6 = vector.shape_cast %5 : vector<16xf32> to vector<1x16xf32>
    %7 = arith.addf %4, %6 : vector<1x16xf32>
    %c0_4 = arith.constant 0 : index
    %c0_5 = arith.constant 0 : index
    %8 = vector.load %arg2[%c0_4, %c0_5] : memref<1x16xf32, #tpu.memory_space<vmem>>, vector<1x16xf32>
    tpu.vector_store %arg2[%c0_4, %c0_5], %7 {strides = array<i32>} : memref<1x16xf32, #tpu.memory_space<vmem>>, vector<1x16xf32>,
    %c0_6 = arith.constant 0 : index
    %c0_7 = arith.constant 0 : index
    %9 = vector.load %arg3[%c0_6, %c0_7] : memref<1x16xf32, #tpu.memory_space<vmem>>, vector<1x16xf32>
    %10 = arith.mulf %3, %3 : vector<512x16xf32>
    %cst_8 = arith.constant dense<0.000000e+00> : vector<16xf32>
    %11 = vector.multi_reduction <add>, %10, %cst_8 [0] : vector<512x16xf32> to vector<16xf32>
    %12 = vector.shape_cast %11 : vector<16xf32> to vector<1x16xf32>
    %13 = arith.addf %9, %12 : vector<1x16xf32>
    %c0_9 = arith.constant 0 : index
    %c0_10 = arith.constant 0 : index
    %14 = vector.load %arg3[%c0_9, %c0_10] : memref<1x16xf32, #tpu.memory_space<vmem>>, vector<1x16xf32>
    tpu.vector_store %arg3[%c0_9, %c0_10], %13 {strides = array<i32>} : memref<1x16xf32, #tpu.memory_space<vmem>>, vector<1x16xf32>,
    return
  }
  func.func @transform_0(%arg0: i32) -> (i32, i32) {
    %c0_i32 = arith.constant 0 : i32
    %c0_i32_0 = arith.constant 0 : i32
    return %arg0, %c0_i32 : i32, i32
  }
  func.func @transform_1(%arg0: i32) -> (i32, i32) {
    %c0_i32 = arith.constant 0 : i32
    %c0_i32_0 = arith.constant 0 : i32
    %c0_i32_1 = arith.constant 0 : i32
    return %c0_i32, %c0_i32_0 : i32, i32
  }
  func.func @transform_2(%arg0: i32) -> (i32, i32) {
    %c0_i32 = arith.constant 0 : i32
    %c0_i32_0 = arith.constant 0 : i32
    %c0_i32_1 = arith.constant 0 : i32
    return %c0_i32, %c0_i32_0 : i32, i32
  }
}

module attributes {stable_mosaic.version = 11 : i64} {
  func.func @_bn_relu_matmul_kernel(%arg0: i32, %arg1: i32, %arg2: memref<512x16xf32, #tpu.memory_space<vmem>>, %arg3: memref<1x16xf32, #tpu.memory_space<vmem>>, %arg4: memref<1x16xf32, #tpu.memory_space<vmem>>, %arg5: memref<16x128xf32, #tpu.memory_space<vmem>>, %arg6: memref<512x128xf32, #tpu.memory_space<vmem>>) attributes {dimension_semantics = [#tpu.dimension_semantics<parallel>, #tpu.dimension_semantics<parallel>], iteration_bounds = array<i64: 1, 1>, scalar_prefetch = 0 : i64, scratch_operands = 0 : i64, tpu.core_type = #tpu.core_type<tc>, window_params = [{transform_indices = @transform_0, window_bounds = array<i64: 512, 16>}, {pipeline_mode = #tpu.pipeline_mode<synchronous>, transform_indices = @transform_1, window_bounds = array<i64: 1, 16>}, {pipeline_mode = #tpu.pipeline_mode<synchronous>, transform_indices = @transform_2, window_bounds = array<i64: 1, 16>}, {transform_indices = @transform_3, window_bounds = array<i64: 16, 128>}, {transform_indices = @transform_4, window_bounds = array<i64: 512, 128>}]} {
    %c0 = arith.constant 0 : index
    %c0_0 = arith.constant 0 : index
    %0 = vector.load %arg2[%c0, %c0_0] : memref<512x16xf32, #tpu.memory_space<vmem>>, vector<512x16xf32>
    %c0_1 = arith.constant 0 : index
    %c0_2 = arith.constant 0 : index
    %1 = vector.load %arg3[%c0_1, %c0_2] : memref<1x16xf32, #tpu.memory_space<vmem>>, vector<1x16xf32>
    %2 = vector.broadcast %1 : vector<1x16xf32> to vector<512x16xf32>
    %3 = arith.mulf %0, %2 : vector<512x16xf32>
    %c0_3 = arith.constant 0 : index
    %c0_4 = arith.constant 0 : index
    %4 = vector.load %arg4[%c0_3, %c0_4] : memref<1x16xf32, #tpu.memory_space<vmem>>, vector<1x16xf32>
    %5 = vector.broadcast %4 : vector<1x16xf32> to vector<512x16xf32>
    %6 = arith.addf %3, %5 : vector<512x16xf32>
    %cst = arith.constant 0.000000e+00 : f32
    %7 = vector.broadcast %cst : f32 to vector<512x16xf32>
    %8 = arith.maximumf %6, %7 : vector<512x16xf32>
    %c0_5 = arith.constant 0 : index
    %c0_6 = arith.constant 0 : index
    %9 = vector.load %arg5[%c0_5, %c0_6] : memref<16x128xf32, #tpu.memory_space<vmem>>, vector<16x128xf32>
    %cst_7 = arith.constant dense<0.000000e+00> : vector<512x128xf32>
    %10 = tpu.matmul %8, %9, %cst_7 {dimension_numbers = #tpu.dot_dimension_numbers<[1], [0], [0], [1], [0, 0, 1, 1], [], []>} : vector<512x16xf32>, vector<16x128xf32>, vector<512x128xf32> -> vector<512x128xf32>
    %c0_8 = arith.constant 0 : index
    %c0_9 = arith.constant 0 : index
    %11 = vector.load %arg6[%c0_8, %c0_9] : memref<512x128xf32, #tpu.memory_space<vmem>>, vector<512x128xf32>
    tpu.vector_store %arg6[%c0_8, %c0_9], %10 {strides = array<i32>} : memref<512x128xf32, #tpu.memory_space<vmem>>, vector<512x128xf32>,
    return
  }
  func.func @transform_0(%arg0: i32, %arg1: i32) -> (i32, i32) {
    %c0_i32 = arith.constant 0 : i32
    %c0_i32_0 = arith.constant 0 : i32
    return %arg0, %c0_i32 : i32, i32
  }
  func.func @transform_1(%arg0: i32, %arg1: i32) -> (i32, i32) {
    %c0_i32 = arith.constant 0 : i32
    %c0_i32_0 = arith.constant 0 : i32
    %c0_i32_1 = arith.constant 0 : i32
    return %c0_i32, %c0_i32_0 : i32, i32
  }
  func.func @transform_2(%arg0: i32, %arg1: i32) -> (i32, i32) {
    %c0_i32 = arith.constant 0 : i32
    %c0_i32_0 = arith.constant 0 : i32
    %c0_i32_1 = arith.constant 0 : i32
    return %c0_i32, %c0_i32_0 : i32, i32
  }
  func.func @transform_3(%arg0: i32, %arg1: i32) -> (i32, i32) {
    %c0_i32 = arith.constant 0 : i32
    %c0_i32_0 = arith.constant 0 : i32
    return %c0_i32, %arg1 : i32, i32
  }
  func.func @transform_4(%arg0: i32, %arg1: i32) -> (i32, i32) {
    %c0_i32 = arith.constant 0 : i32
    return %arg0, %arg1 : i32, i32
  }
}

module attributes {stable_mosaic.version = 11 : i64} {
  func.func @_stats_kernel(%arg0: i32, %arg1: memref<512x8xf32, #tpu.memory_space<vmem>>, %arg2: memref<1x8xf32, #tpu.memory_space<vmem>>, %arg3: memref<1x8xf32, #tpu.memory_space<vmem>>) attributes {dimension_semantics = [#tpu.dimension_semantics<arbitrary>], iteration_bounds = array<i64: 4>, scalar_prefetch = 0 : i64, scratch_operands = 0 : i64, tpu.core_type = #tpu.core_type<tc>, window_params = [{transform_indices = @transform_0, window_bounds = array<i64: 512, 8>}, {pipeline_mode = #tpu.pipeline_mode<synchronous>, transform_indices = @transform_1, window_bounds = array<i64: 1, 8>}, {pipeline_mode = #tpu.pipeline_mode<synchronous>, transform_indices = @transform_2, window_bounds = array<i64: 1, 8>}]} {
    %c0_i32 = arith.constant 0 : i32
    %0 = arith.cmpi eq, %arg0, %c0_i32 : i32
    %1 = arith.extui %0 : i1 to i32
    %c0_i32_0 = arith.constant 0 : i32
    %2 = arith.cmpi ne, %1, %c0_i32_0 : i32
    scf.if %2 {
      %cst_11 = arith.constant 0.000000e+00 : f32
      %15 = vector.broadcast %cst_11 : f32 to vector<1x8xf32>
      %c0_12 = arith.constant 0 : index
      %c0_13 = arith.constant 0 : index
      %16 = vector.load %arg2[%c0_12, %c0_13] : memref<1x8xf32, #tpu.memory_space<vmem>>, vector<1x8xf32>
      tpu.vector_store %arg2[%c0_12, %c0_13], %15 {strides = array<i32>} : memref<1x8xf32, #tpu.memory_space<vmem>>, vector<1x8xf32>,
      %cst_14 = arith.constant 0.000000e+00 : f32
      %17 = vector.broadcast %cst_14 : f32 to vector<1x8xf32>
      %c0_15 = arith.constant 0 : index
      %c0_16 = arith.constant 0 : index
      %18 = vector.load %arg3[%c0_15, %c0_16] : memref<1x8xf32, #tpu.memory_space<vmem>>, vector<1x8xf32>
      tpu.vector_store %arg3[%c0_15, %c0_16], %17 {strides = array<i32>} : memref<1x8xf32, #tpu.memory_space<vmem>>, vector<1x8xf32>,
    } else {
    }
    %c0 = arith.constant 0 : index
    %c0_1 = arith.constant 0 : index
    %3 = vector.load %arg1[%c0, %c0_1] : memref<512x8xf32, #tpu.memory_space<vmem>>, vector<512x8xf32>
    %c0_2 = arith.constant 0 : index
    %c0_3 = arith.constant 0 : index
    %4 = vector.load %arg2[%c0_2, %c0_3] : memref<1x8xf32, #tpu.memory_space<vmem>>, vector<1x8xf32>
    %cst = arith.constant dense<0.000000e+00> : vector<8xf32>
    %5 = vector.multi_reduction <add>, %3, %cst [0] : vector<512x8xf32> to vector<8xf32>
    %6 = vector.shape_cast %5 : vector<8xf32> to vector<1x8xf32>
    %7 = arith.addf %4, %6 : vector<1x8xf32>
    %c0_4 = arith.constant 0 : index
    %c0_5 = arith.constant 0 : index
    %8 = vector.load %arg2[%c0_4, %c0_5] : memref<1x8xf32, #tpu.memory_space<vmem>>, vector<1x8xf32>
    tpu.vector_store %arg2[%c0_4, %c0_5], %7 {strides = array<i32>} : memref<1x8xf32, #tpu.memory_space<vmem>>, vector<1x8xf32>,
    %c0_6 = arith.constant 0 : index
    %c0_7 = arith.constant 0 : index
    %9 = vector.load %arg3[%c0_6, %c0_7] : memref<1x8xf32, #tpu.memory_space<vmem>>, vector<1x8xf32>
    %10 = arith.mulf %3, %3 : vector<512x8xf32>
    %cst_8 = arith.constant dense<0.000000e+00> : vector<8xf32>
    %11 = vector.multi_reduction <add>, %10, %cst_8 [0] : vector<512x8xf32> to vector<8xf32>
    %12 = vector.shape_cast %11 : vector<8xf32> to vector<1x8xf32>
    %13 = arith.addf %9, %12 : vector<1x8xf32>
    %c0_9 = arith.constant 0 : index
    %c0_10 = arith.constant 0 : index
    %14 = vector.load %arg3[%c0_9, %c0_10] : memref<1x8xf32, #tpu.memory_space<vmem>>, vector<1x8xf32>
    tpu.vector_store %arg3[%c0_9, %c0_10], %13 {strides = array<i32>} : memref<1x8xf32, #tpu.memory_space<vmem>>, vector<1x8xf32>,
    return
  }
  func.func @transform_0(%arg0: i32) -> (i32, i32) {
    %c0_i32 = arith.constant 0 : i32
    %c0_i32_0 = arith.constant 0 : i32
    return %arg0, %c0_i32 : i32, i32
  }
  func.func @transform_1(%arg0: i32) -> (i32, i32) {
    %c0_i32 = arith.constant 0 : i32
    %c0_i32_0 = arith.constant 0 : i32
    %c0_i32_1 = arith.constant 0 : i32
    return %c0_i32, %c0_i32_0 : i32, i32
  }
  func.func @transform_2(%arg0: i32) -> (i32, i32) {
    %c0_i32 = arith.constant 0 : i32
    %c0_i32_0 = arith.constant 0 : i32
    %c0_i32_1 = arith.constant 0 : i32
    return %c0_i32, %c0_i32_0 : i32, i32
  }
}

module attributes {stable_mosaic.version = 11 : i64} {
  func.func @_bn_relu_matmul_kernel(%arg0: i32, %arg1: i32, %arg2: memref<512x8xf32, #tpu.memory_space<vmem>>, %arg3: memref<1x8xf32, #tpu.memory_space<vmem>>, %arg4: memref<1x8xf32, #tpu.memory_space<vmem>>, %arg5: memref<8x48xf32, #tpu.memory_space<vmem>>, %arg6: memref<512x48xf32, #tpu.memory_space<vmem>>) attributes {dimension_semantics = [#tpu.dimension_semantics<parallel>, #tpu.dimension_semantics<parallel>], iteration_bounds = array<i64: 4, 1>, scalar_prefetch = 0 : i64, scratch_operands = 0 : i64, tpu.core_type = #tpu.core_type<tc>, window_params = [{transform_indices = @transform_0, window_bounds = array<i64: 512, 8>}, {pipeline_mode = #tpu.pipeline_mode<synchronous>, transform_indices = @transform_1, window_bounds = array<i64: 1, 8>}, {pipeline_mode = #tpu.pipeline_mode<synchronous>, transform_indices = @transform_2, window_bounds = array<i64: 1, 8>}, {transform_indices = @transform_3, window_bounds = array<i64: 8, 48>}, {transform_indices = @transform_4, window_bounds = array<i64: 512, 48>}]} {
    %c0 = arith.constant 0 : index
    %c0_0 = arith.constant 0 : index
    %0 = vector.load %arg2[%c0, %c0_0] : memref<512x8xf32, #tpu.memory_space<vmem>>, vector<512x8xf32>
    %c0_1 = arith.constant 0 : index
    %c0_2 = arith.constant 0 : index
    %1 = vector.load %arg3[%c0_1, %c0_2] : memref<1x8xf32, #tpu.memory_space<vmem>>, vector<1x8xf32>
    %2 = vector.broadcast %1 : vector<1x8xf32> to vector<512x8xf32>
    %3 = arith.mulf %0, %2 : vector<512x8xf32>
    %c0_3 = arith.constant 0 : index
    %c0_4 = arith.constant 0 : index
    %4 = vector.load %arg4[%c0_3, %c0_4] : memref<1x8xf32, #tpu.memory_space<vmem>>, vector<1x8xf32>
    %5 = vector.broadcast %4 : vector<1x8xf32> to vector<512x8xf32>
    %6 = arith.addf %3, %5 : vector<512x8xf32>
    %cst = arith.constant 0.000000e+00 : f32
    %7 = vector.broadcast %cst : f32 to vector<512x8xf32>
    %8 = arith.maximumf %6, %7 : vector<512x8xf32>
    %c0_5 = arith.constant 0 : index
    %c0_6 = arith.constant 0 : index
    %9 = vector.load %arg5[%c0_5, %c0_6] : memref<8x48xf32, #tpu.memory_space<vmem>>, vector<8x48xf32>
    %cst_7 = arith.constant dense<0.000000e+00> : vector<512x48xf32>
    %10 = tpu.matmul %8, %9, %cst_7 {dimension_numbers = #tpu.dot_dimension_numbers<[1], [0], [0], [1], [0, 0, 1, 1], [], []>} : vector<512x8xf32>, vector<8x48xf32>, vector<512x48xf32> -> vector<512x48xf32>
    %c0_8 = arith.constant 0 : index
    %c0_9 = arith.constant 0 : index
    %11 = vector.load %arg6[%c0_8, %c0_9] : memref<512x48xf32, #tpu.memory_space<vmem>>, vector<512x48xf32>
    tpu.vector_store %arg6[%c0_8, %c0_9], %10 {strides = array<i32>} : memref<512x48xf32, #tpu.memory_space<vmem>>, vector<512x48xf32>,
    return
  }
  func.func @transform_0(%arg0: i32, %arg1: i32) -> (i32, i32) {
    %c0_i32 = arith.constant 0 : i32
    %c0_i32_0 = arith.constant 0 : i32
    return %arg0, %c0_i32 : i32, i32
  }
  func.func @transform_1(%arg0: i32, %arg1: i32) -> (i32, i32) {
    %c0_i32 = arith.constant 0 : i32
    %c0_i32_0 = arith.constant 0 : i32
    %c0_i32_1 = arith.constant 0 : i32
    return %c0_i32, %c0_i32_0 : i32, i32
  }
  func.func @transform_2(%arg0: i32, %arg1: i32) -> (i32, i32) {
    %c0_i32 = arith.constant 0 : i32
    %c0_i32_0 = arith.constant 0 : i32
    %c0_i32_1 = arith.constant 0 : i32
    return %c0_i32, %c0_i32_0 : i32, i32
  }
  func.func @transform_3(%arg0: i32, %arg1: i32) -> (i32, i32) {
    %c0_i32 = arith.constant 0 : i32
    %c0_i32_0 = arith.constant 0 : i32
    return %c0_i32, %arg1 : i32, i32
  }
  func.func @transform_4(%arg0: i32, %arg1: i32) -> (i32, i32) {
    %c0_i32 = arith.constant 0 : i32
    return %arg0, %arg1 : i32, i32
  }
}

module attributes {stable_mosaic.version = 11 : i64} {
  func.func @_tanh_kernel(%arg0: i32, %arg1: memref<192x128xf32, #tpu.memory_space<vmem>>, %arg2: memref<192x128xf32, #tpu.memory_space<vmem>>) attributes {dimension_semantics = [#tpu.dimension_semantics<parallel>], iteration_bounds = array<i64: 1>, scalar_prefetch = 0 : i64, scratch_operands = 0 : i64, tpu.core_type = #tpu.core_type<tc>, window_params = [{transform_indices = @transform_0, window_bounds = array<i64: 192, 128>}, {transform_indices = @transform_1, window_bounds = array<i64: 192, 128>}]} {
    %c0 = arith.constant 0 : index
    %c0_0 = arith.constant 0 : index
    %0 = vector.load %arg1[%c0, %c0_0] : memref<192x128xf32, #tpu.memory_space<vmem>>, vector<192x128xf32>
    %1 = math.tanh %0 : vector<192x128xf32>
    %c0_1 = arith.constant 0 : index
    %c0_2 = arith.constant 0 : index
    %2 = vector.load %arg2[%c0_1, %c0_2] : memref<192x128xf32, #tpu.memory_space<vmem>>, vector<192x128xf32>
    tpu.vector_store %arg2[%c0_1, %c0_2], %1 {strides = array<i32>} : memref<192x128xf32, #tpu.memory_space<vmem>>, vector<192x128xf32>,
    return
  }
  func.func @transform_0(%arg0: i32) -> (i32, i32) {
    %c0_i32 = arith.constant 0 : i32
    %c0_i32_0 = arith.constant 0 : i32
    return %arg0, %c0_i32 : i32, i32
  }
  func.func @transform_1(%arg0: i32) -> (i32, i32) {
    %c0_i32 = arith.constant 0 : i32
    %c0_i32_0 = arith.constant 0 : i32
    return %arg0, %c0_i32 : i32, i32
  }
}

</mosaic_0001>

<bundles_post_ra>
// kernel: generator_forward.11
= control target key start
LH: loop header
LB: loop body
LE: loop exit
PB: predicated region body
PF: predicated region fallthrough
CT: control target
= control target key end

     0   :  { %vm14_vm0 = vcmask 516096   ;;  %vm22_vm1 = vcmask 523264   ;;  %v68_v0 = vmov 0.0   ;;  %s126_s0 = inlined_call_operand.vmem [shape: f32[32,64], index: 0, kind: input, shape index: {}]   ;;  %s127_s1 = inlined_call_operand.vmem [shape: f32[1,64], index: 1, kind: output, shape index: {0}]   ;;  %s128_s2 = inlined_call_operand.vmem [shape: f32[1,64], index: 2, kind: output, shape index: {1}]  }
   0x1   :  { %15 = vst.msk [vmem:[%s127_s1] sm:$0x1] %vm14_vm0, %v68_v0  ;;  %v17_v1 = vld [vmem:[%s126_s0] sm:$0xff]  ;;  %v18_v2 = vld [vmem:[%s126_s0 + $0x8] sm:$0xff]  ;;  %v19_v3 = vld [vmem:[%s126_s0 + $0x10] sm:$0xff] }
   0x2   :  { %16 = vst.msk [vmem:[%s128_s2] sm:$0x1] %vm14_vm0, %v68_v0  ;;  %v20_v4 = vld [vmem:[%s126_s0 + $0x18] sm:$0xff]  ;;  %v23_v5 = vsel %vm22_vm1, %v17_v1, 0.0  ;;  %v24_v6 = vsel %vm22_vm1, %v18_v2, 0.0  ;;  %v26_v7 = vsel %vm22_vm1, %v19_v3, 0.0  ;;  %v40_v8 = vmul.f32 %v17_v1, %v17_v1 }
   0x3   :  { %v25_v9 = vadd.f32 %v24_v6, %v23_v5  ;;  %v41_v10 = vmul.f32 %v18_v2, %v18_v2  ;;  %v42_v11 = vmul.f32 %v19_v3, %v19_v3  ;;  %v28_v12 = vsel %vm22_vm1, %v20_v4, 0.0 }
   0x4   :  { %v43_v13 = vmul.f32 %v20_v4, %v20_v4  ;;  %v44_v14 = vsel %vm22_vm1, %v40_v8, 0.0 }
   0x5   :  { %v27_v15 = vadd.f32 %v26_v7, %v25_v9  ;;  %v45_v16 = vsel %vm22_vm1, %v41_v10, 0.0  ;;  %v47_v17 = vsel %vm22_vm1, %v42_v11, 0.0 }
   0x6   :  { %v46_v18 = vadd.f32 %v45_v16, %v44_v14  ;;  %v49_v20 = vsel %vm22_vm1, %v43_v13, 0.0 }
   0x7   :  { %v29_v19 = vadd.f32 %v28_v12, %v27_v15 }
   0x8   :  { %v48_v21 = vadd.f32 %v47_v17, %v46_v18  ;;  %v21_v31 = vld [vmem:[%s127_s1] sm:$0x1] }
   0x9   :  { %v30_v22 = vrot.slane %v29_v19, 4  ;;  %v39_v36 = vld [vmem:[%s128_s2] sm:$0x1] }
   0xa   :  { %v50_v23 = vadd.f32 %v49_v20, %v48_v21 }
   0xb   :  { %v31_v24 = vadd.f32 %v30_v22, %v29_v19 }
   0xc   :  { %v51_v25 = vrot.slane %v50_v23, 4 }
   0xd   :  { %v32_v26 = vrot.slane %v31_v24, 2 }
   0xe   :  { %v52_v27 = vadd.f32 %v51_v25, %v50_v23 }
   0xf   :  { %v33_v28 = vadd.f32 %v32_v26, %v31_v24 }
  0x10   :  { %v53_v29 = vrot.slane %v52_v27, 2 }
  0x11   :  { %v34_v30 = vrot.slane %v33_v28, 1 }
  0x12   :  { %v54_v32 = vadd.f32 %v53_v29, %v52_v27 }
  0x13   :  { %v35_v33 = vadd.f32 %v34_v30, %v33_v28 }
  0x14   :  { %v55_v34 = vrot.slane %v54_v32, 1 }
  0x15   :  { %v36_v35 = vadd.f32 %v35_v33, %v21_v31 }
  0x16   :  { %v56_v37 = vadd.f32 %v55_v34, %v54_v32 }
  0x17   :  { %38 = vst.msk [vmem:[%s127_s1] sm:$0x1] %vm14_vm0, %v36_v35 }
  0x18   :  { %v57_v38 = vadd.f32 %v56_v37, %v39_v36 }
  0x1a   :  { %58 = vst.msk [vmem:[%s128_s2] sm:$0x1] %vm14_vm0, %v57_v38 }

// kernel: generator_forward.10
= control target key start
LH: loop header
LB: loop body
LE: loop exit
PB: predicated region body
PF: predicated region fallthrough
CT: control target
= control target key end

     0   :  { %7 = vsyncpa [#allocation3], 0  ;;  %s684_s9 = smov 0   ;;  %s686_s10 = smov 0   ;;  %s795_s0 = inlined_call_operand.hbm [shape: f32[2,32], index: 0, kind: input, shape index: {}]   ;;  %s796_s1 = inlined_call_operand.vmem [shape: f32[32,1024], index: 1, kind: input, shape index: {}]   ;;  %s797_s2 = inlined_call_operand.vmem [shape: f32[2,1024], index: 2, kind: output, shape index: {}]  }
   0x1   :  { %s688_s11 = smov 0   ;;  %s690_s12 = smov 0  }
   0x2   :  { %s692_s13 = smov 0  }
   0x3 LB: > { %s525_s14 = sadd.s32 4294967295, %s664_s13   ;;  %s22_s15 = sadd.s32 1, %s660_s12  ;;  %s664_s13 = sphi %s692_s13, %s13_s13   ;;  %s660_s12 = sphi %s690_s12, %s804_s12   ;;  %s656_s11 = sphi %s688_s11, %s803_s11   ;;  %s652_s10 = sphi %s686_s10, %s802_s10   ;;  %s648_s9 = sphi %s684_s9, %s801_s9  }
   0x4   : > { %p23_p0 = scmp.ge.s32.totalorder %s22_s15, 2  ;;  %s58_s16 = sadd.s32 1, %s652_s10 }
   0x5   : > { %p65_p1 = scmp.ne.s32.totalorder %s652_s10, %s648_s9  ;;  %p66_p2 = scmp.eq.s32.totalorder %s664_s13, 0 }
   0x6   : > { %s806_s15 = smov (%p23_p0, %s22_s15), 0  ;;  %p527_p4 = scmp.ge.s32.totalorder %s664_s13, 1 }
   0x7   : > { %p717_p3 = por %p66_p2, %p65_p1  ;;  %s55_s18 = ssub.s32 %s660_s12, %s806_s15 }
   0x8   : > { %p110_p5 = scmp.lt.s32.totalorder %s664_s13, 3  ;;  %p56_p6 = scmp.eq.s32.totalorder %s55_s18, 0 }
   0x9   : > { %p729_p8 = scmp.eq.s32.totalorder %s525_s14, 0  ;;  %s666_s22 = smov [#allocation2]  }
   0xa   : > { %p725_p7 = pnand %p527_p4, %p110_p5  ;;  %s125_s23 = sshll.u32 %s666_s22, 4  ;;  %s126_s23 = int_to_ptr.vmem [resolvable:$true] %s125_s23 }
   0xb   : > { %s734_s21 = scalar_select %p56_p6, %s652_s10, %s58_s16  }
   0xc   : > { %p547_p9 = pneg %p725_p7  ;;  %s607_s24 = scalar_lea.vmem %s126_s23, 32 }
   0xd   : > { %p608_p12 = scmp.ne.s32.totalorder %s126_s23, %s607_s24  ;;  %p615_p1 = scmp.lt.s32.totalorder %s126_s23, %s126_s23 }
   0xe   : > { %p548_p10 = pnand %p729_p8, %p547_p9  ;;  %p616_p2 = scmp.lt.s32.totalorder %s607_s24, %s607_s24 }
  0x10   : > { %p598_p11 = pneg %p548_p10  ;;  %p617_p4 = por %p616_p2, %p615_p1 }
  0x12   : > { %p610_p13 = pnand %p608_p12, %p598_p11 }
  0x14   : > { %p611_p0 = pneg %p610_p13 }
  0x16   : > { %p618_p5 = pnand %p617_p4, %p611_p0 }
  0x18   : > { %621 = shalt.err (!%p618_p5)
}
  0x19   : > { %550 = dma.hbm_to_vmem [thread:$0]  (!%p548_p10), %s795_s0, 32, %s126_s23, [#allocation3]  }
  0x1a   : > { %p529_p6 = scmp.ge.s32.totalorder %s664_s13, 2 }
  0x1c   : > { %132 = sbr.rel (%p529_p6) target bundleno = 45 (0x2d), region = 20 }
  0x21   : > { %135 = sbr.rel (!%p717_p3) target bundleno = 45 (0x2d), region = 24  ;;  %s137_s27 = sand.u32 (%p717_p3), 1, %s652_s10  }
  0x22   : > { %s542_s28 = sshll.u32 (%p717_p3), %s660_s12, 5  ;;  %s530_s29 = sshll.u32 (%p717_p3), %s137_s27, 7 }
  0x23   : > { %s751_s4 = scalar_lea.vmem (%p717_p3), %s796_s1, %s542_s28  ;;  %s139_s5 = scalar_lea.vmem (%p717_p3), [#allocation4], %s530_s29 }
  0x24   : > { %v155_v0 = vld [vmem:[%s751_s4] sm:$0xff] (%p717_p3)  ;;  %v157_v1 = vld [vmem:[%s751_s4 + $0x8] sm:$0xff] (%p717_p3)  ;;  %v159_v2 = vld [vmem:[%s751_s4 + $0x10] sm:$0xff] (%p717_p3) }
  0x25   : > { %156 = vst [vmem:[%s139_s5] sm:$0xff] (%p717_p3), %v155_v0  ;;  %158 = vst [vmem:[%s139_s5 + $0x8] sm:$0xff] (%p717_p3), %v157_v1  ;;  %v161_v3 = vld [vmem:[%s751_s4 + $0x18] sm:$0xff] (%p717_p3)  ;;  %v163_v4 = vld [vmem:[%s751_s4 + $0x40] sm:$0xff] (%p717_p3) }
  0x26   : > { %160 = vst [vmem:[%s139_s5 + $0x10] sm:$0xff] %v159_v2  ;;  %v165_v5 = vld [vmem:[%s751_s4 + $0x48] sm:$0xff]  ;;  %162 = vst [vmem:[%s139_s5 + $0x18] sm:$0xff] %v161_v3  ;;  %v167_v6 = vld [vmem:[%s751_s4 + $0x50] sm:$0xff] }
  0x27   : > { %164 = vst [vmem:[%s139_s5 + $0x20] sm:$0xff] %v163_v4  ;;  %166 = vst [vmem:[%s139_s5 + $0x28] sm:$0xff] %v165_v5  ;;  %v169_v7 = vld [vmem:[%s751_s4 + $0x58] sm:$0xff]  ;;  %v171_v8 = vld [vmem:[%s751_s4 + $0x80] sm:$0xff] }
  0x28   : > { %168 = vst [vmem:[%s139_s5 + $0x30] sm:$0xff] %v167_v6  ;;  %170 = vst [vmem:[%s139_s5 + $0x38] sm:$0xff] %v169_v7  ;;  %v173_v9 = vld [vmem:[%s751_s4 + $0x88] sm:$0xff]  ;;  %v175_v10 = vld [vmem:[%s751_s4 + $0x90] sm:$0xff] }
  0x29   : > { %172 = vst [vmem:[%s139_s5 + $0x40] sm:$0xff] %v171_v8  ;;  %v177_v11 = vld [vmem:[%s751_s4 + $0x98] sm:$0xff]  ;;  %174 = vst [vmem:[%s139_s5 + $0x48] sm:$0xff] %v173_v9  ;;  %v179_v12 = vld [vmem:[%s751_s4 + $0xc0] sm:$0xff] }
  0x2a   : > { %176 = vst [vmem:[%s139_s5 + $0x50] sm:$0xff] %v175_v10  ;;  %178 = vst [vmem:[%s139_s5 + $0x58] sm:$0xff] %v177_v11  ;;  %v181_v13 = vld [vmem:[%s751_s4 + $0xc8] sm:$0xff]  ;;  %v183_v14 = vld [vmem:[%s751_s4 + $0xd0] sm:$0xff] }
  0x2b   : > { %180 = vst [vmem:[%s139_s5 + $0x60] sm:$0xff] %v179_v12  ;;  %182 = vst [vmem:[%s139_s5 + $0x68] sm:$0xff] %v181_v13  ;;  %v185_v15 = vld [vmem:[%s751_s4 + $0xd8] sm:$0xff] }
  0x2c   : > { %184 = vst [vmem:[%s139_s5 + $0x70] sm:$0xff] %v183_v14  ;;  %186 = vst [vmem:[%s139_s5 + $0x78] sm:$0xff] %v185_v15 }
  0x2d PF: > { %195 = sbr.rel (%p725_p7) target bundleno = 265 (0x109), region = 47 }
  0x32   : > { %643 = dma.done.wait (%p729_p8), [#allocation3], 32  }
  0x33   : > { %645 = vsyncadd (%p729_p8), [#allocation3], 4294967264  ;;  %s202_s6 = sand.u32 1, %s648_s9   ;;  %v667_v16 = vmov 0.0   ;;  %v238_v33 = vld [vmem:[#allocation2] sm:$0x3]  ;;  %v410_v36 = vlaneseq }
  0x34   : > { %s535_s7 = sshll.u32 %s202_s6, 7  ;;  %323 = vmatprep.mubr.f32.mxu0 %v667_v16  ;;  %394 = vmatprep.mubr.f32.mxu1 %v667_v16  ;;  %vm255_vm0 = vcmask 261120   ;;  %s536_s9 = sshll.u32 %s656_s11, 2  ;;  %v668_v34 = vmov 1983009808  }
  0x35   : > { %s204_s8 = scalar_lea.vmem [#allocation4], %s535_s7  ;;  %v408_v35 = vunpack.c.l.s4 %v668_v34  ;;  %p231_p3 = scmp.lt.s32.totalorder %s536_s9, 7  ;;  %v411_v38 = vshrl.u32 %v410_v36, 7 }
  0x36   : > { %v252_v17 = vld [vmem:[%s204_s8 + $0x68] sm:$0xff]  ;;  %v254_v18 = vld [vmem:[%s204_s8 + $0x78] sm:$0xff]  ;;  %v251_v19 = vld [vmem:[%s204_s8 + $0x60] sm:$0xff] }
  0x37   : > { %283 = vmatprep.subr.mxu0 %v252_v17  ;;  %354 = vmatprep.subr.mxu1 %v254_v18  ;;  %v253_v20 = vld [vmem:[%s204_s8 + $0x70] sm:$0xff]  ;;  %v248_v21 = vld [vmem:[%s204_s8 + $0x48] sm:$0xff]  ;;  %v250_v22 = vld [vmem:[%s204_s8 + $0x58] sm:$0xff]  ;;  %v409_v37 = vunpack.c.0.s8 %v408_v35  ;;  %s808_s9 = smov (!%p231_p3, %s536_s9), 7 }
  0x38   : > { %284 = vmatpush1.msra.mxu0 %v251_v19  ;;  %355 = vmatpush1.msra.mxu1 %v253_v20  ;;  %v247_v23 = vld [vmem:[%s204_s8 + $0x40] sm:$0xff]  ;;  %v249_v24 = vld [vmem:[%s204_s8 + $0x50] sm:$0xff]  ;;  %v244_v25 = vld [vmem:[%s204_s8 + $0x28] sm:$0xff]  ;;  %s537_s14 = sshll.u32 %s808_s9, 1 }
  0x39   : > { %285 = vmatprep.subr.mxu0 %v248_v21  ;;  %356 = vmatprep.subr.mxu1 %v250_v22  ;;  %v246_v26 = vld [vmem:[%s204_s8 + $0x38] sm:$0xff]  ;;  %v243_v27 = vld [vmem:[%s204_s8 + $0x20] sm:$0xff]  ;;  %v245_v28 = vld [vmem:[%s204_s8 + $0x30] sm:$0xff]  ;;  %v412_v41 = vsub.s32 %v409_v37, %v411_v38  ;;  %s236_s11 = scalar_lea.vmem %s797_s2, %s537_s14 }
  0x3a   : > { %286 = vmatpush1.msra.mxu0 %v247_v23  ;;  %357 = vmatpush1.msra.mxu1 %v249_v24  ;;  %v240_v29 = vld [vmem:[%s204_s8 + $0x8] sm:$0xff]  ;;  %v242_v30 = vld [vmem:[%s204_s8 + $0x18] sm:$0xff]  ;;  %v239_v31 = vld [vmem:[%s204_s8] sm:$0xff] }
  0x3b   : > { %287 = vmatprep.subr.mxu0 %v244_v25  ;;  %358 = vmatprep.subr.mxu1 %v246_v26  ;;  %v241_v32 = vld [vmem:[%s204_s8 + $0x10] sm:$0xff] }
  0x3c   : > { %288 = vmatpush1.msra.mxu0 %v243_v27  ;;  %359 = vmatpush1.msra.mxu1 %v245_v28 }
  0x3d   : > { %289 = vmatprep.subr.mxu0 %v240_v29  ;;  %360 = vmatprep.subr.mxu1 %v242_v30 }
  0x3e   : > { %290 = vmatpush1.msra.mxu0 %v239_v31  ;;  %361 = vmatpush1.msra.mxu1 %v241_v32 }
  0x3f   : > { %538 = vmatmul.mubr.msk.f32.vlgmr.msra.gmra.mxu0 %vm255_vm0, %v238_v33  ;;  %539 = vmatmul.mubr.msk.f32.vlgmr.msra.gmra.mxu1 %vm255_vm0, %v238_v33 }
  0xff   : > { %v325_v39 = vpop.f32.mrf.mxu0  ;;  %v396_v40 = vpop.f32.mrf.mxu1 }
 0x101   : > { %v327_v42 = vpop.f32.mrf.mxu0  ;;  %v398_v43 = vpop.f32.mrf.mxu1 }
 0x102   : > { %v405_v44 = vcombine.low %v325_v39, %v327_v42  ;;  %v406_v45 = vcombine.low %v396_v40, %v398_v43 }
 0x104   : > { %v413_v46 = vrot.slane %v405_v44, %v412_v41  ;;  %v420_v47 = vrot.slane %v406_v45, %v412_v41 }
 0x106   : > { %v421_v48 = vcombine.low %v413_v46, %v420_v47 }
 0x108   : > { %423 = vst [vmem:[%s236_s11] sm:$0xff] %v421_v48 }
 0x109 PF: > { %s13_s13 = sadd.s32 1, %s664_s13   ;;  %s801_s9 = smov %s652_s10 }
 0x10a   : > { %p10_p7 = scmp.ge.s32.totalorder %s13_s13, 4   ;;  %s802_s10 = smov %s734_s21 }
 0x10b   : > { %s803_s11 = smov %s660_s12  ;;  %s804_s12 = smov %s806_s15 }
 0x10c   :  { %12 = sbr.rel (!%p10_p7) target bundleno = 3 (0x3), region = 92 }
 0x111   :  { %454 = vsyncpa [#allocation3], 1 }
 0x112   :  { %456 = vsyncpa [#allocation3 + $0x1], 1 }

// kernel: generator_forward.12
= control target key start
LH: loop header
LB: loop body
LE: loop exit
PB: predicated region body
PF: predicated region fallthrough
CT: control target
= control target key end

     0   :  { %v301_v3 = vmov 0.0   ;;  %vm79_vm0 = vcmask 523264   ;;  %s505_s3 = inlined_call_operand.vmem [shape: f32[64,512], index: 3, kind: input, shape index: {}]   ;;  %s506_s0 = inlined_call_operand.vmem [shape: f32[32,64], index: 0, kind: input, shape index: {}]   ;;  %s507_s1 = inlined_call_operand.vmem [shape: f32[1,64], index: 1, kind: input, shape index: {}]   ;;  %s508_s2 = inlined_call_operand.vmem [shape: f32[1,64], index: 2, kind: input, shape index: {}]   ;;  %s509_s4 = inlined_call_operand.vmem [shape: f32[32,512], index: 4, kind: output, shape index: {}]  }
   0x1   :  { %v76_v0 = vld [vmem:[%s505_s3 + $0xe8] sm:$0xff]  ;;  %v78_v1 = vld [vmem:[%s505_s3 + $0xf8] sm:$0xff]  ;;  %v75_v2 = vld [vmem:[%s505_s3 + $0xe0] sm:$0xff]  ;;  %156 = vmatprep.mubr.f32.mxu0 %v301_v3  ;;  %245 = vmatprep.mubr.f32.mxu1 %v301_v3 }
   0x2   :  { %108 = vmatprep.subr.mxu0 %v76_v0  ;;  %197 = vmatprep.subr.mxu1 %v78_v1  ;;  %v77_v4 = vld [vmem:[%s505_s3 + $0xf0] sm:$0xff]  ;;  %v72_v5 = vld [vmem:[%s505_s3 + $0xc8] sm:$0xff]  ;;  %v74_v6 = vld [vmem:[%s505_s3 + $0xd8] sm:$0xff] }
   0x3   :  { %109 = vmatpush1.msra.mxu0 %v75_v2  ;;  %198 = vmatpush1.msra.mxu1 %v77_v4  ;;  %v71_v7 = vld [vmem:[%s505_s3 + $0xc0] sm:$0xff]  ;;  %v73_v8 = vld [vmem:[%s505_s3 + $0xd0] sm:$0xff]  ;;  %v68_v9 = vld [vmem:[%s505_s3 + $0xa8] sm:$0xff] }
   0x4   :  { %110 = vmatprep.subr.mxu0 %v72_v5  ;;  %199 = vmatprep.subr.mxu1 %v74_v6  ;;  %v70_v10 = vld [vmem:[%s505_s3 + $0xb8] sm:$0xff]  ;;  %v67_v11 = vld [vmem:[%s505_s3 + $0xa0] sm:$0xff]  ;;  %v69_v12 = vld [vmem:[%s505_s3 + $0xb0] sm:$0xff] }
   0x5   :  { %111 = vmatpush1.msra.mxu0 %v71_v7  ;;  %200 = vmatpush1.msra.mxu1 %v73_v8  ;;  %v64_v13 = vld [vmem:[%s505_s3 + $0x88] sm:$0xff]  ;;  %v66_v14 = vld [vmem:[%s505_s3 + $0x98] sm:$0xff]  ;;  %v63_v15 = vld [vmem:[%s505_s3 + $0x80] sm:$0xff] }
   0x6   :  { %112 = vmatprep.subr.mxu0 %v68_v9  ;;  %201 = vmatprep.subr.mxu1 %v70_v10  ;;  %v65_v16 = vld [vmem:[%s505_s3 + $0x90] sm:$0xff]  ;;  %v60_v17 = vld [vmem:[%s505_s3 + $0x68] sm:$0xff]  ;;  %v62_v18 = vld [vmem:[%s505_s3 + $0x78] sm:$0xff] }
   0x7   :  { %113 = vmatpush1.msra.mxu0 %v67_v11  ;;  %202 = vmatpush1.msra.mxu1 %v69_v12  ;;  %v59_v19 = vld [vmem:[%s505_s3 + $0x60] sm:$0xff]  ;;  %v61_v20 = vld [vmem:[%s505_s3 + $0x70] sm:$0xff]  ;;  %v56_v21 = vld [vmem:[%s505_s3 + $0x48] sm:$0xff] }
   0x8   :  { %114 = vmatprep.subr.mxu0 %v64_v13  ;;  %203 = vmatprep.subr.mxu1 %v66_v14  ;;  %v58_v22 = vld [vmem:[%s505_s3 + $0x58] sm:$0xff]  ;;  %v55_v23 = vld [vmem:[%s505_s3 + $0x40] sm:$0xff]  ;;  %v57_v24 = vld [vmem:[%s505_s3 + $0x50] sm:$0xff] }
   0x9   :  { %115 = vmatpush1.msra.mxu0 %v63_v15  ;;  %204 = vmatpush1.msra.mxu1 %v65_v16  ;;  %v52_v25 = vld [vmem:[%s505_s3 + $0x28] sm:$0xff]  ;;  %v54_v26 = vld [vmem:[%s505_s3 + $0x38] sm:$0xff]  ;;  %v51_v27 = vld [vmem:[%s505_s3 + $0x20] sm:$0xff] }
   0xa   :  { %116 = vmatprep.subr.mxu0 %v60_v17  ;;  %205 = vmatprep.subr.mxu1 %v62_v18  ;;  %v53_v28 = vld [vmem:[%s505_s3 + $0x30] sm:$0xff]  ;;  %v17_v29 = vld [vmem:[%s506_s0] sm:$0xff]  ;;  %v18_v32 = vld [vmem:[%s506_s0 + $0x8] sm:$0xff] }
   0xb   :  { %117 = vmatpush1.msra.mxu0 %v59_v19  ;;  %206 = vmatpush1.msra.mxu1 %v61_v20  ;;  %v290_v30 = vld [vmem:[%s507_s1] ss:$0 sm:$0xff]  ;;  %v48_v33 = vld [vmem:[%s505_s3 + $0x8] sm:$0xff]  ;;  %v50_v34 = vld [vmem:[%s505_s3 + $0x18] sm:$0xff] }
   0xc   :  { %118 = vmatprep.subr.mxu0 %v56_v21  ;;  %207 = vmatprep.subr.mxu1 %v58_v22  ;;  %v291_v31 = vld [vmem:[%s508_s2] ss:$0 sm:$0xff]  ;;  %v28_v35 = vmul.f32 %v290_v30, %v17_v29  ;;  %v29_v36 = vmul.f32 %v290_v30, %v18_v32  ;;  %v19_v37 = vld [vmem:[%s506_s0 + $0x10] sm:$0xff]  ;;  %v20_v43 = vld [vmem:[%s506_s0 + $0x18] sm:$0xff] }
   0xd   :  { %119 = vmatpush1.msra.mxu0 %v55_v23  ;;  %208 = vmatpush1.msra.mxu1 %v57_v24  ;;  %v47_v38 = vld [vmem:[%s505_s3] sm:$0xff]  ;;  %v49_v39 = vld [vmem:[%s505_s3 + $0x10] sm:$0xff]  ;;  %v30_v42 = vmul.f32 %v290_v30, %v19_v37  ;;  %v31_v47 = vmul.f32 %v290_v30, %v20_v43 }
   0xe   :  { %120 = vmatprep.subr.mxu0 %v52_v25  ;;  %209 = vmatprep.subr.mxu1 %v54_v26  ;;  %v39_v40 = vadd.f32 %v291_v31, %v28_v35  ;;  %v40_v41 = vadd.f32 %v291_v31, %v29_v36 }
   0xf   :  { %121 = vmatpush1.msra.mxu0 %v51_v27  ;;  %210 = vmatpush1.msra.mxu1 %v53_v28  ;;  %v41_v46 = vadd.f32 %v291_v31, %v30_v42  ;;  %v42_v49 = vadd.f32 %v291_v31, %v31_v47 }
  0x10   :  { %122 = vmatprep.subr.mxu0 %v48_v33  ;;  %211 = vmatprep.subr.mxu1 %v50_v34  ;;  %v43_v44 = vmax.f32 %v39_v40, 0.0  ;;  %v44_v45 = vmax.f32 %v40_v41, 0.0 }
  0x11   :  { %123 = vmatpush1.msra.mxu0 %v47_v38  ;;  %212 = vmatpush1.msra.mxu1 %v49_v39  ;;  %v45_v48 = vmax.f32 %v41_v46, 0.0  ;;  %v46_v50 = vmax.f32 %v42_v49, 0.0 }
  0x12   :  { %292 = vmatmul.mubr.msk.f32.vlgmr.msra.gmra.mxu0 %vm79_vm0, %v43_v44  ;;  %296 = vmatmul.mubr.msk.f32.vlgmr.msra.gmra.mxu1 %vm79_vm0, %v43_v44 }
  0x13   :  { %162 = vmatprep.mubr.f32.mxu0 %v301_v3  ;;  %251 = vmatprep.mubr.f32.mxu1 %v301_v3 }
  0x16   :  { %293 = vmatmul.mubr.msk.f32.gmra.mxu0 %vm79_vm0, %v44_v45  ;;  %297 = vmatmul.mubr.msk.f32.gmra.mxu1 %vm79_vm0, %v44_v45 }
  0x17   :  { %168 = vmatprep.mubr.f32.mxu0 %v301_v3  ;;  %257 = vmatprep.mubr.f32.mxu1 %v301_v3 }
  0x1a   :  { %294 = vmatmul.mubr.msk.f32.gmra.mxu0 %vm79_vm0, %v45_v48  ;;  %298 = vmatmul.mubr.msk.f32.gmra.mxu1 %vm79_vm0, %v45_v48 }
  0x1b   :  { %174 = vmatprep.mubr.f32.mxu0 %v301_v3  ;;  %263 = vmatprep.mubr.f32.mxu1 %v301_v3 }
  0x1e   :  { %295 = vmatmul.mubr.msk.f32.gmra.mxu0 %vm79_vm0, %v46_v50  ;;  %299 = vmatmul.mubr.msk.f32.gmra.mxu1 %vm79_vm0, %v46_v50 }
  0xd2   :  { %v158_v51 = vpop.f32.mrf.mxu0  ;;  %v247_v52 = vpop.f32.mrf.mxu1 }
  0xd3   :  { %270 = vst [vmem:[%s509_s4] sm:$0xff] %v158_v51  ;;  %272 = vst [vmem:[%s509_s4 + $0x10] sm:$0xff] %v247_v52 }
  0xd4   :  { %v160_v53 = vpop.f32.mrf.mxu0  ;;  %v249_v54 = vpop.f32.mrf.mxu1 }
  0xd5   :  { %271 = vst [vmem:[%s509_s4 + $0x8] sm:$0xff] %v160_v53  ;;  %273 = vst [vmem:[%s509_s4 + $0x18] sm:$0xff] %v249_v54 }
  0xd6   :  { %v164_v55 = vpop.f32.mrf.mxu0  ;;  %v253_v56 = vpop.f32.mrf.mxu1 }
  0xd7   :  { %274 = vst [vmem:[%s509_s4 + $0x20] sm:$0xff] %v164_v55  ;;  %276 = vst [vmem:[%s509_s4 + $0x30] sm:$0xff] %v253_v56 }
  0xd8   :  { %v166_v57 = vpop.f32.mrf.mxu0  ;;  %v255_v58 = vpop.f32.mrf.mxu1 }
  0xd9   :  { %275 = vst [vmem:[%s509_s4 + $0x28] sm:$0xff] %v166_v57  ;;  %277 = vst [vmem:[%s509_s4 + $0x38] sm:$0xff] %v255_v58 }
  0xda   :  { %v170_v59 = vpop.f32.mrf.mxu0  ;;  %v259_v60 = vpop.f32.mrf.mxu1 }
  0xdb   :  { %278 = vst [vmem:[%s509_s4 + $0x40] sm:$0xff] %v170_v59  ;;  %280 = vst [vmem:[%s509_s4 + $0x50] sm:$0xff] %v259_v60 }
  0xdc   :  { %v172_v61 = vpop.f32.mrf.mxu0  ;;  %v261_v62 = vpop.f32.mrf.mxu1 }
  0xdd   :  { %279 = vst [vmem:[%s509_s4 + $0x48] sm:$0xff] %v172_v61  ;;  %281 = vst [vmem:[%s509_s4 + $0x58] sm:$0xff] %v261_v62 }
  0xde   :  { %v176_v63 = vpop.f32.mrf.mxu0  ;;  %v265_v0 = vpop.f32.mrf.mxu1 }
  0xdf   :  { %282 = vst [vmem:[%s509_s4 + $0x60] sm:$0xff] %v176_v63  ;;  %284 = vst [vmem:[%s509_s4 + $0x70] sm:$0xff] %v265_v0 }
  0xe0   :  { %v178_v1 = vpop.f32.mrf.mxu0  ;;  %v267_v2 = vpop.f32.mrf.mxu1 }
  0xe1   :  { %283 = vst [vmem:[%s509_s4 + $0x68] sm:$0xff] %v178_v1  ;;  %285 = vst [vmem:[%s509_s4 + $0x78] sm:$0xff] %v267_v2 }

// kernel: generator_forward.14
= control target key start
LH: loop header
LB: loop body
LE: loop exit
PB: predicated region body
PF: predicated region fallthrough
CT: control target
= control target key end

     0   :  { %v376_v3 = vmov 0.0   ;;  %vm103_vm0 = vcmask 261120   ;;  %s644_s3 = inlined_call_operand.vmem [shape: f32[32,256], index: 3, kind: input, shape index: {}]   ;;  %s645_s0 = inlined_call_operand.vmem [shape: f32[128,32], index: 0, kind: input, shape index: {}]   ;;  %s646_s1 = inlined_call_operand.vmem [shape: f32[1,32], index: 1, kind: input, shape index: {}]   ;;  %s647_s2 = inlined_call_operand.vmem [shape: f32[1,32], index: 2, kind: input, shape index: {}]   ;;  %s648_s4 = inlined_call_operand.vmem [shape: f32[128,256], index: 4, kind: output, shape index: {}]  }
   0x1   :  { %v102_v0 = vld [vmem:[%s644_s3 + $0x38] sm:$0xff]  ;;  %v101_v1 = vld [vmem:[%s644_s3 + $0x30] sm:$0xff]  ;;  %v100_v2 = vld [vmem:[%s644_s3 + $0x28] sm:$0xff]  ;;  %216 = vmatprep.mubr.f32.mxu0 %v376_v3  ;;  %264 = vmatprep.mubr.f32.mxu1 %v376_v3 }
   0x2   :  { %176 = vmatprep.subr.mxu0 %v102_v0  ;;  %367 = vmatprep.subr.mxu1 %v102_v0  ;;  %v99_v4 = vld [vmem:[%s644_s3 + $0x20] sm:$0xff]  ;;  %v98_v5 = vld [vmem:[%s644_s3 + $0x18] sm:$0xff]  ;;  %v97_v6 = vld [vmem:[%s644_s3 + $0x10] sm:$0xff] }
   0x3   :  { %177 = vmatpush1.msra.mxu0 %v101_v1  ;;  %371 = vmatpush1.msra.mxu1 %v101_v1  ;;  %v96_v7 = vld [vmem:[%s644_s3 + $0x8] sm:$0xff]  ;;  %v17_v8 = vld [vmem:[%s645_s0] sm:$0xff]  ;;  %v19_v16 = vld [vmem:[%s645_s0 + $0x10] sm:$0xff] }
   0x4   :  { %178 = vmatprep.subr.mxu0 %v100_v2  ;;  %368 = vmatprep.subr.mxu1 %v100_v2  ;;  %v431_v9 = vld [vmem:[%s646_s1] ss:$0 sm:$0xff]  ;;  %v18_v14 = vld [vmem:[%s645_s0 + $0x8] sm:$0xff]  ;;  %v27_v21 = vld [vmem:[%s645_s0 + $0x50] sm:$0xff] }
   0x5   :  { %v436_v10 = vld [vmem:[%s647_s2] ss:$0 sm:$0xff]  ;;  %179 = vmatpush1.msra.mxu0 %v99_v4  ;;  %372 = vmatpush1.msra.mxu1 %v99_v4  ;;  %v40_v12 = vmul.f32 %v431_v9, %v17_v8  ;;  %v26_v15 = vld [vmem:[%s645_s0 + $0x48] sm:$0xff]  ;;  %v41_v18 = vmul.f32 %v431_v9, %v18_v14  ;;  %v42_v20 = vmul.f32 %v431_v9, %v19_v16  ;;  %v20_v25 = vld [vmem:[%s645_s0 + $0x18] sm:$0xff] }
   0x6   :  { %v25_v11 = vld [vmem:[%s645_s0 + $0x40] sm:$0xff]  ;;  %180 = vmatprep.subr.mxu0 %v98_v5  ;;  %369 = vmatprep.subr.mxu1 %v98_v5  ;;  %v49_v19 = vmul.f32 %v431_v9, %v26_v15  ;;  %v50_v24 = vmul.f32 %v431_v9, %v27_v21  ;;  %v28_v28 = vld [vmem:[%s645_s0 + $0x58] sm:$0xff]  ;;  %v43_v32 = vmul.f32 %v431_v9, %v20_v25  ;;  %v22_v45 = vld [vmem:[%s645_s0 + $0x28] sm:$0xff] }
   0x7   :  { %v48_v13 = vmul.f32 %v431_v9, %v25_v11  ;;  %v95_v17 = vld [vmem:[%s644_s3] sm:$0xff]  ;;  %181 = vmatpush1.msra.mxu0 %v97_v6  ;;  %373 = vmatpush1.msra.mxu1 %v97_v6  ;;  %v63_v22 = vadd.f32 %v436_v10, %v40_v12  ;;  %v64_v26 = vadd.f32 %v436_v10, %v41_v18  ;;  %v30_v46 = vld [vmem:[%s645_s0 + $0x68] sm:$0xff]  ;;  %v23_v53 = vld [vmem:[%s645_s0 + $0x30] sm:$0xff] }
   0x8   :  { %182 = vmatprep.subr.mxu0 %v96_v7  ;;  %370 = vmatprep.subr.mxu1 %v96_v7  ;;  %v72_v27 = vadd.f32 %v436_v10, %v49_v19  ;;  %v65_v31 = vadd.f32 %v436_v10, %v42_v20  ;;  %v73_v35 = vadd.f32 %v436_v10, %v50_v24  ;;  %v21_v37 = vld [vmem:[%s645_s0 + $0x20] sm:$0xff]  ;;  %v31_v54 = vld [vmem:[%s645_s0 + $0x70] sm:$0xff]  ;;  %v24_v61 = vld [vmem:[%s645_s0 + $0x38] sm:$0xff] }
   0x9   :  { %v71_v23 = vadd.f32 %v436_v10, %v48_v13  ;;  %183 = vmatpush1.msra.mxu0 %v95_v17  ;;  %374 = vmatpush1.msra.mxu1 %v95_v17  ;;  %v79_v29 = vmax.f32 %v63_v22, 0.0  ;;  %v80_v33 = vmax.f32 %v64_v26, 0.0  ;;  %v51_v36 = vmul.f32 %v431_v9, %v28_v28  ;;  %v29_v38 = vld [vmem:[%s645_s0 + $0x60] sm:$0xff]  ;;  %v32_v62 = vld [vmem:[%s645_s0 + $0x78] sm:$0xff] }
   0xa   :  { %v88_v34 = vmax.f32 %v72_v27, 0.0  ;;  %v81_v39 = vmax.f32 %v65_v31, 0.0  ;;  %v66_v40 = vadd.f32 %v436_v10, %v43_v32  ;;  %v89_v41 = vmax.f32 %v73_v35, 0.0 }
   0xb   :  { %v87_v30 = vmax.f32 %v71_v23, 0.0  ;;  %351 = vmatmul.mubr.msk.f32.vlgmr.msra.gmra.mxu0 %vm103_vm0, %v79_v29  ;;  %v74_v42 = vadd.f32 %v436_v10, %v51_v36  ;;  %v44_v43 = vmul.f32 %v431_v9, %v21_v37  ;;  %v52_v44 = vmul.f32 %v431_v9, %v29_v38 }
   0xc   :  { %222 = vmatprep.mubr.f32.mxu0 %v376_v3  ;;  %v45_v47 = vmul.f32 %v431_v9, %v22_v45  ;;  %v53_v48 = vmul.f32 %v431_v9, %v30_v46  ;;  %v82_v49 = vmax.f32 %v66_v40, 0.0  ;;  %v46_v56 = vmul.f32 %v431_v9, %v23_v53 }
   0xd   :  { %359 = vmatmul.mubr.msk.f32.vlgmr.msra.gmra.mxu1 %vm103_vm0, %v87_v30  ;;  %v90_v50 = vmax.f32 %v74_v42, 0.0  ;;  %v67_v51 = vadd.f32 %v436_v10, %v44_v43  ;;  %v75_v52 = vadd.f32 %v436_v10, %v52_v44  ;;  %v54_v60 = vmul.f32 %v431_v9, %v31_v54 }
   0xe   :  { %270 = vmatprep.mubr.f32.mxu1 %v376_v3  ;;  %v68_v55 = vadd.f32 %v436_v10, %v45_v47  ;;  %v76_v59 = vadd.f32 %v436_v10, %v53_v48  ;;  %v69_v63 = vadd.f32 %v436_v10, %v46_v56  ;;  %v47_v0 = vmul.f32 %v431_v9, %v24_v61 }
   0xf   :  { %352 = vmatmul.mubr.msk.f32.gmra.mxu0 %vm103_vm0, %v80_v33  ;;  %v83_v57 = vmax.f32 %v67_v51, 0.0  ;;  %v91_v58 = vmax.f32 %v75_v52, 0.0  ;;  %v77_v4 = vadd.f32 %v436_v10, %v54_v60  ;;  %v55_v5 = vmul.f32 %v431_v9, %v32_v62 }
  0x10   :  { %228 = vmatprep.mubr.f32.mxu0 %v376_v3  ;;  %v84_v1 = vmax.f32 %v68_v55, 0.0  ;;  %v92_v2 = vmax.f32 %v76_v59, 0.0  ;;  %v85_v6 = vmax.f32 %v69_v63, 0.0  ;;  %v70_v8 = vadd.f32 %v436_v10, %v47_v0 }
  0x11   :  { %360 = vmatmul.mubr.msk.f32.gmra.mxu1 %vm103_vm0, %v88_v34  ;;  %v93_v7 = vmax.f32 %v77_v4, 0.0  ;;  %v78_v11 = vadd.f32 %v436_v10, %v55_v5 }
  0x12   :  { %276 = vmatprep.mubr.f32.mxu1 %v376_v3  ;;  %v86_v9 = vmax.f32 %v70_v8, 0.0 }
  0x13   :  { %353 = vmatmul.mubr.msk.f32.gmra.mxu0 %vm103_vm0, %v81_v39  ;;  %v94_v12 = vmax.f32 %v78_v11, 0.0 }
  0x14   :  { %234 = vmatprep.mubr.f32.mxu0 %v376_v3 }
  0x15   :  { %361 = vmatmul.mubr.msk.f32.gmra.mxu1 %vm103_vm0, %v89_v41 }
  0x16   :  { %282 = vmatprep.mubr.f32.mxu1 %v376_v3 }
  0x17   :  { %354 = vmatmul.mubr.msk.f32.gmra.mxu0 %vm103_vm0, %v82_v49 }
  0x18   :  { %240 = vmatprep.mubr.f32.mxu0 %v376_v3 }
  0x19   :  { %362 = vmatmul.mubr.msk.f32.gmra.mxu1 %vm103_vm0, %v90_v50 }
  0x1a   :  { %288 = vmatprep.mubr.f32.mxu1 %v376_v3 }
  0x1b   :  { %355 = vmatmul.mubr.msk.f32.gmra.mxu0 %vm103_vm0, %v83_v57 }
  0x1c   :  { %246 = vmatprep.mubr.f32.mxu0 %v376_v3 }
  0x1d   :  { %363 = vmatmul.mubr.msk.f32.gmra.mxu1 %vm103_vm0, %v91_v58 }
  0x1e   :  { %294 = vmatprep.mubr.f32.mxu1 %v376_v3 }
  0x1f   :  { %356 = vmatmul.mubr.msk.f32.gmra.mxu0 %vm103_vm0, %v84_v1 }
  0x20   :  { %252 = vmatprep.mubr.f32.mxu0 %v376_v3 }
  0x21   :  { %364 = vmatmul.mubr.msk.f32.gmra.mxu1 %vm103_vm0, %v92_v2 }
  0x22   :  { %300 = vmatprep.mubr.f32.mxu1 %v376_v3 }
  0x23   :  { %357 = vmatmul.mubr.msk.f32.gmra.mxu0 %vm103_vm0, %v85_v6 }
  0x24   :  { %258 = vmatprep.mubr.f32.mxu0 %v376_v3 }
  0x25   :  { %365 = vmatmul.mubr.msk.f32.gmra.mxu1 %vm103_vm0, %v93_v7 }
  0x26   :  { %306 = vmatprep.mubr.f32.mxu1 %v376_v3 }
  0x27   :  { %358 = vmatmul.mubr.msk.f32.gmra.mxu0 %vm103_vm0, %v86_v9 }
  0x29   :  { %366 = vmatmul.mubr.msk.f32.gmra.mxu1 %vm103_vm0, %v94_v12 }
  0xcb   :  { %v218_v13 = vpop.f32.mrf.mxu0 }
  0xcc   :  { %313 = vst [vmem:[%s648_s4] sm:$0xff] %v218_v13 }
  0xcd   :  { %v266_v10 = vpop.f32.mrf.mxu1  ;;  %v220_v14 = vpop.f32.mrf.mxu0 }
  0xce   :  { %329 = vst [vmem:[%s648_s4 + $0x80] sm:$0xff] %v266_v10  ;;  %314 = vst [vmem:[%s648_s4 + $0x8] sm:$0xff] %v220_v14 }
  0xcf   :  { %v268_v15 = vpop.f32.mrf.mxu1  ;;  %v224_v3 = vpop.f32.mrf.mxu0 }
  0xd0   :  { %330 = vst [vmem:[%s648_s4 + $0x88] sm:$0xff] %v268_v15  ;;  %315 = vst [vmem:[%s648_s4 + $0x10] sm:$0xff] %v224_v3 }
  0xd1   :  { %v272_v16 = vpop.f32.mrf.mxu1  ;;  %v226_v17 = vpop.f32.mrf.mxu0 }
  0xd2   :  { %331 = vst [vmem:[%s648_s4 + $0x90] sm:$0xff] %v272_v16  ;;  %316 = vst [vmem:[%s648_s4 + $0x18] sm:$0xff] %v226_v17 }
  0xd3   :  { %v274_v18 = vpop.f32.mrf.mxu1  ;;  %v230_v19 = vpop.f32.mrf.mxu0 }
  0xd4   :  { %332 = vst [vmem:[%s648_s4 + $0x98] sm:$0xff] %v274_v18  ;;  %317 = vst [vmem:[%s648_s4 + $0x20] sm:$0xff] %v230_v19 }
  0xd5   :  { %v278_v20 = vpop.f32.mrf.mxu1  ;;  %v232_v21 = vpop.f32.mrf.mxu0 }
  0xd6   :  { %333 = vst [vmem:[%s648_s4 + $0xa0] sm:$0xff] %v278_v20  ;;  %318 = vst [vmem:[%s648_s4 + $0x28] sm:$0xff] %v232_v21 }
  0xd7   :  { %v280_v22 = vpop.f32.mrf.mxu1  ;;  %v236_v23 = vpop.f32.mrf.mxu0 }
  0xd8   :  { %334 = vst [vmem:[%s648_s4 + $0xa8] sm:$0xff] %v280_v22  ;;  %319 = vst [vmem:[%s648_s4 + $0x30] sm:$0xff] %v236_v23 }
  0xd9   :  { %v284_v24 = vpop.f32.mrf.mxu1  ;;  %v238_v25 = vpop.f32.mrf.mxu0 }
  0xda   :  { %335 = vst [vmem:[%s648_s4 + $0xb0] sm:$0xff] %v284_v24  ;;  %320 = vst [vmem:[%s648_s4 + $0x38] sm:$0xff] %v238_v25 }
  0xdb   :  { %v286_v26 = vpop.f32.mrf.mxu1  ;;  %v242_v27 = vpop.f32.mrf.mxu0 }
  0xdc   :  { %336 = vst [vmem:[%s648_s4 + $0xb8] sm:$0xff] %v286_v26  ;;  %321 = vst [vmem:[%s648_s4 + $0x40] sm:$0xff] %v242_v27 }
  0xdd   :  { %v290_v28 = vpop.f32.mrf.mxu1  ;;  %v244_v29 = vpop.f32.mrf.mxu0 }
  0xde   :  { %337 = vst [vmem:[%s648_s4 + $0xc0] sm:$0xff] %v290_v28  ;;  %322 = vst [vmem:[%s648_s4 + $0x48] sm:$0xff] %v244_v29 }
  0xdf   :  { %v292_v30 = vpop.f32.mrf.mxu1  ;;  %v248_v31 = vpop.f32.mrf.mxu0 }
  0xe0   :  { %338 = vst [vmem:[%s648_s4 + $0xc8] sm:$0xff] %v292_v30  ;;  %323 = vst [vmem:[%s648_s4 + $0x50] sm:$0xff] %v248_v31 }
  0xe1   :  { %v296_v32 = vpop.f32.mrf.mxu1  ;;  %v250_v33 = vpop.f32.mrf.mxu0 }
  0xe2   :  { %339 = vst [vmem:[%s648_s4 + $0xd0] sm:$0xff] %v296_v32  ;;  %324 = vst [vmem:[%s648_s4 + $0x58] sm:$0xff] %v250_v33 }
  0xe3   :  { %v298_v34 = vpop.f32.mrf.mxu1  ;;  %v254_v35 = vpop.f32.mrf.mxu0 }
  0xe4   :  { %340 = vst [vmem:[%s648_s4 + $0xd8] sm:$0xff] %v298_v34  ;;  %325 = vst [vmem:[%s648_s4 + $0x60] sm:$0xff] %v254_v35 }
  0xe5   :  { %v302_v36 = vpop.f32.mrf.mxu1  ;;  %v256_v37 = vpop.f32.mrf.mxu0 }
  0xe6   :  { %341 = vst [vmem:[%s648_s4 + $0xe0] sm:$0xff] %v302_v36  ;;  %326 = vst [vmem:[%s648_s4 + $0x68] sm:$0xff] %v256_v37 }
  0xe7   :  { %v304_v38 = vpop.f32.mrf.mxu1  ;;  %v260_v39 = vpop.f32.mrf.mxu0 }
  0xe8   :  { %342 = vst [vmem:[%s648_s4 + $0xe8] sm:$0xff] %v304_v38  ;;  %327 = vst [vmem:[%s648_s4 + $0x70] sm:$0xff] %v260_v39 }
  0xe9   :  { %v308_v40 = vpop.f32.mrf.mxu1  ;;  %v262_v41 = vpop.f32.mrf.mxu0 }
  0xea   :  { %343 = vst [vmem:[%s648_s4 + $0xf0] sm:$0xff] %v308_v40  ;;  %328 = vst [vmem:[%s648_s4 + $0x78] sm:$0xff] %v262_v41 }
  0xeb   :  { %v310_v42 = vpop.f32.mrf.mxu1 }
  0xec   :  { %344 = vst [vmem:[%s648_s4 + $0xf8] sm:$0xff] %v310_v42 }

// kernel: generator_forward.13
= control target key start
LH: loop header
LB: loop body
LE: loop exit
PB: predicated region body
PF: predicated region fallthrough
CT: control target
= control target key end

     0   :  { %vm14_vm0 = vcmask 253952   ;;  %vm34_vm1 = vcmask 261120   ;;  %v140_v0 = vmov 0.0   ;;  %s258_s0 = inlined_call_operand.vmem [shape: f32[128,32], index: 0, kind: input, shape index: {}]   ;;  %s259_s1 = inlined_call_operand.vmem [shape: f32[1,32], index: 1, kind: output, shape index: {0}]   ;;  %s260_s2 = inlined_call_operand.vmem [shape: f32[1,32], index: 2, kind: output, shape index: {1}]  }
   0x1   :  { %15 = vst.msk [vmem:[%s259_s1] sm:$0x1] %vm14_vm0, %v140_v0  ;;  %v17_v1 = vld [vmem:[%s258_s0] sm:$0xff]  ;;  %v18_v2 = vld [vmem:[%s258_s0 + $0x8] sm:$0xff]  ;;  %v19_v3 = vld [vmem:[%s258_s0 + $0x10] sm:$0xff] }
   0x2   :  { %16 = vst.msk [vmem:[%s260_s2] sm:$0x1] %vm14_vm0, %v140_v0  ;;  %v35_v4 = vsel %vm34_vm1, %v17_v1, 0.0  ;;  %v36_v5 = vsel %vm34_vm1, %v18_v2, 0.0  ;;  %v38_v6 = vsel %vm34_vm1, %v19_v3, 0.0  ;;  %v20_v7 = vld [vmem:[%s258_s0 + $0x18] sm:$0xff]  ;;  %v76_v15 = vmul.f32 %v17_v1, %v17_v1 }
   0x3   :  { %v37_v8 = vadd.f32 %v36_v5, %v35_v4  ;;  %v40_v9 = vsel %vm34_vm1, %v20_v7, 0.0  ;;  %v21_v10 = vld [vmem:[%s258_s0 + $0x20] sm:$0xff]  ;;  %v22_v13 = vld [vmem:[%s258_s0 + $0x28] sm:$0xff]  ;;  %v77_v16 = vmul.f32 %v18_v2, %v18_v2  ;;  %v78_v17 = vmul.f32 %v19_v3, %v19_v3  ;;  %v23_v19 = vld [vmem:[%s258_s0 + $0x30] sm:$0xff] }
   0x4   :  { %v42_v12 = vsel %vm34_vm1, %v21_v10, 0.0  ;;  %v44_v18 = vsel %vm34_vm1, %v22_v13, 0.0  ;;  %v79_v21 = vmul.f32 %v20_v7, %v20_v7  ;;  %v46_v22 = vsel %vm34_vm1, %v23_v19, 0.0  ;;  %v24_v24 = vld [vmem:[%s258_s0 + $0x38] sm:$0xff]  ;;  %v25_v31 = vld [vmem:[%s258_s0 + $0x40] sm:$0xff]  ;;  %v26_v37 = vld [vmem:[%s258_s0 + $0x48] sm:$0xff] }
   0x5   :  { %v39_v11 = vadd.f32 %v38_v6, %v37_v8  ;;  %v80_v23 = vmul.f32 %v21_v10, %v21_v10  ;;  %v92_v26 = vsel %vm34_vm1, %v76_v15, 0.0  ;;  %v93_v27 = vsel %vm34_vm1, %v77_v16, 0.0  ;;  %v27_v43 = vld [vmem:[%s258_s0 + $0x50] sm:$0xff]  ;;  %v28_v49 = vld [vmem:[%s258_s0 + $0x58] sm:$0xff]  ;;  %v29_v55 = vld [vmem:[%s258_s0 + $0x60] sm:$0xff] }
   0x6   :  { %v95_v28 = vsel %vm34_vm1, %v78_v17, 0.0  ;;  %v48_v29 = vsel %vm34_vm1, %v24_v24, 0.0  ;;  %v94_v30 = vadd.f32 %v93_v27, %v92_v26  ;;  %v81_v33 = vmul.f32 %v22_v13, %v22_v13  ;;  %v30_v61 = vld [vmem:[%s258_s0 + $0x68] sm:$0xff]  ;;  %v31_v3 = vld [vmem:[%s258_s0 + $0x70] sm:$0xff] }
   0x7   :  { %v41_v14 = vadd.f32 %v40_v9, %v39_v11  ;;  %v97_v34 = vsel %vm34_vm1, %v79_v21, 0.0  ;;  %v50_v35 = vsel %vm34_vm1, %v25_v31, 0.0  ;;  %v82_v39 = vmul.f32 %v23_v19, %v23_v19  ;;  %v32_v9 = vld [vmem:[%s258_s0 + $0x78] sm:$0xff] }
   0x8   :  { %v96_v36 = vadd.f32 %v95_v28, %v94_v30  ;;  %v99_v40 = vsel %vm34_vm1, %v80_v23, 0.0  ;;  %v52_v41 = vsel %vm34_vm1, %v26_v37, 0.0  ;;  %v83_v45 = vmul.f32 %v24_v24, %v24_v24 }
   0x9   :  { %v43_v20 = vadd.f32 %v42_v12, %v41_v14  ;;  %v101_v46 = vsel %vm34_vm1, %v81_v33, 0.0  ;;  %v54_v47 = vsel %vm34_vm1, %v27_v43, 0.0  ;;  %v84_v51 = vmul.f32 %v25_v31, %v25_v31 }
   0xa   :  { %v98_v42 = vadd.f32 %v97_v34, %v96_v36  ;;  %v103_v52 = vsel %vm34_vm1, %v82_v39, 0.0  ;;  %v56_v53 = vsel %vm34_vm1, %v28_v49, 0.0  ;;  %v85_v57 = vmul.f32 %v26_v37, %v26_v37  ;;  %v33_v36 = vld [vmem:[%s259_s1] sm:$0x1] }
   0xb   :  { %v45_v25 = vadd.f32 %v44_v18, %v43_v20  ;;  %v105_v58 = vsel %vm34_vm1, %v83_v45, 0.0  ;;  %v58_v59 = vsel %vm34_vm1, %v29_v55, 0.0  ;;  %v86_v63 = vmul.f32 %v27_v43, %v27_v43 }
   0xc   :  { %v100_v48 = vadd.f32 %v99_v40, %v98_v42  ;;  %v107_v0 = vsel %vm34_vm1, %v84_v51, 0.0  ;;  %v60_v1 = vsel %vm34_vm1, %v30_v61, 0.0  ;;  %v87_v5 = vmul.f32 %v28_v49, %v28_v49 }
   0xd   :  { %v47_v32 = vadd.f32 %v46_v22, %v45_v25  ;;  %v109_v6 = vsel %vm34_vm1, %v85_v57, 0.0  ;;  %v62_v7 = vsel %vm34_vm1, %v31_v3, 0.0  ;;  %v88_v11 = vmul.f32 %v29_v55, %v29_v55 }
   0xe   :  { %v102_v54 = vadd.f32 %v101_v46, %v100_v48  ;;  %v111_v12 = vsel %vm34_vm1, %v86_v63, 0.0  ;;  %v64_v13 = vsel %vm34_vm1, %v32_v9, 0.0  ;;  %v89_v16 = vmul.f32 %v30_v61, %v30_v61 }
   0xf   :  { %v49_v38 = vadd.f32 %v48_v29, %v47_v32  ;;  %v113_v17 = vsel %vm34_vm1, %v87_v5, 0.0  ;;  %v90_v20 = vmul.f32 %v31_v3, %v31_v3  ;;  %v115_v21 = vsel %vm34_vm1, %v88_v11, 0.0 }
  0x10   :  { %v104_v60 = vadd.f32 %v103_v52, %v102_v54  ;;  %v91_v24 = vmul.f32 %v32_v9, %v32_v9  ;;  %v117_v25 = vsel %vm34_vm1, %v89_v16, 0.0 }
  0x11   :  { %v51_v44 = vadd.f32 %v50_v35, %v49_v38  ;;  %v119_v28 = vsel %vm34_vm1, %v90_v20, 0.0 }
  0x12   :  { %v106_v2 = vadd.f32 %v105_v58, %v104_v60  ;;  %v121_v31 = vsel %vm34_vm1, %v91_v24, 0.0 }
  0x13   :  { %v53_v50 = vadd.f32 %v52_v41, %v51_v44  ;;  %v75_v44 = vld [vmem:[%s260_s2] sm:$0x1] }
  0x14   :  { %v108_v8 = vadd.f32 %v107_v0, %v106_v2 }
  0x15   :  { %v55_v56 = vadd.f32 %v54_v47, %v53_v50 }
  0x16   :  { %v110_v14 = vadd.f32 %v109_v6, %v108_v8 }
  0x17   :  { %v57_v62 = vadd.f32 %v56_v53, %v55_v56 }
  0x18   :  { %v112_v18 = vadd.f32 %v111_v12, %v110_v14 }
  0x19   :  { %v59_v4 = vadd.f32 %v58_v59, %v57_v62 }
  0x1a   :  { %v114_v22 = vadd.f32 %v113_v17, %v112_v18 }
  0x1b   :  { %v61_v10 = vadd.f32 %v60_v1, %v59_v4 }
  0x1c   :  { %v116_v26 = vadd.f32 %v115_v21, %v114_v22 }
  0x1d   :  { %v63_v15 = vadd.f32 %v62_v7, %v61_v10 }
  0x1e   :  { %v118_v29 = vadd.f32 %v117_v25, %v116_v26 }
  0x1f   :  { %v65_v19 = vadd.f32 %v64_v13, %v63_v15 }
  0x20   :  { %v120_v32 = vadd.f32 %v119_v28, %v118_v29 }
  0x21   :  { %v66_v23 = vrot.slane %v65_v19, 4 }
  0x22   :  { %v122_v34 = vadd.f32 %v121_v31, %v120_v32 }
  0x23   :  { %v67_v27 = vadd.f32 %v66_v23, %v65_v19 }
  0x24   :  { %v123_v37 = vrot.slane %v122_v34, 4 }
  0x25   :  { %v68_v30 = vrot.slane %v67_v27, 2 }
  0x26   :  { %v124_v39 = vadd.f32 %v123_v37, %v122_v34 }
  0x27   :  { %v69_v33 = vadd.f32 %v68_v30, %v67_v27 }
  0x28   :  { %v125_v41 = vrot.slane %v124_v39, 2 }
  0x29   :  { %v70_v35 = vrot.slane %v69_v33, 1 }
  0x2a   :  { %v126_v42 = vadd.f32 %v125_v41, %v124_v39 }
  0x2b   :  { %v71_v38 = vadd.f32 %v70_v35, %v69_v33 }
  0x2c   :  { %v127_v43 = vrot.slane %v126_v42, 1 }
  0x2d   :  { %v72_v40 = vadd.f32 %v71_v38, %v33_v36 }
  0x2e   :  { %v128_v45 = vadd.f32 %v127_v43, %v126_v42 }
  0x2f   :  { %74 = vst.msk [vmem:[%s259_s1] sm:$0x1] %vm14_vm0, %v72_v40 }
  0x30   :  { %v129_v46 = vadd.f32 %v128_v45, %v75_v44 }
  0x32   :  { %130 = vst.msk [vmem:[%s260_s2] sm:$0x1] %vm14_vm0, %v129_v46 }

// kernel: generator_forward.15
= control target key start
LH: loop header
LB: loop body
LE: loop exit
PB: predicated region body
PF: predicated region fallthrough
CT: control target
= control target key end

     0   :  { %vm14_vm0 = vcmask 122880   ;;  %vm82_vm1 = vcmask 130048   ;;  %v428_v0 = vmov 0.0   ;;  %s1318_s0 = inlined_call_operand.vmem [shape: f32[512,16], index: 0, kind: input, shape index: {}]   ;;  %s1319_s1 = inlined_call_operand.vmem [shape: f32[1,16], index: 1, kind: output, shape index: {0}]   ;;  %s1320_s2 = inlined_call_operand.vmem [shape: f32[1,16], index: 2, kind: output, shape index: {1}]  }
   0x1   :  { %15 = vst.msk [vmem:[%s1319_s1] sm:$0x1] %vm14_vm0, %v428_v0  ;;  %16 = vst.msk [vmem:[%s1320_s2] sm:$0x1] %vm14_vm0, %v428_v0  ;;  %v455_v1 = vld [vmem:[%s1318_s0] sm:$0xff]  ;;  %v460_v2 = vld [vmem:[%s1318_s0 + $0x8] sm:$0xff] }
   0x2   :  { %v465_v3 = vld [vmem:[%s1318_s0 + $0x10] sm:$0xff]  ;;  %v83_v4 = vsel %vm82_vm1, %v455_v1, 0.0  ;;  %v84_v5 = vsel %vm82_vm1, %v460_v2, 0.0  ;;  %v476_v7 = vld [vmem:[%s1318_s0 + $0x18] sm:$0xff]  ;;  %v483_v10 = vld [vmem:[%s1318_s0 + $0x20] sm:$0xff] }
   0x3   :  { %v86_v6 = vsel %vm82_vm1, %v465_v3, 0.0  ;;  %v85_v8 = vadd.f32 %v84_v5, %v83_v4  ;;  %v88_v9 = vsel %vm82_vm1, %v476_v7, 0.0  ;;  %v90_v12 = vsel %vm82_vm1, %v483_v10, 0.0  ;;  %v490_v13 = vld [vmem:[%s1318_s0 + $0x28] sm:$0xff]  ;;  %v497_v16 = vld [vmem:[%s1318_s0 + $0x30] sm:$0xff]  ;;  %v502_v18 = vld [vmem:[%s1318_s0 + $0x38] sm:$0xff] }
   0x4   :  { %v92_v15 = vsel %vm82_vm1, %v490_v13, 0.0  ;;  %v507_v19 = vld [vmem:[%s1318_s0 + $0x40] sm:$0xff]  ;;  %v94_v20 = vsel %vm82_vm1, %v497_v16, 0.0  ;;  %v514_v21 = vld [vmem:[%s1318_s0 + $0x48] sm:$0xff]  ;;  %v519_v22 = vld [vmem:[%s1318_s0 + $0x50] sm:$0xff]  ;;  %v96_v25 = vsel %vm82_vm1, %v502_v18, 0.0 }
   0x5   :  { %v87_v11 = vadd.f32 %v86_v6, %v85_v8  ;;  %v524_v23 = vld [vmem:[%s1318_s0 + $0x58] sm:$0xff]  ;;  %v98_v26 = vsel %vm82_vm1, %v507_v19, 0.0  ;;  %v533_v27 = vld [vmem:[%s1318_s0 + $0x108] sm:$0xff]  ;;  %v538_v28 = vld [vmem:[%s1318_s0 + $0x110] sm:$0xff]  ;;  %v100_v30 = vsel %vm82_vm1, %v514_v21, 0.0  ;;  %v102_v31 = vsel %vm82_vm1, %v519_v22, 0.0 }
   0x6   :  { %v543_v29 = vld [vmem:[%s1318_s0 + $0x118] sm:$0xff]  ;;  %v551_v32 = vsel %vm82_vm1, %v524_v23, 0.0  ;;  %v556_v33 = vld [vmem:[%s1318_s0 + $0x120] sm:$0xff]  ;;  %v561_v34 = vld [vmem:[%s1318_s0 + $0x128] sm:$0xff]  ;;  %v570_v37 = vsel %vm82_vm1, %v533_v27, 0.0  ;;  %v574_v38 = vsel %vm82_vm1, %v538_v28, 0.0 }
   0x7   :  { %v89_v14 = vadd.f32 %v88_v9, %v87_v11  ;;  %v566_v35 = vld [vmem:[%s1318_s0 + $0x130] sm:$0xff]  ;;  %1339 = vst [vmem:[#allocation2_spill] sm:$0xff] %v570_v37  ;;  %1340 = vst [vmem:[#allocation3_spill] sm:$0xff] %v574_v38  ;;  %v578_v39 = vsel %vm82_vm1, %v543_v29, 0.0  ;;  %v583_v40 = vld [vmem:[%s1318_s0 + $0x138] sm:$0xff]  ;;  %v597_v43 = vsel %vm82_vm1, %v556_v33, 0.0  ;;  %v222_v37 = vmul.f32 %v465_v3, %v465_v3 }
   0x8   :  { %1341 = vst [vmem:[#allocation4_spill] sm:$0xff] %v578_v39  ;;  %v588_v41 = vld [vmem:[%s1318_s0 + $0x140] sm:$0xff]  ;;  %v593_v42 = vld [vmem:[%s1318_s0 + $0x148] sm:$0xff]  ;;  %1342 = vst [vmem:[#allocation5_spill] sm:$0xff] %v597_v43  ;;  %v601_v44 = vsel %vm82_vm1, %v561_v34, 0.0  ;;  %v605_v45 = vsel %vm82_vm1, %v566_v35, 0.0 }
   0x9   :  { %v91_v17 = vadd.f32 %v90_v12, %v89_v14  ;;  %1343 = vst [vmem:[#allocation6_spill] sm:$0xff] %v601_v44  ;;  %1344 = vst [vmem:[#allocation7_spill] sm:$0xff] %v605_v45  ;;  %v610_v46 = vld [vmem:[%s1318_s0 + $0x150] sm:$0xff]  ;;  %v615_v47 = vld [vmem:[%s1318_s0 + $0x158] sm:$0xff]  ;;  %v624_v50 = vsel %vm82_vm1, %v583_v40, 0.0  ;;  %v628_v51 = vsel %vm82_vm1, %v588_v41, 0.0 }
   0xa   :  { %v620_v48 = vld [vmem:[%s1318_s0 + $0x160] sm:$0xff]  ;;  %1345 = vst [vmem:[#allocation8_spill] sm:$0xff] %v624_v50  ;;  %1346 = vst [vmem:[#allocation9_spill] sm:$0xff] %v628_v51  ;;  %v632_v52 = vsel %vm82_vm1, %v593_v42, 0.0  ;;  %v637_v53 = vld [vmem:[%s1318_s0 + $0x168] sm:$0xff]  ;;  %v651_v56 = vsel %vm82_vm1, %v610_v46, 0.0 }
   0xb   :  { %v93_v24 = vadd.f32 %v92_v15, %v91_v17  ;;  %1347 = vst [vmem:[#allocation10_spill] sm:$0xff] %v632_v52  ;;  %v642_v54 = vld [vmem:[%s1318_s0 + $0x170] sm:$0xff]  ;;  %v647_v55 = vld [vmem:[%s1318_s0 + $0x178] sm:$0xff]  ;;  %1348 = vst [vmem:[#allocation11_spill] sm:$0xff] %v651_v56  ;;  %v655_v57 = vsel %vm82_vm1, %v615_v47, 0.0  ;;  %v659_v58 = vsel %vm82_vm1, %v620_v48, 0.0 }
   0xc   :  { %1349 = vst [vmem:[#allocation12_spill] sm:$0xff] %v655_v57  ;;  %1350 = vst [vmem:[#allocation13_spill] sm:$0xff] %v659_v58  ;;  %v664_v59 = vld [vmem:[%s1318_s0 + $0x180] sm:$0xff]  ;;  %v669_v60 = vld [vmem:[%s1318_s0 + $0x188] sm:$0xff]  ;;  %v678_v63 = vsel %vm82_vm1, %v637_v53, 0.0  ;;  %v682_v0 = vsel %vm82_vm1, %v642_v54, 0.0 }
   0xd   :  { %v95_v36 = vadd.f32 %v94_v20, %v93_v24  ;;  %v674_v61 = vld [vmem:[%s1318_s0 + $0x190] sm:$0xff]  ;;  %1351 = vst [vmem:[#allocation14_spill] sm:$0xff] %v678_v63  ;;  %1352 = vst [vmem:[#allocation15_spill] sm:$0xff] %v682_v0  ;;  %v686_v4 = vsel %vm82_vm1, %v647_v55, 0.0  ;;  %v691_v5 = vld [vmem:[%s1318_s0 + $0x198] sm:$0xff]  ;;  %v705_v9 = vsel %vm82_vm1, %v664_v59, 0.0 }
   0xe   :  { %1353 = vst [vmem:[#allocation16_spill] sm:$0xff] %v686_v4  ;;  %v696_v6 = vld [vmem:[%s1318_s0 + $0x1a0] sm:$0xff]  ;;  %v701_v8 = vld [vmem:[%s1318_s0 + $0x1a8] sm:$0xff]  ;;  %1354 = vst [vmem:[#allocation17_spill] sm:$0xff] %v705_v9  ;;  %v709_v11 = vsel %vm82_vm1, %v669_v60, 0.0  ;;  %v713_v12 = vsel %vm82_vm1, %v674_v61, 0.0 }
   0xf   :  { %v97_v49 = vadd.f32 %v96_v25, %v95_v36  ;;  %1355 = vst [vmem:[#allocation18_spill] sm:$0xff] %v709_v11  ;;  %1356 = vst [vmem:[#allocation19_spill] sm:$0xff] %v713_v12  ;;  %v718_v14 = vld [vmem:[%s1318_s0 + $0x60] sm:$0xff]  ;;  %v723_v15 = vld [vmem:[%s1318_s0 + $0x1b0] sm:$0xff]  ;;  %v737_v25 = vsel %vm82_vm1, %v691_v5, 0.0  ;;  %v745_v36 = vsel %vm82_vm1, %v701_v8, 0.0 }
  0x10   :  { %v728_v17 = vld [vmem:[%s1318_s0 + $0x1b8] sm:$0xff]  ;;  %v733_v20 = vld [vmem:[%s1318_s0 + $0x1c0] sm:$0xff]  ;;  %1357 = vst [vmem:[#allocation20_spill] sm:$0xff] %v737_v25  ;;  %1359 = vst [vmem:[#allocation22_spill] sm:$0xff] %v745_v36 }
  0x11   :  { %v99_v62 = vadd.f32 %v98_v26, %v97_v49  ;;  %v741_v26 = vsel %vm82_vm1, %v696_v6, 0.0  ;;  %v750_v49 = vld [vmem:[%s1318_s0 + $0x1c8] sm:$0xff]  ;;  %v768_v36 = vsel %vm82_vm1, %v728_v17, 0.0  ;;  %v772_v25 = vsel %vm82_vm1, %v733_v20, 0.0  ;;  %v777_v12 = vld [vmem:[%s1318_s0 + $0x1e0] sm:$0xff]  ;;  %v804_v0 = vld [vmem:[%s1318_s0 + $0x1f8] sm:$0xff] }
  0x12   :  { %1358 = vst [vmem:[#allocation21_spill] sm:$0xff] %v741_v26  ;;  %v764_v26 = vsel %vm82_vm1, %v723_v15, 0.0  ;;  %1361 = vst [vmem:[#allocation24_spill] sm:$0xff] %v768_v36  ;;  %v782_v11 = vld [vmem:[%s1318_s0 + $0x1e8] sm:$0xff]  ;;  %v791_v9 = vsel %vm82_vm1, %v750_v49, 0.0  ;;  %v826_v58 = vsel %vm82_vm1, %v804_v0, 0.0 }
  0x13   :  { %v101_v24 = vadd.f32 %v100_v30, %v99_v62  ;;  %v755_v30 = vld [vmem:[%s1318_s0 + $0x1d0] sm:$0xff]  ;;  %v760_v62 = vld [vmem:[%s1318_s0 + $0x1d8] sm:$0xff]  ;;  %1360 = vst [vmem:[#allocation23_spill] sm:$0xff] %v764_v26  ;;  %1362 = vst [vmem:[#allocation25_spill] sm:$0xff] %v772_v25 }
  0x14   :  { %v787_v26 = vld [vmem:[%s1318_s0 + $0x1f0] sm:$0xff]  ;;  %1364 = vst [vmem:[#allocation27_spill] sm:$0xff] %v791_v9  ;;  %v795_v25 = vsel %vm82_vm1, %v755_v30, 0.0  ;;  %v799_v4 = vsel %vm82_vm1, %v760_v62, 0.0  ;;  %1367 = vst [vmem:[#allocation30_spill] sm:$0xff] %v804_v0  ;;  %v814_v9 = vsel %vm82_vm1, %v782_v11, 0.0 }
  0x15   :  { %1363 = vst [vmem:[#allocation26_spill] sm:$0xff] %v787_v26  ;;  %v103_v36 = vadd.f32 %v102_v31, %v101_v24  ;;  %1365 = vst [vmem:[#allocation28_spill] sm:$0xff] %v795_v25  ;;  %v106_v31 = vsel %vm82_vm1, %v718_v14, 0.0  ;;  %v810_v24 = vsel %vm82_vm1, %v777_v12, 0.0  ;;  %v818_v25 = vsel %vm82_vm1, %v787_v26, 0.0  ;;  %v855_v56 = vld [vmem:[%s1318_s0 + $0x90] sm:$0xff] }
  0x16   :  { %1366 = vst [vmem:[#allocation29_spill] sm:$0xff] %v799_v4  ;;  %1368 = vst [vmem:[#allocation31_spill] sm:$0xff] %v810_v24  ;;  %v30_v4 = vld [vmem:[%s1318_s0 + $0x68] sm:$0xff]  ;;  %v860_v52 = vld [vmem:[%s1318_s0 + $0x98] sm:$0xff] }
  0x17   :  { %1369 = vst [vmem:[#allocation32_spill] sm:$0xff] %v814_v9  ;;  %1370 = vst [vmem:[#allocation33_spill] sm:$0xff] %v818_v25  ;;  %v105_v63 = vadd.f32 %v551_v32, %v103_v36  ;;  %v108_v24 = vsel %vm82_vm1, %v30_v4, 0.0  ;;  %v31_v9 = vld [vmem:[%s1318_s0 + $0x70] sm:$0xff]  ;;  %v835_v25 = vld [vmem:[%s1318_s0 + $0x78] sm:$0xff]  ;;  %v120_v39 = vsel %vm82_vm1, %v860_v52, 0.0 }
  0x18   :  { %1371 = vst [vmem:[#allocation34_spill] sm:$0xff] %v826_v58  ;;  %1372 = vst [vmem:[#allocation35_spill] sm:$0xff] %v835_v25  ;;  %v840_v32 = vld [vmem:[%s1318_s0 + $0x80] sm:$0xff]  ;;  %v845_v36 = vld [vmem:[%s1318_s0 + $0x88] sm:$0xff]  ;;  %v110_v58 = vsel %vm82_vm1, %v31_v9, 0.0 }
  0x19   :  { %v107_v57 = vadd.f32 %v106_v31, %v105_v63  ;;  %1373 = vst [vmem:[#allocation36_spill] sm:$0xff] %v840_v32  ;;  %1374 = vst [vmem:[#allocation37_spill] sm:$0xff] %v845_v36  ;;  %v220_v63 = vmul.f32 %v455_v1, %v455_v1  ;;  %v221_v31 = vmul.f32 %v460_v2, %v460_v2  ;;  %v865_v51 = vld [vmem:[%s1318_s0 + $0xa0] sm:$0xff]  ;;  %v112_v1 = vsel %vm82_vm1, %v835_v25, 0.0  ;;  %v876_v44 = vld [vmem:[%s1318_s0 + $0xa8] sm:$0xff] }
  0x1a   :  { %1375 = vst [vmem:[#allocation38_spill] sm:$0xff] %v855_v56  ;;  %1376 = vst [vmem:[#allocation39_spill] sm:$0xff] %v860_v52  ;;  %v114_v2 = vsel %vm82_vm1, %v840_v32, 0.0  ;;  %v116_v45 = vsel %vm82_vm1, %v845_v36, 0.0  ;;  %v881_v43 = vld [vmem:[%s1318_s0 + $0xb0] sm:$0xff]  ;;  %v122_v38 = vsel %vm82_vm1, %v865_v51, 0.0  ;;  %v223_v25 = vmul.f32 %v476_v7, %v476_v7 }
  0x1b   :  { %1377 = vst [vmem:[#allocation40_spill] sm:$0xff] %v865_v51  ;;  %v109_v50 = vadd.f32 %v108_v24, %v107_v57  ;;  %1378 = vst [vmem:[#allocation41_spill] sm:$0xff] %v876_v44  ;;  %v886_v57 = vld [vmem:[%s1318_s0 + $0xb8] sm:$0xff]  ;;  %v118_v24 = vsel %vm82_vm1, %v855_v56, 0.0  ;;  %v899_v36 = vld [vmem:[%s1318_s0 + $0xc0] sm:$0xff]  ;;  %v124_v51 = vsel %vm82_vm1, %v876_v44, 0.0 }
  0x1c   :  { %1379 = vst [vmem:[#allocation42_spill] sm:$0xff] %v881_v43  ;;  %1380 = vst [vmem:[#allocation43_spill] sm:$0xff] %v886_v57  ;;  %v904_v32 = vld [vmem:[%s1318_s0 + $0xc8] sm:$0xff]  ;;  %v909_v52 = vld [vmem:[%s1318_s0 + $0xd0] sm:$0xff]  ;;  %v915_v3 = vsel %vm82_vm1, %v881_v43, 0.0 }
  0x1d   :  { %1381 = vst [vmem:[#allocation44_spill] sm:$0xff] %v899_v36  ;;  %1382 = vst [vmem:[#allocation45_spill] sm:$0xff] %v904_v32  ;;  %v111_v56 = vadd.f32 %v110_v58, %v109_v50  ;;  %v922_v0 = vld [vmem:[%s1318_s0 + $0xd8] sm:$0xff]  ;;  %v927_v26 = vld [vmem:[%s1318_s0 + $0xe0] sm:$0xff]  ;;  %v931_v50 = vsel %vm82_vm1, %v886_v57, 0.0  ;;  %v935_v58 = vsel %vm82_vm1, %v899_v36, 0.0 }
  0x1e   :  { %1383 = vst [vmem:[#allocation46_spill] sm:$0xff] %v909_v52  ;;  %1384 = vst [vmem:[#allocation47_spill] sm:$0xff] %v922_v0  ;;  %v939_v7 = vsel %vm82_vm1, %v904_v32, 0.0  ;;  %v943_v43 = vsel %vm82_vm1, %v909_v52, 0.0  ;;  %v948_v44 = vld [vmem:[%s1318_s0 + $0xe8] sm:$0xff]  ;;  %v953_v57 = vld [vmem:[%s1318_s0 + $0xf0] sm:$0xff]  ;;  %v224_v52 = vmul.f32 %v483_v10, %v483_v10  ;;  %v228_v10 = vmul.f32 %v507_v19, %v507_v19 }
  0x1f   :  { %1385 = vst [vmem:[#allocation48_spill] sm:$0xff] %v927_v26  ;;  %1386 = vst [vmem:[#allocation49_spill] sm:$0xff] %v935_v58  ;;  %v113_v36 = vadd.f32 %v112_v1, %v111_v56  ;;  %v957_v58 = vsel %vm82_vm1, %v922_v0, 0.0  ;;  %v961_v32 = vsel %vm82_vm1, %v927_v26, 0.0  ;;  %v225_v56 = vmul.f32 %v490_v13, %v490_v13 }
  0x20   :  { %1387 = vst [vmem:[#allocation50_spill] sm:$0xff] %v939_v7  ;;  %1388 = vst [vmem:[#allocation51_spill] sm:$0xff] %v943_v43  ;;  %v967_v43 = vsel %vm82_vm1, %v948_v44, 0.0  ;;  %v971_v7 = vsel %vm82_vm1, %v953_v57, 0.0  ;;  %v226_v1 = vmul.f32 %v497_v16, %v497_v16  ;;  %v227_v26 = vmul.f32 %v502_v18, %v502_v18 }
  0x21   :  { %1389 = vst [vmem:[#allocation52_spill] sm:$0xff] %v948_v44  ;;  %1390 = vst [vmem:[#allocation53_spill] sm:$0xff] %v953_v57  ;;  %v115_v0 = vadd.f32 %v114_v2, %v113_v36  ;;  %v229_v44 = vmul.f32 %v514_v21, %v514_v21  ;;  %v230_v57 = vmul.f32 %v519_v22, %v519_v22 }
  0x22   :  { %1391 = vst [vmem:[#allocation54_spill] sm:$0xff] %v971_v7  ;;  %v231_v7 = vmul.f32 %v524_v23, %v524_v23  ;;  %v232_v13 = vmul.f32 %v718_v14, %v718_v14  ;;  %v989_v16 = vmul.f32 %v30_v4, %v30_v4  ;;  %v991_v2 = vmul.f32 %v31_v9, %v31_v9 }
  0x23   :  { %v117_v36 = vadd.f32 %v116_v45, %v115_v0  ;;  %v253_v18 = vmul.f32 %v533_v27, %v533_v27  ;;  %v254_v19 = vmul.f32 %v538_v28, %v538_v28  ;;  %v255_v21 = vmul.f32 %v543_v29, %v543_v29 }
  0x24   :  { %v256_v22 = vmul.f32 %v556_v33, %v556_v33  ;;  %v257_v23 = vmul.f32 %v561_v34, %v561_v34  ;;  %v258_v45 = vmul.f32 %v566_v35, %v566_v35  ;;  %v259_v4 = vmul.f32 %v583_v40, %v583_v40 }
  0x25   :  { %v119_v0 = vadd.f32 %v118_v24, %v117_v36  ;;  %v260_v27 = vmul.f32 %v588_v41, %v588_v41  ;;  %v261_v28 = vmul.f32 %v593_v42, %v593_v42  ;;  %v262_v29 = vmul.f32 %v610_v46, %v610_v46 }
  0x26   :  { %v263_v33 = vmul.f32 %v615_v47, %v615_v47  ;;  %v284_v34 = vsel %vm82_vm1, %v220_v63, 0.0  ;;  %v285_v35 = vsel %vm82_vm1, %v221_v31, 0.0  ;;  %v264_v40 = vmul.f32 %v620_v48, %v620_v48 }
  0x27   :  { %v121_v9 = vadd.f32 %v120_v39, %v119_v0  ;;  %v286_v14 = vadd.f32 %v285_v35, %v284_v34  ;;  %v287_v41 = vsel %vm82_vm1, %v222_v37, 0.0  ;;  %v265_v42 = vmul.f32 %v637_v53, %v637_v53  ;;  %v1392_v0 = vld [vmem:[#allocation26_spill] sm:$0xff] }
  0x28   :  { %v266_v46 = vmul.f32 %v642_v54, %v642_v54  ;;  %v267_v47 = vmul.f32 %v647_v55, %v647_v55  ;;  %v289_v63 = vsel %vm82_vm1, %v223_v25, 0.0  ;;  %v268_v39 = vmul.f32 %v664_v59, %v664_v59  ;;  %v1393_v34 = vld [vmem:[#allocation30_spill] sm:$0xff] }
  0x29   :  { %v123_v24 = vadd.f32 %v122_v38, %v121_v9  ;;  %v269_v48 = vmul.f32 %v669_v60, %v669_v60  ;;  %v288_v31 = vadd.f32 %v287_v41, %v286_v14  ;;  %v270_v37 = vmul.f32 %v674_v61, %v674_v61  ;;  %v1394_v41 = vld [vmem:[#allocation49_spill] sm:$0xff] }
  0x2a   :  { %v271_v53 = vmul.f32 %v691_v5, %v691_v5  ;;  %v272_v54 = vmul.f32 %v696_v6, %v696_v6  ;;  %v291_v55 = vsel %vm82_vm1, %v224_v52, 0.0  ;;  %v273_v38 = vmul.f32 %v701_v8, %v701_v8 }
  0x2b   :  { %v125_v25 = vadd.f32 %v124_v51, %v123_v24  ;;  %v274_v59 = vmul.f32 %v723_v15, %v723_v15  ;;  %v290_v60 = vadd.f32 %v289_v63, %v288_v31  ;;  %v275_v36 = vmul.f32 %v728_v17, %v728_v17 }
  0x2c   :  { %v276_v61 = vmul.f32 %v733_v20, %v733_v20  ;;  %v277_v5 = vmul.f32 %v750_v49, %v750_v49  ;;  %v293_v6 = vsel %vm82_vm1, %v225_v56, 0.0  ;;  %v278_v52 = vmul.f32 %v755_v30, %v755_v30 }
  0x2d   :  { %v127_v51 = vadd.f32 %v915_v3, %v125_v25  ;;  %v279_v8 = vmul.f32 %v760_v62, %v760_v62  ;;  %v292_v15 = vadd.f32 %v291_v55, %v290_v60  ;;  %v280_v17 = vmul.f32 %v777_v12, %v777_v12  ;;  %v1396_v25 = vld [vmem:[#allocation51_spill] sm:$0xff] }
  0x2e   :  { %v281_v20 = vmul.f32 %v782_v11, %v782_v11  ;;  %v282_v49 = vmul.f32 %v1392_v0, %v1392_v0  ;;  %v295_v56 = vsel %vm82_vm1, %v226_v1, 0.0  ;;  %v283_v30 = vmul.f32 %v1393_v34, %v1393_v34  ;;  %v1398_v34 = vld [vmem:[#allocation54_spill] sm:$0xff] }
  0x2f   :  { %v129_v3 = vadd.f32 %v931_v50, %v127_v51  ;;  %v294_v35 = vadd.f32 %v293_v6, %v292_v15  ;;  %v297_v62 = vsel %vm82_vm1, %v227_v26, 0.0  ;;  %v299_v9 = vsel %vm82_vm1, %v228_v10, 0.0 }
  0x30   :  { %v301_v12 = vsel %vm82_vm1, %v229_v44, 0.0  ;;  %v303_v14 = vsel %vm82_vm1, %v230_v57, 0.0  ;;  %v305_v11 = vsel %vm82_vm1, %v231_v7, 0.0  ;;  %v307_v1 = vsel %vm82_vm1, %v232_v13, 0.0  ;;  %v1395_v7 = vld [vmem:[#allocation50_spill] sm:$0xff] }
  0x31   :  { %v131_v63 = vadd.f32 %v1394_v41, %v129_v3  ;;  %v296_v24 = vadd.f32 %v295_v56, %v294_v35  ;;  %v1072_v50 = vsel %vm82_vm1, %v253_v18, 0.0  ;;  %v1075_v31 = vsel %vm82_vm1, %v254_v19, 0.0  ;;  %v1397_v56 = vld [vmem:[#allocation35_spill] sm:$0xff] }
  0x32   :  { %v1078_v26 = vsel %vm82_vm1, %v255_v21, 0.0  ;;  %v1081_v44 = vsel %vm82_vm1, %v256_v22, 0.0  ;;  %v1084_v57 = vsel %vm82_vm1, %v257_v23, 0.0  ;;  %v1088_v13 = vsel %vm82_vm1, %v258_v45, 0.0 }
  0x33   :  { %v133_v10 = vadd.f32 %v1395_v7, %v131_v63  ;;  %v298_v55 = vadd.f32 %v297_v62, %v296_v24  ;;  %v1091_v18 = vsel %vm82_vm1, %v259_v4, 0.0  ;;  %v1094_v19 = vsel %vm82_vm1, %v260_v27, 0.0  ;;  %v1399_v62 = vld [vmem:[#allocation36_spill] sm:$0xff] }
  0x34   :  { %v1097_v21 = vsel %vm82_vm1, %v261_v28, 0.0  ;;  %v1100_v22 = vsel %vm82_vm1, %v262_v29, 0.0  ;;  %v1103_v23 = vsel %vm82_vm1, %v263_v33, 0.0  ;;  %v1107_v45 = vsel %vm82_vm1, %v264_v40, 0.0 }
  0x35   :  { %v135_v60 = vadd.f32 %v1396_v25, %v133_v10  ;;  %v300_v6 = vadd.f32 %v299_v9, %v298_v55  ;;  %v1110_v4 = vsel %vm82_vm1, %v265_v42, 0.0  ;;  %v1113_v27 = vsel %vm82_vm1, %v266_v46, 0.0  ;;  %v1401_v10 = vld [vmem:[#allocation38_spill] sm:$0xff] }
  0x36   :  { %v1116_v28 = vsel %vm82_vm1, %v267_v47, 0.0  ;;  %v1119_v29 = vsel %vm82_vm1, %v268_v39, 0.0  ;;  %v1122_v33 = vsel %vm82_vm1, %v269_v48, 0.0  ;;  %v1126_v40 = vsel %vm82_vm1, %v270_v37, 0.0  ;;  %v1402_v25 = vld [vmem:[#allocation2_spill] sm:$0xff] }
  0x37   :  { %v137_v51 = vadd.f32 %v957_v58, %v135_v60  ;;  %v302_v15 = vadd.f32 %v301_v12, %v300_v6  ;;  %v1129_v42 = vsel %vm82_vm1, %v271_v53, 0.0  ;;  %v1132_v46 = vsel %vm82_vm1, %v272_v54, 0.0 }
  0x38   :  { %v1135_v47 = vsel %vm82_vm1, %v273_v38, 0.0  ;;  %v1138_v39 = vsel %vm82_vm1, %v274_v59, 0.0  ;;  %v1141_v48 = vsel %vm82_vm1, %v275_v36, 0.0  ;;  %v1145_v37 = vsel %vm82_vm1, %v276_v61, 0.0 }
  0x39   :  { %v139_v58 = vadd.f32 %v961_v32, %v137_v51  ;;  %v304_v0 = vadd.f32 %v303_v14, %v302_v15  ;;  %v1148_v53 = vsel %vm82_vm1, %v277_v5, 0.0  ;;  %v1151_v54 = vsel %vm82_vm1, %v278_v52, 0.0  ;;  %v1165_v32 = vld [vmem:[%s1318_s0 + $0xf8] sm:$0xff]  ;;  %v1403_v51 = vld [vmem:[#allocation39_spill] sm:$0xff] }
  0x3a   :  { %v1154_v38 = vsel %vm82_vm1, %v279_v8, 0.0  ;;  %v1157_v59 = vsel %vm82_vm1, %v280_v17, 0.0  ;;  %v1160_v36 = vsel %vm82_vm1, %v281_v20, 0.0  ;;  %v1169_v52 = vsel %vm82_vm1, %v282_v49, 0.0 }
  0x3b   :  { %v141_v61 = vadd.f32 %v967_v43, %v139_v58  ;;  %v306_v5 = vadd.f32 %v305_v11, %v304_v0  ;;  %v1172_v8 = vsel %vm82_vm1, %v283_v30, 0.0  ;;  %v144_v17 = vsel %vm82_vm1, %v1165_v32, 0.0  ;;  %v1183_v43 = vld [vmem:[%s1318_s0 + $0x100] sm:$0xff]  ;;  %v1404_v58 = vld [vmem:[#allocation3_spill] sm:$0xff] }
  0x3c   :  { %v235_v20 = vmul.f32 %v1397_v56, %v1397_v56  ;;  %v309_v3 = vsel %vm82_vm1, %v989_v16, 0.0  ;;  %v146_v30 = vsel %vm82_vm1, %v1183_v43, 0.0  ;;  %v236_v9 = vmul.f32 %v1399_v62, %v1399_v62  ;;  %v1400_v16 = vld [vmem:[#allocation37_spill] sm:$0xff] }
  0x3d   :  { %v143_v49 = vadd.f32 %v1398_v34, %v141_v61  ;;  %v308_v35 = vadd.f32 %v307_v1, %v306_v5  ;;  %v311_v12 = vsel %vm82_vm1, %v991_v2, 0.0  ;;  %v237_v41 = vmul.f32 %v1400_v16, %v1400_v16  ;;  %v1405_v5 = vld [vmem:[#allocation40_spill] sm:$0xff]  ;;  %v1408_v62 = vld [vmem:[#allocation5_spill] sm:$0xff] }
  0x3e   :  { %v313_v63 = vsel %vm82_vm1, %v235_v20, 0.0  ;;  %v238_v1 = vmul.f32 %v1401_v10, %v1401_v10  ;;  %v315_v55 = vsel %vm82_vm1, %v236_v9, 0.0  ;;  %v239_v2 = vmul.f32 %v1403_v51, %v1403_v51  ;;  %v1406_v20 = vld [vmem:[#allocation4_spill] sm:$0xff] }
  0x3f   :  { %v145_v14 = vadd.f32 %v144_v17, %v143_v49  ;;  %v310_v11 = vadd.f32 %v309_v3, %v308_v35  ;;  %v317_v15 = vsel %vm82_vm1, %v237_v41, 0.0  ;;  %v240_v17 = vmul.f32 %v1405_v5, %v1405_v5  ;;  %v1407_v49 = vld [vmem:[#allocation41_spill] sm:$0xff]  ;;  %v1410_v41 = vld [vmem:[#allocation6_spill] sm:$0xff] }
  0x40   :  { %v319_v56 = vsel %vm82_vm1, %v238_v1, 0.0  ;;  %v241_v35 = vmul.f32 %v1407_v49, %v1407_v49 }
  0x41   :  { %v147_v24 = vadd.f32 %v146_v30, %v145_v14  ;;  %v312_v7 = vadd.f32 %v311_v12, %v310_v11  ;;  %v321_v30 = vsel %vm82_vm1, %v239_v2, 0.0  ;;  %v1409_v14 = vld [vmem:[#allocation42_spill] sm:$0xff]  ;;  %v323_v16 = vsel %vm82_vm1, %v240_v17, 0.0 }
  0x42   :  { %v242_v11 = vmul.f32 %v1409_v14, %v1409_v14  ;;  %v325_v1 = vsel %vm82_vm1, %v241_v35, 0.0 }
  0x43   :  { %v149_v60 = vadd.f32 %v1402_v25, %v147_v24  ;;  %v314_v6 = vadd.f32 %v313_v63, %v312_v7  ;;  %v1411_v7 = vld [vmem:[#allocation43_spill] sm:$0xff] }
  0x44   :  { %v243_v10 = vmul.f32 %v1411_v7, %v1411_v7  ;;  %v327_v2 = vsel %vm82_vm1, %v242_v11, 0.0 }
  0x45   :  { %v151_v0 = vadd.f32 %v1404_v58, %v149_v60  ;;  %v316_v61 = vadd.f32 %v315_v55, %v314_v6  ;;  %v1412_v55 = vld [vmem:[#allocation7_spill] sm:$0xff]  ;;  %v1413_v6 = vld [vmem:[#allocation44_spill] sm:$0xff] }
  0x46   :  { %v244_v51 = vmul.f32 %v1413_v6, %v1413_v6  ;;  %v329_v17 = vsel %vm82_vm1, %v243_v10, 0.0 }
  0x47   :  { %v153_v3 = vadd.f32 %v1406_v20, %v151_v0  ;;  %v318_v34 = vadd.f32 %v317_v15, %v316_v61  ;;  %v1414_v15 = vld [vmem:[#allocation8_spill] sm:$0xff]  ;;  %v1415_v61 = vld [vmem:[#allocation45_spill] sm:$0xff] }
  0x48   :  { %v245_v5 = vmul.f32 %v1415_v61, %v1415_v61  ;;  %v331_v35 = vsel %vm82_vm1, %v244_v51, 0.0 }
  0x49   :  { %v155_v9 = vadd.f32 %v1408_v62, %v153_v3  ;;  %v320_v12 = vadd.f32 %v319_v56, %v318_v34  ;;  %v1416_v56 = vld [vmem:[#allocation9_spill] sm:$0xff]  ;;  %v1417_v34 = vld [vmem:[#allocation46_spill] sm:$0xff] }
  0x4a   :  { %v246_v49 = vmul.f32 %v1417_v34, %v1417_v34  ;;  %v333_v11 = vsel %vm82_vm1, %v245_v5, 0.0 }
  0x4b   :  { %v157_v63 = vadd.f32 %v1410_v41, %v155_v9  ;;  %v322_v24 = vadd.f32 %v321_v30, %v320_v12  ;;  %v1418_v30 = vld [vmem:[#allocation10_spill] sm:$0xff]  ;;  %v1419_v12 = vld [vmem:[#allocation47_spill] sm:$0xff] }
  0x4c   :  { %v247_v14 = vmul.f32 %v1419_v12, %v1419_v12  ;;  %v335_v10 = vsel %vm82_vm1, %v246_v49, 0.0  ;;  %v1427_v49 = vld [vmem:[#allocation15_spill] sm:$0xff]  ;;  %v1428_v12 = vld [vmem:[#allocation16_spill] sm:$0xff] }
  0x4d   :  { %v159_v25 = vadd.f32 %v1412_v55, %v157_v63  ;;  %v324_v60 = vadd.f32 %v323_v16, %v322_v24  ;;  %v1420_v16 = vld [vmem:[#allocation11_spill] sm:$0xff]  ;;  %v1421_v24 = vld [vmem:[#allocation48_spill] sm:$0xff] }
  0x4e   :  { %v248_v7 = vmul.f32 %v1421_v24, %v1421_v24  ;;  %v337_v51 = vsel %vm82_vm1, %v247_v14, 0.0 }
  0x4f   :  { %v161_v58 = vadd.f32 %v1414_v15, %v159_v25  ;;  %v326_v0 = vadd.f32 %v325_v1, %v324_v60  ;;  %v1422_v1 = vld [vmem:[#allocation12_spill] sm:$0xff] }
  0x50   :  { %v1423_v60 = vld [vmem:[#allocation52_spill] sm:$0xff]  ;;  %v339_v5 = vsel %vm82_vm1, %v248_v7, 0.0  ;;  %v1430_v7 = vld [vmem:[#allocation18_spill] sm:$0xff] }
  0x51   :  { %v163_v20 = vadd.f32 %v1416_v56, %v161_v58  ;;  %v328_v3 = vadd.f32 %v327_v2, %v326_v0  ;;  %v249_v6 = vmul.f32 %v1423_v60, %v1423_v60  ;;  %v1424_v2 = vld [vmem:[#allocation13_spill] sm:$0xff] }
  0x52   :  { %v1425_v0 = vld [vmem:[#allocation53_spill] sm:$0xff] }
  0x53   :  { %v165_v62 = vadd.f32 %v1418_v30, %v163_v20  ;;  %v330_v9 = vadd.f32 %v329_v17, %v328_v3  ;;  %v250_v61 = vmul.f32 %v1425_v0, %v1425_v0  ;;  %v1426_v17 = vld [vmem:[#allocation14_spill] sm:$0xff]  ;;  %v251_v3 = vmul.f32 %v1165_v32, %v1165_v32 }
  0x54   :  { %v341_v34 = vsel %vm82_vm1, %v249_v6, 0.0  ;;  %v1432_v6 = vld [vmem:[#allocation20_spill] sm:$0xff]  ;;  %v1434_v0 = vld [vmem:[#allocation22_spill] sm:$0xff] }
  0x55   :  { %v167_v41 = vadd.f32 %v1420_v16, %v165_v62  ;;  %v332_v63 = vadd.f32 %v331_v35, %v330_v9  ;;  %v252_v62 = vmul.f32 %v1183_v43, %v1183_v43  ;;  %v343_v9 = vsel %vm82_vm1, %v250_v61, 0.0 }
  0x56   :  { %v345_v16 = vsel %vm82_vm1, %v251_v3, 0.0  ;;  %v1436_v3 = vld [vmem:[#allocation24_spill] sm:$0xff] }
  0x57   :  { %v169_v55 = vadd.f32 %v1422_v1, %v167_v41  ;;  %v334_v25 = vadd.f32 %v333_v11, %v332_v63  ;;  %v1429_v41 = vld [vmem:[#allocation17_spill] sm:$0xff]  ;;  %v347_v32 = vsel %vm82_vm1, %v252_v62, 0.0  ;;  %v1438_v62 = vld [vmem:[#allocation27_spill] sm:$0xff] }
  0x59   :  { %v171_v15 = vadd.f32 %v1424_v2, %v169_v55  ;;  %v336_v58 = vadd.f32 %v335_v10, %v334_v25  ;;  %v1431_v55 = vld [vmem:[#allocation19_spill] sm:$0xff]  ;;  %v1433_v2 = vld [vmem:[#allocation21_spill] sm:$0xff] }
  0x5b   :  { %v173_v56 = vadd.f32 %v1426_v17, %v171_v15  ;;  %v338_v20 = vadd.f32 %v337_v51, %v336_v58  ;;  %v1435_v17 = vld [vmem:[#allocation23_spill] sm:$0xff] }
  0x5d   :  { %v175_v35 = vadd.f32 %v1427_v49, %v173_v56  ;;  %v340_v30 = vadd.f32 %v339_v5, %v338_v20 }
  0x5f   :  { %v177_v14 = vadd.f32 %v1428_v12, %v175_v35  ;;  %v342_v11 = vadd.f32 %v341_v34, %v340_v30  ;;  %v1437_v35 = vld [vmem:[#allocation25_spill] sm:$0xff]  ;;  %v1439_v12 = vld [vmem:[#allocation28_spill] sm:$0xff] }
  0x61   :  { %v179_v63 = vadd.f32 %v1429_v41, %v177_v14  ;;  %v344_v24 = vadd.f32 %v343_v9, %v342_v11  ;;  %v1440_v11 = vld [vmem:[#allocation29_spill] sm:$0xff]  ;;  %v1441_v41 = vld [vmem:[#allocation31_spill] sm:$0xff] }
  0x63   :  { %v181_v10 = vadd.f32 %v1430_v7, %v179_v63  ;;  %v346_v1 = vadd.f32 %v345_v16, %v344_v24  ;;  %v1442_v24 = vld [vmem:[#allocation32_spill] sm:$0xff]  ;;  %v1443_v7 = vld [vmem:[#allocation33_spill] sm:$0xff] }
  0x65   :  { %v183_v25 = vadd.f32 %v1431_v55, %v181_v10  ;;  %v348_v60 = vadd.f32 %v347_v32, %v346_v1  ;;  %v1444_v1 = vld [vmem:[#allocation34_spill] sm:$0xff] }
  0x67   :  { %v185_v43 = vadd.f32 %v1432_v6, %v183_v25  ;;  %v350_v51 = vadd.f32 %v1072_v50, %v348_v60 }
  0x69   :  { %v187_v15 = vadd.f32 %v1433_v2, %v185_v43  ;;  %v352_v58 = vadd.f32 %v1075_v31, %v350_v51 }
  0x6b   :  { %v189_v61 = vadd.f32 %v1434_v0, %v187_v15  ;;  %v354_v5 = vadd.f32 %v1078_v26, %v352_v58 }
  0x6d   :  { %v191_v56 = vadd.f32 %v1435_v17, %v189_v61  ;;  %v356_v20 = vadd.f32 %v1081_v44, %v354_v5 }
  0x6f   :  { %v193_v34 = vadd.f32 %v1436_v3, %v191_v56  ;;  %v358_v49 = vadd.f32 %v1084_v57, %v356_v20 }
  0x71   :  { %v195_v30 = vadd.f32 %v1437_v35, %v193_v34  ;;  %v360_v50 = vadd.f32 %v1088_v13, %v358_v49 }
  0x73   :  { %v197_v9 = vadd.f32 %v1438_v62, %v195_v30  ;;  %v362_v31 = vadd.f32 %v1091_v18, %v360_v50 }
  0x75   :  { %v199_v14 = vadd.f32 %v1439_v12, %v197_v9  ;;  %v364_v26 = vadd.f32 %v1094_v19, %v362_v31 }
  0x77   :  { %v201_v16 = vadd.f32 %v1440_v11, %v199_v14  ;;  %v366_v44 = vadd.f32 %v1097_v21, %v364_v26 }
  0x79   :  { %v203_v63 = vadd.f32 %v1441_v41, %v201_v16  ;;  %v368_v57 = vadd.f32 %v1100_v22, %v366_v44 }
  0x7b   :  { %v205_v32 = vadd.f32 %v1442_v24, %v203_v63  ;;  %v370_v13 = vadd.f32 %v1103_v23, %v368_v57 }
  0x7d   :  { %v207_v10 = vadd.f32 %v1443_v7, %v205_v32  ;;  %v372_v18 = vadd.f32 %v1107_v45, %v370_v13  ;;  %v81_v45 = vld [vmem:[%s1319_s1] sm:$0x1] }
  0x7f   :  { %v209_v55 = vadd.f32 %v1444_v1, %v207_v10  ;;  %v374_v19 = vadd.f32 %v1110_v4, %v372_v18 }
  0x81   :  { %v210_v25 = vrot.slane %v209_v55, 4  ;;  %v376_v60 = vadd.f32 %v1113_v27, %v374_v19 }
  0x83   :  { %v211_v21 = vadd.f32 %v210_v25, %v209_v55  ;;  %v378_v6 = vadd.f32 %v1116_v28, %v376_v60 }
  0x85   :  { %v212_v43 = vrot.slane %v211_v21, 2  ;;  %v380_v22 = vadd.f32 %v1119_v29, %v378_v6 }
  0x87   :  { %v213_v51 = vadd.f32 %v212_v43, %v211_v21  ;;  %v382_v23 = vadd.f32 %v1122_v33, %v380_v22 }
  0x89   :  { %v214_v2 = vrot.slane %v213_v51, 1  ;;  %v384_v15 = vadd.f32 %v1126_v40, %v382_v23 }
  0x8b   :  { %v215_v4 = vadd.f32 %v214_v2, %v213_v51  ;;  %v386_v58 = vadd.f32 %v1129_v42, %v384_v15 }
  0x8d   :  { %v216_v27 = vadd.f32 %v215_v4, %v81_v45  ;;  %v388_v0 = vadd.f32 %v1132_v46, %v386_v58 }
  0x8f   :  { %218 = vst.msk [vmem:[%s1319_s1] sm:$0x1] %vm14_vm0, %v216_v27  ;;  %v390_v28 = vadd.f32 %v1135_v47, %v388_v0 }
  0x91   :  { %v392_v29 = vadd.f32 %v1138_v39, %v390_v28 }
  0x93   :  { %v394_v33 = vadd.f32 %v1141_v48, %v392_v29 }
  0x95   :  { %v396_v40 = vadd.f32 %v1145_v37, %v394_v33  ;;  %v219_v37 = vld [vmem:[%s1320_s2] sm:$0x1] }
  0x97   :  { %v398_v61 = vadd.f32 %v1148_v53, %v396_v40 }
  0x99   :  { %v400_v42 = vadd.f32 %v1151_v54, %v398_v61 }
  0x9b   :  { %v402_v5 = vadd.f32 %v1154_v38, %v400_v42 }
  0x9d   :  { %v404_v46 = vadd.f32 %v1157_v59, %v402_v5 }
  0x9f   :  { %v406_v17 = vadd.f32 %v1160_v36, %v404_v46 }
  0xa1   :  { %v408_v56 = vadd.f32 %v1169_v52, %v406_v17 }
  0xa3   :  { %v410_v47 = vadd.f32 %v1172_v8, %v408_v56 }
  0xa5   :  { %v411_v20 = vrot.slane %v410_v47, 4 }
  0xa7   :  { %v412_v39 = vadd.f32 %v411_v20, %v410_v47 }
  0xa9   :  { %v413_v3 = vrot.slane %v412_v39, 2 }
  0xab   :  { %v414_v48 = vadd.f32 %v413_v3, %v412_v39 }
  0xad   :  { %v415_v34 = vrot.slane %v414_v48, 1 }
  0xaf   :  { %v416_v53 = vadd.f32 %v415_v34, %v414_v48 }
  0xb1   :  { %v417_v54 = vadd.f32 %v416_v53, %v219_v37 }
  0xb3   :  { %418 = vst.msk [vmem:[%s1320_s2] sm:$0x1] %vm14_vm0, %v417_v54 }

// kernel: generator_forward.16
= control target key start
LH: loop header
LB: loop body
LE: loop exit
PB: predicated region body
PF: predicated region fallthrough
CT: control target
= control target key end

     0   :  { %vm289_vm0 = vcmask 130048   ;;  %s1788_s3 = inlined_call_operand.vmem [shape: f32[16,128], index: 3, kind: input, shape index: {}]   ;;  %s1789_s0 = inlined_call_operand.vmem [shape: f32[512,16], index: 0, kind: input, shape index: {}]   ;;  %s1790_s1 = inlined_call_operand.vmem [shape: f32[1,16], index: 1, kind: input, shape index: {}]   ;;  %s1791_s2 = inlined_call_operand.vmem [shape: f32[1,16], index: 2, kind: input, shape index: {}]   ;;  %s1792_s4 = inlined_call_operand.vmem [shape: f32[512,128], index: 4, kind: output, shape index: {}]  }
   0x1   :  { %v288_v0 = vld [vmem:[%s1788_s3 + $0x8] sm:$0xff]  ;;  %v287_v1 = vld [vmem:[%s1788_s3] sm:$0xff]  ;;  %v19_v10 = vld [vmem:[%s1789_s0 + $0x10] sm:$0xff] }
   0x2   :  { %v17_v2 = vld [vmem:[%s1789_s0] sm:$0xff]  ;;  %1067 = vmatprep.subr.mxu0 %v288_v0  ;;  %1167 = vmatprep.subr.mxu1 %v288_v0  ;;  %v18_v8 = vld [vmem:[%s1789_s0 + $0x8] sm:$0xff]  ;;  %v51_v14 = vld [vmem:[%s1789_s0 + $0x110] sm:$0xff] }
   0x3   :  { %v1208_v3 = vld [vmem:[%s1790_s1] ss:$0 sm:$0xff]  ;;  %1068 = vmatpush3.msra.mxu0 %v288_v0  ;;  %1169 = vmatpush3.msra.mxu1 %v288_v0  ;;  %v50_v9 = vld [vmem:[%s1789_s0 + $0x108] sm:$0xff]  ;;  %v20_v15 = vld [vmem:[%s1789_s0 + $0x18] sm:$0xff] }
   0x4   :  { %v1213_v4 = vld [vmem:[%s1791_s2] ss:$0 sm:$0xff]  ;;  %v88_v6 = vmul.f32 %v1208_v3, %v17_v2  ;;  %1069 = vmatprep.subr.mxu0 %v287_v1  ;;  %1168 = vmatprep.subr.mxu1 %v287_v1  ;;  %v89_v11 = vmul.f32 %v1208_v3, %v18_v8  ;;  %v121_v12 = vmul.f32 %v1208_v3, %v50_v9  ;;  %v52_v16 = vld [vmem:[%s1789_s0 + $0x118] sm:$0xff]  ;;  %v22_v30 = vld [vmem:[%s1789_s0 + $0x28] sm:$0xff] }
   0x5   :  { %v49_v5 = vld [vmem:[%s1789_s0 + $0x100] sm:$0xff]  ;;  %v90_v13 = vmul.f32 %v1208_v3, %v19_v10  ;;  %1070 = vmatpush3.msra.mxu0 %v287_v1  ;;  %1170 = vmatpush3.msra.mxu1 %v287_v1  ;;  %v122_v19 = vmul.f32 %v1208_v3, %v51_v14  ;;  %v91_v23 = vmul.f32 %v1208_v3, %v20_v15  ;;  %v54_v31 = vld [vmem:[%s1789_s0 + $0x128] sm:$0xff]  ;;  %v23_v32 = vld [vmem:[%s1789_s0 + $0x30] sm:$0xff] }
   0x6   :  { %v120_v7 = vmul.f32 %v1208_v3, %v49_v5  ;;  %v159_v17 = vadd.f32 %v1213_v4, %v88_v6  ;;  %v160_v20 = vadd.f32 %v1213_v4, %v89_v11  ;;  %v192_v21 = vadd.f32 %v1213_v4, %v121_v12  ;;  %v21_v24 = vld [vmem:[%s1789_s0 + $0x20] sm:$0xff]  ;;  %v55_v37 = vld [vmem:[%s1789_s0 + $0x130] sm:$0xff]  ;;  %v24_v42 = vld [vmem:[%s1789_s0 + $0x38] sm:$0xff] }
   0x7   :  { %v161_v22 = vadd.f32 %v1213_v4, %v90_v13  ;;  %v53_v25 = vld [vmem:[%s1789_s0 + $0x120] sm:$0xff]  ;;  %v193_v28 = vadd.f32 %v1213_v4, %v122_v19  ;;  %v123_v29 = vmul.f32 %v1208_v3, %v52_v16  ;;  %v162_v36 = vadd.f32 %v1213_v4, %v91_v23  ;;  %v56_v47 = vld [vmem:[%s1789_s0 + $0x138] sm:$0xff]  ;;  %v26_v62 = vld [vmem:[%s1789_s0 + $0x48] sm:$0xff] }
   0x8   :  { %v191_v18 = vadd.f32 %v1213_v4, %v120_v7  ;;  %v223_v26 = vmax.f32 %v159_v17, 0.0  ;;  %v224_v33 = vmax.f32 %v160_v20, 0.0  ;;  %v256_v34 = vmax.f32 %v192_v21, 0.0  ;;  %v25_v56 = vld [vmem:[%s1789_s0 + $0x40] sm:$0xff]  ;;  %v58_v63 = vld [vmem:[%s1789_s0 + $0x148] sm:$0xff]  ;;  %v27_v0 = vld [vmem:[%s1789_s0 + $0x50] sm:$0xff] }
   0x9   :  { %v225_v35 = vmax.f32 %v161_v22, 0.0  ;;  %v257_v38 = vmax.f32 %v193_v28, 0.0  ;;  %v194_v39 = vadd.f32 %v1213_v4, %v123_v29  ;;  %v92_v40 = vmul.f32 %v1208_v3, %v21_v24  ;;  %v57_v57 = vld [vmem:[%s1789_s0 + $0x140] sm:$0xff]  ;;  %v59_v7 = vld [vmem:[%s1789_s0 + $0x150] sm:$0xff]  ;;  %v28_v15 = vld [vmem:[%s1789_s0 + $0x58] sm:$0xff] }
   0xa   :  { %v255_v27 = vmax.f32 %v191_v18, 0.0  ;;  %1071 = vmatprep.mubr.msk.f32.mxu0 %vm289_vm0, %v223_v26  ;;  %v124_v41 = vmul.f32 %v1208_v3, %v53_v25  ;;  %v226_v43 = vmax.f32 %v162_v36, 0.0  ;;  %v93_v44 = vmul.f32 %v1208_v3, %v22_v30  ;;  %v60_v20 = vld [vmem:[%s1789_s0 + $0x158] sm:$0xff]  ;;  %v29_v25 = vld [vmem:[%s1789_s0 + $0x60] sm:$0xff] }
   0xb   :  { %1072 = vmatmul.mubr.msk.f32.vlgmr.msra.gmra.mxu0 %vm289_vm0, %v224_v33  ;;  %v125_v45 = vmul.f32 %v1208_v3, %v54_v31  ;;  %v94_v46 = vmul.f32 %v1208_v3, %v23_v32  ;;  %v258_v48 = vmax.f32 %v194_v39, 0.0  ;;  %v163_v49 = vadd.f32 %v1213_v4, %v92_v40  ;;  %v61_v26 = vld [vmem:[%s1789_s0 + $0x160] sm:$0xff]  ;;  %v30_v31 = vld [vmem:[%s1789_s0 + $0x68] sm:$0xff]  ;;  %v63_v40 = vld [vmem:[%s1789_s0 + $0x170] sm:$0xff] }
   0xc   :  { %1119 = vmatprep.mubr.msk.f32.mxu1 %vm289_vm0, %v255_v27  ;;  %1074 = vmatprep.mubr.msk.f32.mxu0 %vm289_vm0, %v225_v35  ;;  %v195_v50 = vadd.f32 %v1213_v4, %v124_v41  ;;  %v126_v51 = vmul.f32 %v1208_v3, %v55_v37  ;;  %v164_v52 = vadd.f32 %v1213_v4, %v93_v44  ;;  %v62_v32 = vld [vmem:[%s1789_s0 + $0x168] sm:$0xff]  ;;  %v31_v35 = vld [vmem:[%s1789_s0 + $0x70] sm:$0xff] }
   0xd   :  { %1120 = vmatmul.mubr.msk.f32.vlgmr.msra.gmra.mxu1 %vm289_vm0, %v256_v34  ;;  %v196_v53 = vadd.f32 %v1213_v4, %v125_v45  ;;  %v165_v54 = vadd.f32 %v1213_v4, %v94_v46  ;;  %v95_v55 = vmul.f32 %v1208_v3, %v24_v42  ;;  %v227_v58 = vmax.f32 %v163_v49, 0.0  ;;  %v32_v45 = vld [vmem:[%s1789_s0 + $0x78] sm:$0xff] }
   0xe   :  { %1122 = vmatprep.mubr.msk.f32.mxu1 %vm289_vm0, %v257_v38  ;;  %v259_v59 = vmax.f32 %v195_v50, 0.0  ;;  %v197_v60 = vadd.f32 %v1213_v4, %v126_v51  ;;  %v127_v61 = vmul.f32 %v1208_v3, %v56_v47  ;;  %v228_v1 = vmax.f32 %v164_v52, 0.0  ;;  %v64_v50 = vld [vmem:[%s1789_s0 + $0x178] sm:$0xff]  ;;  %v33_v52 = vld [vmem:[%s1789_s0 + $0x80] sm:$0xff] }
   0xf   :  { %1075 = vmatmul.mubr.msk.f32.gmra.mxu0 %vm289_vm0, %v226_v43  ;;  %v260_v2 = vmax.f32 %v196_v53, 0.0  ;;  %v229_v5 = vmax.f32 %v165_v54, 0.0  ;;  %v166_v6 = vadd.f32 %v1213_v4, %v95_v55  ;;  %v96_v10 = vmul.f32 %v1208_v3, %v25_v56  ;;  %v65_v53 = vld [vmem:[%s1789_s0 + $0x180] sm:$0xff] }
  0x10   :  { %1077 = vmatprep.mubr.msk.f32.mxu0 %vm289_vm0, %v227_v58  ;;  %v261_v8 = vmax.f32 %v197_v60, 0.0  ;;  %v198_v9 = vadd.f32 %v1213_v4, %v127_v61  ;;  %v128_v11 = vmul.f32 %v1208_v3, %v57_v57  ;;  %v97_v12 = vmul.f32 %v1208_v3, %v26_v62  ;;  %v34_v62 = vld [vmem:[%s1789_s0 + $0x88] sm:$0xff] }
  0x11   :  { %1123 = vmatmul.mubr.msk.f32.gmra.mxu1 %vm289_vm0, %v258_v48  ;;  %v129_v13 = vmul.f32 %v1208_v3, %v58_v63  ;;  %v98_v14 = vmul.f32 %v1208_v3, %v27_v0  ;;  %v230_v16 = vmax.f32 %v166_v6, 0.0  ;;  %v167_v17 = vadd.f32 %v1213_v4, %v96_v10  ;;  %v35_v6 = vld [vmem:[%s1789_s0 + $0x90] sm:$0xff] }
  0x12   :  { %1125 = vmatprep.mubr.msk.f32.mxu1 %vm289_vm0, %v259_v59  ;;  %v199_v18 = vadd.f32 %v1213_v4, %v128_v11  ;;  %v130_v19 = vmul.f32 %v1208_v3, %v59_v7  ;;  %v262_v21 = vmax.f32 %v198_v9, 0.0  ;;  %v168_v22 = vadd.f32 %v1213_v4, %v97_v12  ;;  %v67_v7 = vld [vmem:[%s1789_s0 + $0x190] sm:$0xff] }
  0x13   :  { %1078 = vmatmul.mubr.msk.f32.gmra.mxu0 %vm289_vm0, %v228_v1  ;;  %v200_v23 = vadd.f32 %v1213_v4, %v129_v13  ;;  %v169_v24 = vadd.f32 %v1213_v4, %v98_v14  ;;  %v231_v27 = vmax.f32 %v167_v17, 0.0  ;;  %v99_v30 = vmul.f32 %v1208_v3, %v28_v15  ;;  %v68_v17 = vld [vmem:[%s1789_s0 + $0x198] sm:$0xff] }
  0x14   :  { %1080 = vmatprep.mubr.msk.f32.mxu0 %vm289_vm0, %v229_v5  ;;  %v263_v28 = vmax.f32 %v199_v18, 0.0  ;;  %v201_v29 = vadd.f32 %v1213_v4, %v130_v19  ;;  %v232_v33 = vmax.f32 %v168_v22, 0.0  ;;  %v131_v34 = vmul.f32 %v1208_v3, %v60_v20  ;;  %v66_v5 = vld [vmem:[%s1789_s0 + $0x188] sm:$0xff]  ;;  %v37_v22 = vld [vmem:[%s1789_s0 + $0xa0] sm:$0xff] }
  0x15   :  { %1126 = vmatmul.mubr.msk.f32.gmra.mxu1 %vm289_vm0, %v260_v2  ;;  %v264_v36 = vmax.f32 %v200_v23, 0.0  ;;  %v170_v37 = vadd.f32 %v1213_v4, %v99_v30  ;;  %v100_v38 = vmul.f32 %v1208_v3, %v29_v25  ;;  %v132_v39 = vmul.f32 %v1208_v3, %v61_v26  ;;  %v69_v23 = vld [vmem:[%s1789_s0 + $0x1a0] sm:$0xff] }
  0x16   :  { %1128 = vmatprep.mubr.msk.f32.mxu1 %vm289_vm0, %v261_v8  ;;  %v233_v41 = vmax.f32 %v169_v24, 0.0  ;;  %v202_v42 = vadd.f32 %v1213_v4, %v131_v34  ;;  %v101_v43 = vmul.f32 %v1208_v3, %v30_v31  ;;  %v133_v44 = vmul.f32 %v1208_v3, %v62_v32  ;;  %v38_v32 = vld [vmem:[%s1789_s0 + $0xa8] sm:$0xff] }
  0x17   :  { %1081 = vmatmul.mubr.msk.f32.gmra.mxu0 %vm289_vm0, %v230_v16  ;;  %v265_v46 = vmax.f32 %v201_v29, 0.0  ;;  %v171_v47 = vadd.f32 %v1213_v4, %v100_v38  ;;  %v203_v48 = vadd.f32 %v1213_v4, %v132_v39  ;;  %v102_v49 = vmul.f32 %v1208_v3, %v31_v35  ;;  %v36_v16 = vld [vmem:[%s1789_s0 + $0x98] sm:$0xff]  ;;  %v39_v38 = vld [vmem:[%s1789_s0 + $0xb0] sm:$0xff] }
  0x18   :  { %1083 = vmatprep.mubr.msk.f32.mxu0 %vm289_vm0, %v231_v27  ;;  %v134_v51 = vmul.f32 %v1208_v3, %v63_v40  ;;  %v234_v54 = vmax.f32 %v170_v37, 0.0  ;;  %v172_v55 = vadd.f32 %v1213_v4, %v101_v43  ;;  %v204_v56 = vadd.f32 %v1213_v4, %v133_v44  ;;  %v70_v37 = vld [vmem:[%s1789_s0 + $0x1a8] sm:$0xff]  ;;  %v71_v39 = vld [vmem:[%s1789_s0 + $0x1b0] sm:$0xff] }
  0x19   :  { %1129 = vmatmul.mubr.msk.f32.gmra.mxu1 %vm289_vm0, %v262_v21  ;;  %v103_v57 = vmul.f32 %v1208_v3, %v32_v45  ;;  %v266_v58 = vmax.f32 %v202_v42, 0.0  ;;  %v235_v59 = vmax.f32 %v171_v47, 0.0  ;;  %v173_v60 = vadd.f32 %v1213_v4, %v102_v49 }
  0x1a   :  { %1131 = vmatprep.mubr.msk.f32.mxu1 %vm289_vm0, %v263_v28  ;;  %v135_v61 = vmul.f32 %v1208_v3, %v64_v50  ;;  %v267_v63 = vmax.f32 %v203_v48, 0.0  ;;  %v205_v0 = vadd.f32 %v1213_v4, %v134_v51  ;;  %v104_v1 = vmul.f32 %v1208_v3, %v33_v52  ;;  %v40_v48 = vld [vmem:[%s1789_s0 + $0xb8] sm:$0xff] }
  0x1b   :  { %1084 = vmatmul.mubr.msk.f32.gmra.mxu0 %vm289_vm0, %v232_v33  ;;  %v136_v2 = vmul.f32 %v1208_v3, %v65_v53  ;;  %v236_v8 = vmax.f32 %v172_v55, 0.0  ;;  %v268_v9 = vmax.f32 %v204_v56, 0.0  ;;  %v174_v10 = vadd.f32 %v1213_v4, %v103_v57  ;;  %v72_v53 = vld [vmem:[%s1789_s0 + $0x1b8] sm:$0xff]  ;;  %v73_v55 = vld [vmem:[%s1789_s0 + $0x1c0] sm:$0xff] }
  0x1c   :  { %1086 = vmatprep.mubr.msk.f32.mxu0 %vm289_vm0, %v233_v41  ;;  %v105_v11 = vmul.f32 %v1208_v3, %v34_v62  ;;  %v237_v12 = vmax.f32 %v173_v60, 0.0  ;;  %v206_v13 = vadd.f32 %v1213_v4, %v135_v61  ;;  %v175_v14 = vadd.f32 %v1213_v4, %v104_v1  ;;  %v74_v1 = vld [vmem:[%s1789_s0 + $0x1c8] sm:$0xff] }
  0x1d   :  { %1132 = vmatmul.mubr.msk.f32.gmra.mxu1 %vm289_vm0, %v264_v36  ;;  %v137_v15 = vmul.f32 %v1208_v3, %v66_v5  ;;  %v269_v18 = vmax.f32 %v205_v0, 0.0  ;;  %v207_v19 = vadd.f32 %v1213_v4, %v136_v2  ;;  %v106_v20 = vmul.f32 %v1208_v3, %v35_v6  ;;  %v42_v0 = vld [vmem:[%s1789_s0 + $0xc8] sm:$0xff] }
  0x1e   :  { %1134 = vmatprep.mubr.msk.f32.mxu1 %vm289_vm0, %v265_v46  ;;  %v138_v21 = vmul.f32 %v1208_v3, %v67_v7  ;;  %v238_v24 = vmax.f32 %v174_v10, 0.0  ;;  %v176_v25 = vadd.f32 %v1213_v4, %v105_v11  ;;  %v107_v26 = vmul.f32 %v1208_v3, %v36_v16 }
  0x1f   :  { %1087 = vmatmul.mubr.msk.f32.gmra.mxu0 %vm289_vm0, %v234_v54  ;;  %v139_v27 = vmul.f32 %v1208_v3, %v68_v17  ;;  %v270_v28 = vmax.f32 %v206_v13, 0.0  ;;  %v239_v29 = vmax.f32 %v175_v14, 0.0  ;;  %v208_v30 = vadd.f32 %v1213_v4, %v137_v15  ;;  %v41_v54 = vld [vmem:[%s1789_s0 + $0xc0] sm:$0xff] }
  0x20   :  { %1089 = vmatprep.mubr.msk.f32.mxu0 %vm289_vm0, %v235_v59  ;;  %v108_v31 = vmul.f32 %v1208_v3, %v37_v22  ;;  %v271_v33 = vmax.f32 %v207_v19, 0.0  ;;  %v177_v34 = vadd.f32 %v1213_v4, %v106_v20  ;;  %v209_v35 = vadd.f32 %v1213_v4, %v138_v21 }
  0x21   :  { %1135 = vmatmul.mubr.msk.f32.gmra.mxu1 %vm289_vm0, %v266_v58  ;;  %v140_v36 = vmul.f32 %v1208_v3, %v69_v23  ;;  %v240_v40 = vmax.f32 %v176_v25, 0.0  ;;  %v178_v41 = vadd.f32 %v1213_v4, %v107_v26  ;;  %v210_v42 = vadd.f32 %v1213_v4, %v139_v27  ;;  %v76_v23 = vld [vmem:[%s1789_s0 + $0x1d8] sm:$0xff]  ;;  %v77_v25 = vld [vmem:[%s1789_s0 + $0x1e0] sm:$0xff] }
  0x22   :  { %1137 = vmatprep.mubr.msk.f32.mxu1 %vm289_vm0, %v267_v63  ;;  %v109_v43 = vmul.f32 %v1208_v3, %v38_v32  ;;  %v272_v44 = vmax.f32 %v208_v30, 0.0  ;;  %v179_v45 = vadd.f32 %v1213_v4, %v108_v31  ;;  %v141_v46 = vmul.f32 %v1208_v3, %v70_v37 }
  0x23   :  { %1090 = vmatmul.mubr.msk.f32.gmra.mxu0 %vm289_vm0, %v236_v8  ;;  %v110_v47 = vmul.f32 %v1208_v3, %v39_v38  ;;  %v241_v49 = vmax.f32 %v177_v34, 0.0  ;;  %v273_v50 = vmax.f32 %v209_v35, 0.0  ;;  %v211_v51 = vadd.f32 %v1213_v4, %v140_v36  ;;  %v43_v8 = vld [vmem:[%s1789_s0 + $0xd0] sm:$0xff]  ;;  %v46_v34 = vld [vmem:[%s1789_s0 + $0xe8] sm:$0xff] }
  0x24   :  { %1092 = vmatprep.mubr.msk.f32.mxu0 %vm289_vm0, %v237_v12  ;;  %v142_v52 = vmul.f32 %v1208_v3, %v71_v39  ;;  %v242_v56 = vmax.f32 %v178_v41, 0.0  ;;  %v274_v57 = vmax.f32 %v210_v42, 0.0  ;;  %v180_v58 = vadd.f32 %v1213_v4, %v109_v43  ;;  %v78_v39 = vld [vmem:[%s1789_s0 + $0x1e8] sm:$0xff]  ;;  %v79_v41 = vld [vmem:[%s1789_s0 + $0x1f0] sm:$0xff] }
  0x25   :  { %1138 = vmatmul.mubr.msk.f32.gmra.mxu1 %vm289_vm0, %v268_v9  ;;  %v111_v59 = vmul.f32 %v1208_v3, %v40_v48  ;;  %v243_v60 = vmax.f32 %v179_v45, 0.0  ;;  %v212_v61 = vadd.f32 %v1213_v4, %v141_v46  ;;  %v181_v62 = vadd.f32 %v1213_v4, %v110_v47  ;;  %v75_v9 = vld [vmem:[%s1789_s0 + $0x1d0] sm:$0xff] }
  0x26   :  { %1140 = vmatprep.mubr.msk.f32.mxu1 %vm289_vm0, %v269_v18  ;;  %v143_v63 = vmul.f32 %v1208_v3, %v72_v53  ;;  %v275_v2 = vmax.f32 %v211_v51, 0.0  ;;  %v213_v5 = vadd.f32 %v1213_v4, %v142_v52  ;;  %v112_v6 = vmul.f32 %v1208_v3, %v41_v54  ;;  %v44_v18 = vld [vmem:[%s1789_s0 + $0xd8] sm:$0xff] }
  0x27   :  { %1093 = vmatmul.mubr.msk.f32.gmra.mxu0 %vm289_vm0, %v238_v24  ;;  %v144_v7 = vmul.f32 %v1208_v3, %v73_v55  ;;  %v244_v10 = vmax.f32 %v180_v58, 0.0  ;;  %v182_v11 = vadd.f32 %v1213_v4, %v111_v59  ;;  %v113_v12 = vmul.f32 %v1208_v3, %v42_v0  ;;  %v45_v24 = vld [vmem:[%s1789_s0 + $0xe0] sm:$0xff]  ;;  %v48_v54 = vld [vmem:[%s1789_s0 + $0xf8] sm:$0xff] }
  0x28   :  { %1095 = vmatprep.mubr.msk.f32.mxu0 %vm289_vm0, %v239_v29  ;;  %v145_v13 = vmul.f32 %v1208_v3, %v74_v1  ;;  %v276_v14 = vmax.f32 %v212_v61, 0.0  ;;  %v245_v15 = vmax.f32 %v181_v62, 0.0  ;;  %v214_v16 = vadd.f32 %v1213_v4, %v143_v63  ;;  %v80_v55 = vld [vmem:[%s1789_s0 + $0x1f8] sm:$0xff] }
  0x29   :  { %1141 = vmatmul.mubr.msk.f32.gmra.mxu1 %vm289_vm0, %v270_v28  ;;  %v114_v17 = vmul.f32 %v1208_v3, %v43_v8  ;;  %v277_v19 = vmax.f32 %v213_v5, 0.0  ;;  %v183_v20 = vadd.f32 %v1213_v4, %v112_v6  ;;  %v215_v21 = vadd.f32 %v1213_v4, %v144_v7 }
  0x2a   :  { %1143 = vmatprep.mubr.msk.f32.mxu1 %vm289_vm0, %v271_v33  ;;  %v146_v22 = vmul.f32 %v1208_v3, %v75_v9  ;;  %v246_v26 = vmax.f32 %v182_v11, 0.0  ;;  %v184_v27 = vadd.f32 %v1213_v4, %v113_v12  ;;  %v216_v28 = vadd.f32 %v1213_v4, %v145_v13 }
  0x2b   :  { %1096 = vmatmul.mubr.msk.f32.gmra.mxu0 %vm289_vm0, %v240_v40  ;;  %v115_v29 = vmul.f32 %v1208_v3, %v44_v18  ;;  %v278_v30 = vmax.f32 %v214_v16, 0.0  ;;  %v185_v31 = vadd.f32 %v1213_v4, %v114_v17  ;;  %v147_v32 = vmul.f32 %v1208_v3, %v76_v23  ;;  %v47_v40 = vld [vmem:[%s1789_s0 + $0xf0] sm:$0xff] }
  0x2c   :  { %1098 = vmatprep.mubr.msk.f32.mxu0 %vm289_vm0, %v241_v49  ;;  %v116_v33 = vmul.f32 %v1208_v3, %v45_v24  ;;  %v247_v35 = vmax.f32 %v183_v20, 0.0  ;;  %v279_v36 = vmax.f32 %v215_v21, 0.0  ;;  %v217_v37 = vadd.f32 %v1213_v4, %v146_v22 }
  0x2d   :  { %1144 = vmatmul.mubr.msk.f32.gmra.mxu1 %vm289_vm0, %v272_v44  ;;  %v148_v38 = vmul.f32 %v1208_v3, %v77_v25  ;;  %v248_v42 = vmax.f32 %v184_v27, 0.0  ;;  %v280_v43 = vmax.f32 %v216_v28, 0.0  ;;  %v186_v44 = vadd.f32 %v1213_v4, %v115_v29 }
  0x2e   :  { %1146 = vmatprep.mubr.msk.f32.mxu1 %vm289_vm0, %v273_v50  ;;  %v117_v45 = vmul.f32 %v1208_v3, %v46_v34  ;;  %v249_v46 = vmax.f32 %v185_v31, 0.0  ;;  %v218_v47 = vadd.f32 %v1213_v4, %v147_v32  ;;  %v187_v48 = vadd.f32 %v1213_v4, %v116_v33 }
  0x2f   :  { %1099 = vmatmul.mubr.msk.f32.gmra.mxu0 %vm289_vm0, %v242_v56  ;;  %v149_v49 = vmul.f32 %v1208_v3, %v78_v39  ;;  %v281_v50 = vmax.f32 %v217_v37, 0.0  ;;  %v219_v51 = vadd.f32 %v1213_v4, %v148_v38  ;;  %v118_v52 = vmul.f32 %v1208_v3, %v47_v40 }
  0x30   :  { %1101 = vmatprep.mubr.msk.f32.mxu0 %vm289_vm0, %v243_v60  ;;  %v150_v53 = vmul.f32 %v1208_v3, %v79_v41  ;;  %v250_v56 = vmax.f32 %v186_v44, 0.0  ;;  %v282_v58 = vmax.f32 %v218_v47, 0.0  ;;  %v119_v60 = vmul.f32 %v1208_v3, %v48_v54 }
  0x31   :  { %1147 = vmatmul.mubr.msk.f32.gmra.mxu1 %vm289_vm0, %v274_v57  ;;  %v188_v57 = vadd.f32 %v1213_v4, %v117_v45  ;;  %v220_v59 = vadd.f32 %v1213_v4, %v149_v49  ;;  %v151_v61 = vmul.f32 %v1208_v3, %v80_v55  ;;  %v251_v62 = vmax.f32 %v187_v48, 0.0 }
  0x32   :  { %1149 = vmatprep.mubr.msk.f32.mxu1 %vm289_vm0, %v275_v2  ;;  %v283_v63 = vmax.f32 %v219_v51, 0.0  ;;  %v189_v0 = vadd.f32 %v1213_v4, %v118_v52  ;;  %v221_v1 = vadd.f32 %v1213_v4, %v150_v53  ;;  %v190_v6 = vadd.f32 %v1213_v4, %v119_v60 }
  0x33   :  { %1102 = vmatmul.mubr.msk.f32.gmra.mxu0 %vm289_vm0, %v244_v10  ;;  %v252_v2 = vmax.f32 %v188_v57, 0.0  ;;  %v284_v5 = vmax.f32 %v220_v59, 0.0  ;;  %v222_v3 = vadd.f32 %v1213_v4, %v151_v61 }
  0x34   :  { %1104 = vmatprep.mubr.msk.f32.mxu0 %vm289_vm0, %v245_v15  ;;  %v253_v7 = vmax.f32 %v189_v0, 0.0  ;;  %v285_v8 = vmax.f32 %v221_v1, 0.0  ;;  %v254_v9 = vmax.f32 %v190_v6, 0.0 }
  0x35   :  { %1150 = vmatmul.mubr.msk.f32.gmra.mxu1 %vm289_vm0, %v276_v14  ;;  %v286_v10 = vmax.f32 %v222_v3, 0.0 }
  0x36   :  { %1152 = vmatprep.mubr.msk.f32.mxu1 %vm289_vm0, %v277_v19 }
  0x37   :  { %1105 = vmatmul.mubr.msk.f32.gmra.mxu0 %vm289_vm0, %v246_v26 }
  0x38   :  { %1107 = vmatprep.mubr.msk.f32.mxu0 %vm289_vm0, %v247_v35 }
  0x39   :  { %1153 = vmatmul.mubr.msk.f32.gmra.mxu1 %vm289_vm0, %v278_v30 }
  0x3a   :  { %1155 = vmatprep.mubr.msk.f32.mxu1 %vm289_vm0, %v279_v36 }
  0x3b   :  { %1108 = vmatmul.mubr.msk.f32.gmra.mxu0 %vm289_vm0, %v248_v42 }
  0x3c   :  { %1110 = vmatprep.mubr.msk.f32.mxu0 %vm289_vm0, %v249_v46 }
  0x3d   :  { %1156 = vmatmul.mubr.msk.f32.gmra.mxu1 %vm289_vm0, %v280_v43 }
  0x3e   :  { %1158 = vmatprep.mubr.msk.f32.mxu1 %vm289_vm0, %v281_v50 }
  0x3f   :  { %1111 = vmatmul.mubr.msk.f32.gmra.mxu0 %vm289_vm0, %v250_v56 }
  0x40   :  { %1113 = vmatprep.mubr.msk.f32.mxu0 %vm289_vm0, %v251_v62 }
  0x41   :  { %1159 = vmatmul.mubr.msk.f32.gmra.mxu1 %vm289_vm0, %v282_v58 }
  0x42   :  { %1161 = vmatprep.mubr.msk.f32.mxu1 %vm289_vm0, %v283_v63 }
  0x43   :  { %1114 = vmatmul.mubr.msk.f32.gmra.mxu0 %vm289_vm0, %v252_v2 }
  0x44   :  { %1116 = vmatprep.mubr.msk.f32.mxu0 %vm289_vm0, %v253_v7 }
  0x45   :  { %1162 = vmatmul.mubr.msk.f32.gmra.mxu1 %vm289_vm0, %v284_v5 }
  0x46   :  { %1164 = vmatprep.mubr.msk.f32.mxu1 %vm289_vm0, %v285_v8 }
  0x47   :  { %1117 = vmatmul.mubr.msk.f32.gmra.mxu0 %vm289_vm0, %v254_v9 }
  0x49   :  { %1165 = vmatmul.mubr.msk.f32.gmra.mxu1 %vm289_vm0, %v286_v10 }
  0xcb   :  { %v1073_v4 = vpop.f32.mrf.mxu0 }
  0xcc   :  { %868 = vst [vmem:[%s1792_s4 + $0x8] sm:$0xff] %v1073_v4 }
  0xcd   :  { %v1121_v11 = vpop.f32.mrf.mxu1  ;;  %v548_v12 = vpop.f32.mrf.mxu0 }
  0xce   :  { %900 = vst [vmem:[%s1792_s4 + $0x108] sm:$0xff] %v1121_v11  ;;  %867 = vst [vmem:[%s1792_s4] sm:$0xff] %v548_v12 }
  0xcf   :  { %v708_v13 = vpop.f32.mrf.mxu1  ;;  %v1076_v14 = vpop.f32.mrf.mxu0 }
  0xd0   :  { %899 = vst [vmem:[%s1792_s4 + $0x100] sm:$0xff] %v708_v13  ;;  %870 = vst [vmem:[%s1792_s4 + $0x18] sm:$0xff] %v1076_v14 }
  0xd1   :  { %v1124_v15 = vpop.f32.mrf.mxu1  ;;  %v558_v16 = vpop.f32.mrf.mxu0 }
  0xd2   :  { %902 = vst [vmem:[%s1792_s4 + $0x118] sm:$0xff] %v1124_v15  ;;  %869 = vst [vmem:[%s1792_s4 + $0x10] sm:$0xff] %v558_v16 }
  0xd3   :  { %v718_v17 = vpop.f32.mrf.mxu1  ;;  %v1079_v18 = vpop.f32.mrf.mxu0 }
  0xd4   :  { %901 = vst [vmem:[%s1792_s4 + $0x110] sm:$0xff] %v718_v17  ;;  %872 = vst [vmem:[%s1792_s4 + $0x28] sm:$0xff] %v1079_v18 }
  0xd5   :  { %v1127_v19 = vpop.f32.mrf.mxu1  ;;  %v568_v20 = vpop.f32.mrf.mxu0 }
  0xd6   :  { %904 = vst [vmem:[%s1792_s4 + $0x128] sm:$0xff] %v1127_v19  ;;  %871 = vst [vmem:[%s1792_s4 + $0x20] sm:$0xff] %v568_v20 }
  0xd7   :  { %v728_v21 = vpop.f32.mrf.mxu1  ;;  %v1082_v22 = vpop.f32.mrf.mxu0 }
  0xd8   :  { %903 = vst [vmem:[%s1792_s4 + $0x120] sm:$0xff] %v728_v21  ;;  %874 = vst [vmem:[%s1792_s4 + $0x38] sm:$0xff] %v1082_v22 }
  0xd9   :  { %v1130_v23 = vpop.f32.mrf.mxu1  ;;  %v578_v24 = vpop.f32.mrf.mxu0 }
  0xda   :  { %906 = vst [vmem:[%s1792_s4 + $0x138] sm:$0xff] %v1130_v23  ;;  %873 = vst [vmem:[%s1792_s4 + $0x30] sm:$0xff] %v578_v24 }
  0xdb   :  { %v738_v25 = vpop.f32.mrf.mxu1  ;;  %v1085_v26 = vpop.f32.mrf.mxu0 }
  0xdc   :  { %905 = vst [vmem:[%s1792_s4 + $0x130] sm:$0xff] %v738_v25  ;;  %876 = vst [vmem:[%s1792_s4 + $0x48] sm:$0xff] %v1085_v26 }
  0xdd   :  { %v1133_v27 = vpop.f32.mrf.mxu1  ;;  %v588_v28 = vpop.f32.mrf.mxu0 }
  0xde   :  { %908 = vst [vmem:[%s1792_s4 + $0x148] sm:$0xff] %v1133_v27  ;;  %875 = vst [vmem:[%s1792_s4 + $0x40] sm:$0xff] %v588_v28 }
  0xdf   :  { %v748_v29 = vpop.f32.mrf.mxu1  ;;  %v1088_v30 = vpop.f32.mrf.mxu0 }
  0xe0   :  { %907 = vst [vmem:[%s1792_s4 + $0x140] sm:$0xff] %v748_v29  ;;  %878 = vst [vmem:[%s1792_s4 + $0x58] sm:$0xff] %v1088_v30 }
  0xe1   :  { %v1136_v31 = vpop.f32.mrf.mxu1  ;;  %v598_v32 = vpop.f32.mrf.mxu0 }
  0xe2   :  { %910 = vst [vmem:[%s1792_s4 + $0x158] sm:$0xff] %v1136_v31  ;;  %877 = vst [vmem:[%s1792_s4 + $0x50] sm:$0xff] %v598_v32 }
  0xe3   :  { %v758_v33 = vpop.f32.mrf.mxu1  ;;  %v1091_v34 = vpop.f32.mrf.mxu0 }
  0xe4   :  { %909 = vst [vmem:[%s1792_s4 + $0x150] sm:$0xff] %v758_v33  ;;  %880 = vst [vmem:[%s1792_s4 + $0x68] sm:$0xff] %v1091_v34 }
  0xe5   :  { %v1139_v35 = vpop.f32.mrf.mxu1  ;;  %v608_v36 = vpop.f32.mrf.mxu0 }
  0xe6   :  { %912 = vst [vmem:[%s1792_s4 + $0x168] sm:$0xff] %v1139_v35  ;;  %879 = vst [vmem:[%s1792_s4 + $0x60] sm:$0xff] %v608_v36 }
  0xe7   :  { %v768_v37 = vpop.f32.mrf.mxu1  ;;  %v1094_v38 = vpop.f32.mrf.mxu0 }
  0xe8   :  { %911 = vst [vmem:[%s1792_s4 + $0x160] sm:$0xff] %v768_v37  ;;  %882 = vst [vmem:[%s1792_s4 + $0x78] sm:$0xff] %v1094_v38 }
  0xe9   :  { %v1142_v39 = vpop.f32.mrf.mxu1  ;;  %v618_v40 = vpop.f32.mrf.mxu0 }
  0xea   :  { %914 = vst [vmem:[%s1792_s4 + $0x178] sm:$0xff] %v1142_v39  ;;  %881 = vst [vmem:[%s1792_s4 + $0x70] sm:$0xff] %v618_v40 }
  0xeb   :  { %v778_v41 = vpop.f32.mrf.mxu1  ;;  %v1097_v42 = vpop.f32.mrf.mxu0 }
  0xec   :  { %913 = vst [vmem:[%s1792_s4 + $0x170] sm:$0xff] %v778_v41  ;;  %884 = vst [vmem:[%s1792_s4 + $0x88] sm:$0xff] %v1097_v42 }
  0xed   :  { %v1145_v43 = vpop.f32.mrf.mxu1  ;;  %v628_v44 = vpop.f32.mrf.mxu0 }
  0xee   :  { %916 = vst [vmem:[%s1792_s4 + $0x188] sm:$0xff] %v1145_v43  ;;  %883 = vst [vmem:[%s1792_s4 + $0x80] sm:$0xff] %v628_v44 }
  0xef   :  { %v788_v45 = vpop.f32.mrf.mxu1  ;;  %v1100_v46 = vpop.f32.mrf.mxu0 }
  0xf0   :  { %915 = vst [vmem:[%s1792_s4 + $0x180] sm:$0xff] %v788_v45  ;;  %886 = vst [vmem:[%s1792_s4 + $0x98] sm:$0xff] %v1100_v46 }
  0xf1   :  { %v1148_v47 = vpop.f32.mrf.mxu1  ;;  %v638_v48 = vpop.f32.mrf.mxu0 }
  0xf2   :  { %918 = vst [vmem:[%s1792_s4 + $0x198] sm:$0xff] %v1148_v47  ;;  %885 = vst [vmem:[%s1792_s4 + $0x90] sm:$0xff] %v638_v48 }
  0xf3   :  { %v798_v49 = vpop.f32.mrf.mxu1  ;;  %v1103_v50 = vpop.f32.mrf.mxu0 }
  0xf4   :  { %917 = vst [vmem:[%s1792_s4 + $0x190] sm:$0xff] %v798_v49  ;;  %888 = vst [vmem:[%s1792_s4 + $0xa8] sm:$0xff] %v1103_v50 }
  0xf5   :  { %v1151_v51 = vpop.f32.mrf.mxu1  ;;  %v648_v52 = vpop.f32.mrf.mxu0 }
  0xf6   :  { %920 = vst [vmem:[%s1792_s4 + $0x1a8] sm:$0xff] %v1151_v51  ;;  %887 = vst [vmem:[%s1792_s4 + $0xa0] sm:$0xff] %v648_v52 }
  0xf7   :  { %v808_v53 = vpop.f32.mrf.mxu1  ;;  %v1106_v54 = vpop.f32.mrf.mxu0 }
  0xf8   :  { %919 = vst [vmem:[%s1792_s4 + $0x1a0] sm:$0xff] %v808_v53  ;;  %890 = vst [vmem:[%s1792_s4 + $0xb8] sm:$0xff] %v1106_v54 }
  0xf9   :  { %v1154_v55 = vpop.f32.mrf.mxu1  ;;  %v658_v56 = vpop.f32.mrf.mxu0 }
  0xfa   :  { %922 = vst [vmem:[%s1792_s4 + $0x1b8] sm:$0xff] %v1154_v55  ;;  %889 = vst [vmem:[%s1792_s4 + $0xb0] sm:$0xff] %v658_v56 }
  0xfb   :  { %v818_v57 = vpop.f32.mrf.mxu1  ;;  %v1109_v58 = vpop.f32.mrf.mxu0 }
  0xfc   :  { %921 = vst [vmem:[%s1792_s4 + $0x1b0] sm:$0xff] %v818_v57  ;;  %892 = vst [vmem:[%s1792_s4 + $0xc8] sm:$0xff] %v1109_v58 }
  0xfd   :  { %v1157_v59 = vpop.f32.mrf.mxu1  ;;  %v668_v60 = vpop.f32.mrf.mxu0 }
  0xfe   :  { %924 = vst [vmem:[%s1792_s4 + $0x1c8] sm:$0xff] %v1157_v59  ;;  %891 = vst [vmem:[%s1792_s4 + $0xc0] sm:$0xff] %v668_v60 }
  0xff   :  { %v828_v61 = vpop.f32.mrf.mxu1  ;;  %v1112_v62 = vpop.f32.mrf.mxu0 }
 0x100   :  { %923 = vst [vmem:[%s1792_s4 + $0x1c0] sm:$0xff] %v828_v61  ;;  %894 = vst [vmem:[%s1792_s4 + $0xd8] sm:$0xff] %v1112_v62 }
 0x101   :  { %v1160_v63 = vpop.f32.mrf.mxu1  ;;  %v678_v0 = vpop.f32.mrf.mxu0 }
 0x102   :  { %926 = vst [vmem:[%s1792_s4 + $0x1d8] sm:$0xff] %v1160_v63  ;;  %893 = vst [vmem:[%s1792_s4 + $0xd0] sm:$0xff] %v678_v0 }
 0x103   :  { %v838_v1 = vpop.f32.mrf.mxu1  ;;  %v1115_v2 = vpop.f32.mrf.mxu0 }
 0x104   :  { %925 = vst [vmem:[%s1792_s4 + $0x1d0] sm:$0xff] %v838_v1  ;;  %896 = vst [vmem:[%s1792_s4 + $0xe8] sm:$0xff] %v1115_v2 }
 0x105   :  { %v1163_v5 = vpop.f32.mrf.mxu1  ;;  %v688_v6 = vpop.f32.mrf.mxu0 }
 0x106   :  { %928 = vst [vmem:[%s1792_s4 + $0x1e8] sm:$0xff] %v1163_v5  ;;  %895 = vst [vmem:[%s1792_s4 + $0xe0] sm:$0xff] %v688_v6 }
 0x107   :  { %v848_v3 = vpop.f32.mrf.mxu1  ;;  %v1118_v7 = vpop.f32.mrf.mxu0 }
 0x108   :  { %927 = vst [vmem:[%s1792_s4 + $0x1e0] sm:$0xff] %v848_v3  ;;  %898 = vst [vmem:[%s1792_s4 + $0xf8] sm:$0xff] %v1118_v7 }
 0x109   :  { %v1166_v8 = vpop.f32.mrf.mxu1  ;;  %v698_v9 = vpop.f32.mrf.mxu0 }
 0x10a   :  { %930 = vst [vmem:[%s1792_s4 + $0x1f8] sm:$0xff] %v1166_v8  ;;  %897 = vst [vmem:[%s1792_s4 + $0xf0] sm:$0xff] %v698_v9 }
 0x10b   :  { %v858_v10 = vpop.f32.mrf.mxu1 }
 0x10c   :  { %929 = vst [vmem:[%s1792_s4 + $0x1f0] sm:$0xff] %v858_v10 }

// kernel: generator_forward.17
= control target key start
LH: loop header
LB: loop body
LE: loop exit
PB: predicated region body
PF: predicated region fallthrough
CT: control target
= control target key end

     0   :  { %s614_s9 = smov 0   ;;  %s1132_s0 = inlined_call_operand.vmem [shape: f32[2048,8], index: 0, kind: input, shape index: {}]   ;;  %s1133_s1 = inlined_call_operand.vmem [shape: f32[1,8], index: 1, kind: output, shape index: {0}]   ;;  %s1134_s2 = inlined_call_operand.vmem [shape: f32[1,8], index: 2, kind: output, shape index: {1}]  }
   0x1 LB: > { %s572_s10 = sadd.s32 4294967295, %s596_s9   ;;  %p575_p0 = scmp.ge.s32.totalorder %s596_s9, 1  ;;  %s596_s9 = sphi %s614_s9, %s13_s9  }
   0x2   : > { %p106_p1 = scmp.lt.s32.totalorder %s596_s9, 5 }
   0x4   : > { %p107_p2 = pnand %p575_p0, %p106_p1 }
   0x5   : > { %s576_s11 = sshll.u32 (!%p107_p2), %s572_s10, 6  ;;  %p578_p4 = scmp.ne.s32.totalorder (!%p107_p2), %s572_s10, 0 }
   0x6   : > { %110 = sbr.rel (%p107_p2) target bundleno = 182 (0xb6), region = 24  ;;  %p124_p3 = scmp.lt.s32.totalorder (!%p107_p2), %s576_s11, 255 }
   0xb   : > { %s1136_s11 = smov (!%p124_p3, %s576_s11), 255  ;;  %132 = sbr.rel (%p578_p4) target bundleno = 18 (0x12), region = 28 }
   0xc   : > { %s577_s12 = sshll.u32 %s1136_s11, 3 }
   0xd   : > { %s625_s15 = scalar_lea.vmem %s1132_s0, %s577_s12 }
  0x10   : > { %vm133_vm0 = vcmask 57344   ;;  %v598_v0 = vmov 0.0  }
  0x11   : > { %134 = vst.msk [vmem:[%s1133_s1] sm:$0x1] %vm133_vm0, %v598_v0  ;;  %135 = vst.msk [vmem:[%s1134_s2] sm:$0x1] %vm133_vm0, %v598_v0 }
  0x12 PF: > { %v136_v1 = vld [vmem:[%s625_s15] sm:$0xff]  ;;  %v137_v2 = vld [vmem:[%s625_s15 + $0x8] sm:$0xff]  ;;  %v138_v3 = vld [vmem:[%s625_s15 + $0x10] sm:$0xff]  ;;  %vm201_vm1 = vcmask 64512   ;;  %vm336_vm2 = vcmask 57344  }
  0x13   : > { %v202_v4 = vsel %vm201_vm1, %v136_v1, 0.0  ;;  %v203_v5 = vsel %vm201_vm1, %v137_v2, 0.0  ;;  %v205_v6 = vsel %vm201_vm1, %v138_v3, 0.0  ;;  %v139_v7 = vld [vmem:[%s625_s15 + $0x18] sm:$0xff]  ;;  %v140_v10 = vld [vmem:[%s625_s15 + $0x20] sm:$0xff]  ;;  %v141_v13 = vld [vmem:[%s625_s15 + $0x28] sm:$0xff]  ;;  %v339_v55 = vmul.f32 %v136_v1, %v136_v1 }
  0x14   : > { %v204_v8 = vadd.f32 %v203_v5, %v202_v4  ;;  %v207_v9 = vsel %vm201_vm1, %v139_v7, 0.0  ;;  %v209_v12 = vsel %vm201_vm1, %v140_v10, 0.0  ;;  %v211_v15 = vsel %vm201_vm1, %v141_v13, 0.0  ;;  %v646_v16 = vld [vmem:[%s625_s15 + $0x30] sm:$0xff]  ;;  %v651_v19 = vld [vmem:[%s625_s15 + $0x38] sm:$0xff]  ;;  %v656_v22 = vld [vmem:[%s625_s15 + $0x40] sm:$0xff] }
  0x15   : > { %v213_v18 = vsel %vm201_vm1, %v646_v16, 0.0  ;;  %v215_v21 = vsel %vm201_vm1, %v651_v19, 0.0  ;;  %v217_v24 = vsel %vm201_vm1, %v656_v22, 0.0  ;;  %v661_v25 = vld [vmem:[%s625_s15 + $0x48] sm:$0xff]  ;;  %v666_v28 = vld [vmem:[%s625_s15 + $0x50] sm:$0xff]  ;;  %v671_v31 = vld [vmem:[%s625_s15 + $0x58] sm:$0xff]  ;;  %v340_v58 = vmul.f32 %v137_v2, %v137_v2 }
  0x16   : > { %v206_v11 = vadd.f32 %v205_v6, %v204_v8  ;;  %v219_v27 = vsel %vm201_vm1, %v661_v25, 0.0  ;;  %v221_v30 = vsel %vm201_vm1, %v666_v28, 0.0  ;;  %v223_v33 = vsel %vm201_vm1, %v671_v31, 0.0  ;;  %v676_v34 = vld [vmem:[%s625_s15 + $0x60] sm:$0xff]  ;;  %v681_v37 = vld [vmem:[%s625_s15 + $0x68] sm:$0xff]  ;;  %v686_v40 = vld [vmem:[%s625_s15 + $0x70] sm:$0xff] }
  0x17   : > { %v225_v36 = vsel %vm201_vm1, %v676_v34, 0.0  ;;  %v227_v39 = vsel %vm201_vm1, %v681_v37, 0.0  ;;  %v229_v42 = vsel %vm201_vm1, %v686_v40, 0.0  ;;  %v691_v43 = vld [vmem:[%s625_s15 + $0x78] sm:$0xff]  ;;  %v696_v46 = vld [vmem:[%s625_s15 + $0x80] sm:$0xff]  ;;  %v701_v49 = vld [vmem:[%s625_s15 + $0x88] sm:$0xff]  ;;  %v341_v59 = vmul.f32 %v138_v3, %v138_v3 }
  0x18   : > { %v208_v14 = vadd.f32 %v207_v9, %v206_v11  ;;  %v231_v45 = vsel %vm201_vm1, %v691_v43, 0.0  ;;  %v233_v48 = vsel %vm201_vm1, %v696_v46, 0.0  ;;  %v235_v51 = vsel %vm201_vm1, %v701_v49, 0.0  ;;  %v706_v52 = vld [vmem:[%s625_s15 + $0x90] sm:$0xff]  ;;  %v711_v56 = vld [vmem:[%s625_s15 + $0x98] sm:$0xff]  ;;  %v716_v61 = vld [vmem:[%s625_s15 + $0xa0] sm:$0xff] }
  0x19   : > { %v237_v54 = vsel %vm201_vm1, %v706_v52, 0.0  ;;  %v239_v60 = vsel %vm201_vm1, %v711_v56, 0.0  ;;  %v342_v63 = vmul.f32 %v139_v7, %v139_v7  ;;  %v241_v0 = vsel %vm201_vm1, %v716_v61, 0.0  ;;  %v722_v1 = vld [vmem:[%s625_s15 + $0xa8] sm:$0xff]  ;;  %v729_v7 = vld [vmem:[%s625_s15 + $0xb0] sm:$0xff] }
  0x1a   : > { %v210_v17 = vadd.f32 %v209_v12, %v208_v14  ;;  %v403_v4 = vsel %vm201_vm1, %v339_v55, 0.0  ;;  %v343_v6 = vmul.f32 %v140_v10, %v140_v10  ;;  %v404_v2 = vsel %vm201_vm1, %v340_v58, 0.0 }
  0x1b   : > { %v406_v3 = vsel %vm201_vm1, %v341_v59, 0.0  ;;  %v243_v8 = vsel %vm201_vm1, %v722_v1, 0.0  ;;  %v405_v9 = vadd.f32 %v404_v2, %v403_v4  ;;  %v344_v12 = vmul.f32 %v141_v13, %v141_v13 }
  0x1c   : > { %v212_v20 = vadd.f32 %v211_v15, %v210_v17  ;;  %v408_v14 = vsel %vm201_vm1, %v342_v63, 0.0  ;;  %v245_v15 = vsel %vm201_vm1, %v729_v7, 0.0  ;;  %v735_v17 = vld [vmem:[%s625_s15 + $0xb8] sm:$0xff]  ;;  %v351_v63 = vmul.f32 %v676_v34, %v676_v34 }
  0x1d   : > { %v407_v10 = vadd.f32 %v406_v3, %v405_v9  ;;  %v352_v2 = vmul.f32 %v681_v37, %v681_v37  ;;  %v799_v9 = vld [vmem:[%s625_s15 + $0xf8] sm:$0xff] }
  0x1e   : > { %v214_v23 = vadd.f32 %v213_v18, %v212_v20  ;;  %v345_v20 = vmul.f32 %v646_v16, %v646_v16 }
  0x1f   : > { %v409_v13 = vadd.f32 %v408_v14, %v407_v10  ;;  %v426_v14 = vsel %vm201_vm1, %v351_v63, 0.0  ;;  %v807_v10 = vld [vmem:[%s625_s15 + $0x100] sm:$0xff]  ;;  %v360_v63 = vmul.f32 %v722_v1, %v722_v1 }
  0x20   : > { %v216_v26 = vadd.f32 %v215_v21, %v214_v23  ;;  %v410_v21 = vsel %vm201_vm1, %v343_v6, 0.0  ;;  %v247_v23 = vsel %vm201_vm1, %v735_v17, 0.0 }
  0x21   : > { %v411_v16 = vadd.f32 %v410_v21, %v409_v13  ;;  %v428_v21 = vsel %vm201_vm1, %v352_v2, 0.0  ;;  %v815_v13 = vld [vmem:[%s625_s15 + $0x108] sm:$0xff]  ;;  %v361_v2 = vmul.f32 %v729_v7, %v729_v7 }
  0x22   : > { %v218_v29 = vadd.f32 %v217_v24, %v216_v26  ;;  %v743_v24 = vld [vmem:[%s625_s15 + $0xc0] sm:$0xff] }
  0x24   : > { %v220_v32 = vadd.f32 %v219_v27, %v218_v29  ;;  %v346_v27 = vmul.f32 %v651_v19, %v651_v19  ;;  %v412_v29 = vsel %vm201_vm1, %v344_v12, 0.0  ;;  %v353_v12 = vmul.f32 %v686_v40, %v686_v40 }
  0x25   : > { %v413_v19 = vadd.f32 %v412_v29, %v411_v16  ;;  %v823_v16 = vld [vmem:[%s625_s15 + $0x110] sm:$0xff] }
  0x26   : > { %v222_v35 = vadd.f32 %v221_v30, %v220_v32  ;;  %v249_v30 = vsel %vm201_vm1, %v743_v24, 0.0  ;;  %v751_v32 = vld [vmem:[%s625_s15 + $0xc8] sm:$0xff]  ;;  %v430_v29 = vsel %vm201_vm1, %v353_v12, 0.0  ;;  %v362_v12 = vmul.f32 %v735_v17, %v735_v17 }
  0x28   : > { %v224_v38 = vadd.f32 %v223_v33, %v222_v35  ;;  %v347_v35 = vmul.f32 %v656_v22, %v656_v22 }
  0x2a   : > { %v226_v41 = vadd.f32 %v225_v36, %v224_v38  ;;  %v414_v36 = vsel %vm201_vm1, %v345_v20, 0.0  ;;  %v251_v38 = vsel %vm201_vm1, %v751_v32, 0.0  ;;  %v354_v20 = vmul.f32 %v691_v43, %v691_v43 }
  0x2b   : > { %v415_v22 = vadd.f32 %v414_v36, %v413_v19  ;;  %v831_v19 = vld [vmem:[%s625_s15 + $0x118] sm:$0xff] }
  0x2c   : > { %v228_v44 = vadd.f32 %v227_v39, %v226_v41  ;;  %v759_v39 = vld [vmem:[%s625_s15 + $0xd0] sm:$0xff]  ;;  %v432_v36 = vsel %vm201_vm1, %v354_v20, 0.0  ;;  %v363_v20 = vmul.f32 %v743_v24, %v743_v24 }
  0x2e   : > { %v230_v47 = vadd.f32 %v229_v42, %v228_v44  ;;  %v348_v42 = vmul.f32 %v661_v25, %v661_v25  ;;  %v416_v44 = vsel %vm201_vm1, %v346_v27, 0.0  ;;  %v355_v27 = vmul.f32 %v696_v46, %v696_v46 }
  0x2f   : > { %v417_v25 = vadd.f32 %v416_v44, %v415_v22  ;;  %v839_v22 = vld [vmem:[%s625_s15 + $0x120] sm:$0xff] }
  0x30   : > { %v232_v50 = vadd.f32 %v231_v45, %v230_v47  ;;  %v253_v45 = vsel %vm201_vm1, %v759_v39, 0.0  ;;  %v767_v47 = vld [vmem:[%s625_s15 + $0xd8] sm:$0xff]  ;;  %v420_v58 = vsel %vm201_vm1, %v348_v42, 0.0  ;;  %v357_v42 = vmul.f32 %v706_v52, %v706_v52 }
  0x31   : > { %v434_v44 = vsel %vm201_vm1, %v355_v27, 0.0  ;;  %v364_v27 = vmul.f32 %v751_v32, %v751_v32 }
  0x32   : > { %v234_v53 = vadd.f32 %v233_v48, %v232_v50  ;;  %v349_v50 = vmul.f32 %v666_v28, %v666_v28 }
  0x34   : > { %v236_v57 = vadd.f32 %v235_v51, %v234_v53  ;;  %v418_v51 = vsel %vm201_vm1, %v347_v35, 0.0  ;;  %v255_v53 = vsel %vm201_vm1, %v767_v47, 0.0  ;;  %v356_v35 = vmul.f32 %v701_v49, %v701_v49 }
  0x35   : > { %v419_v28 = vadd.f32 %v418_v51, %v417_v25  ;;  %v847_v25 = vld [vmem:[%s625_s15 + $0x128] sm:$0xff] }
  0x36   : > { %v238_v62 = vadd.f32 %v237_v54, %v236_v57  ;;  %v775_v54 = vld [vmem:[%s625_s15 + $0xe0] sm:$0xff]  ;;  %v350_v57 = vmul.f32 %v671_v31, %v671_v31  ;;  %v436_v51 = vsel %vm201_vm1, %v356_v35, 0.0  ;;  %v365_v35 = vmul.f32 %v759_v39, %v759_v39 }
  0x37   : > { %v257_v59 = vsel %vm201_vm1, %v775_v54, 0.0  ;;  %v421_v31 = vadd.f32 %v420_v58, %v419_v28  ;;  %v438_v58 = vsel %vm201_vm1, %v357_v42, 0.0  ;;  %v855_v28 = vld [vmem:[%s625_s15 + $0x130] sm:$0xff]  ;;  %v366_v42 = vmul.f32 %v767_v47, %v767_v47 }
  0x38   : > { %v240_v5 = vadd.f32 %v239_v60, %v238_v62  ;;  %v783_v60 = vld [vmem:[%s625_s15 + $0xe8] sm:$0xff]  ;;  %v424_v3 = vsel %vm201_vm1, %v350_v57, 0.0  ;;  %v359_v57 = vmul.f32 %v716_v61, %v716_v61 }
  0x39   : > { %v259_v4 = vsel %vm201_vm1, %v783_v60, 0.0 }
  0x3a   : > { %v242_v11 = vadd.f32 %v241_v0, %v240_v5  ;;  %v422_v0 = vsel %vm201_vm1, %v349_v50, 0.0  ;;  %v791_v5 = vld [vmem:[%s625_s15 + $0xf0] sm:$0xff]  ;;  %v358_v50 = vmul.f32 %v711_v56, %v711_v56 }
  0x3b   : > { %v423_v34 = vadd.f32 %v422_v0, %v421_v31  ;;  %v863_v31 = vld [vmem:[%s625_s15 + $0x138] sm:$0xff] }
  0x3c   : > { %v244_v18 = vadd.f32 %v243_v8, %v242_v11  ;;  %v261_v8 = vsel %vm201_vm1, %v791_v5, 0.0  ;;  %v440_v0 = vsel %vm201_vm1, %v358_v50, 0.0  ;;  %v367_v50 = vmul.f32 %v775_v54, %v775_v54 }
  0x3d   : > { %v425_v37 = vadd.f32 %v424_v3, %v423_v34  ;;  %v442_v3 = vsel %vm201_vm1, %v359_v57, 0.0  ;;  %v871_v34 = vld [vmem:[%s625_s15 + $0x140] sm:$0xff]  ;;  %v368_v57 = vmul.f32 %v783_v60, %v783_v60 }
  0x3e   : > { %v246_v26 = vadd.f32 %v245_v15, %v244_v18  ;;  %v263_v15 = vsel %vm201_vm1, %v799_v9, 0.0 }
  0x3f   : > { %v427_v40 = vadd.f32 %v426_v14, %v425_v37  ;;  %v444_v14 = vsel %vm201_vm1, %v360_v63, 0.0  ;;  %v879_v37 = vld [vmem:[%s625_s15 + $0x148] sm:$0xff]  ;;  %v369_v63 = vmul.f32 %v791_v5, %v791_v5 }
  0x40   : > { %v248_v33 = vadd.f32 %v247_v23, %v246_v26  ;;  %v265_v23 = vsel %vm201_vm1, %v807_v10, 0.0 }
  0x41   : > { %v429_v43 = vadd.f32 %v428_v21, %v427_v40  ;;  %v446_v21 = vsel %vm201_vm1, %v361_v2, 0.0  ;;  %v887_v40 = vld [vmem:[%s625_s15 + $0x150] sm:$0xff]  ;;  %v370_v2 = vmul.f32 %v799_v9, %v799_v9 }
  0x42   : > { %v250_v41 = vadd.f32 %v249_v30, %v248_v33  ;;  %v267_v30 = vsel %vm201_vm1, %v815_v13, 0.0 }
  0x43   : > { %v431_v46 = vadd.f32 %v430_v29, %v429_v43  ;;  %v448_v29 = vsel %vm201_vm1, %v362_v12, 0.0  ;;  %v895_v43 = vld [vmem:[%s625_s15 + $0x158] sm:$0xff]  ;;  %v371_v12 = vmul.f32 %v807_v10, %v807_v10 }
  0x44   : > { %v252_v48 = vadd.f32 %v251_v38, %v250_v41  ;;  %v269_v38 = vsel %vm201_vm1, %v823_v16, 0.0 }
  0x45   : > { %v433_v49 = vadd.f32 %v432_v36, %v431_v46  ;;  %v450_v36 = vsel %vm201_vm1, %v363_v20, 0.0  ;;  %v903_v46 = vld [vmem:[%s625_s15 + $0x160] sm:$0xff]  ;;  %v372_v20 = vmul.f32 %v815_v13, %v815_v13 }
  0x46   : > { %v254_v55 = vadd.f32 %v253_v45, %v252_v48  ;;  %v271_v45 = vsel %vm201_vm1, %v831_v19, 0.0 }
  0x47   : > { %v435_v52 = vadd.f32 %v434_v44, %v433_v49  ;;  %v452_v44 = vsel %vm201_vm1, %v364_v27, 0.0  ;;  %v911_v49 = vld [vmem:[%s625_s15 + $0x168] sm:$0xff]  ;;  %v373_v27 = vmul.f32 %v823_v16, %v823_v16 }
  0x48   : > { %v256_v62 = vadd.f32 %v255_v53, %v254_v55  ;;  %v273_v53 = vsel %vm201_vm1, %v839_v22, 0.0 }
  0x49   : > { %v437_v56 = vadd.f32 %v436_v51, %v435_v52  ;;  %v454_v51 = vsel %vm201_vm1, %v365_v35, 0.0  ;;  %v919_v52 = vld [vmem:[%s625_s15 + $0x170] sm:$0xff]  ;;  %v374_v35 = vmul.f32 %v831_v19, %v831_v19 }
  0x4a   : > { %v258_v6 = vadd.f32 %v257_v59, %v256_v62  ;;  %v275_v59 = vsel %vm201_vm1, %v847_v25, 0.0 }
  0x4b   : > { %v439_v61 = vadd.f32 %v438_v58, %v437_v56  ;;  %v456_v58 = vsel %vm201_vm1, %v366_v42, 0.0  ;;  %v927_v56 = vld [vmem:[%s625_s15 + $0x178] sm:$0xff]  ;;  %v375_v42 = vmul.f32 %v839_v22, %v839_v22 }
  0x4c   : > { %v260_v11 = vadd.f32 %v259_v4, %v258_v6  ;;  %v277_v4 = vsel %vm201_vm1, %v855_v28, 0.0 }
  0x4d   : > { %v441_v1 = vadd.f32 %v440_v0, %v439_v61  ;;  %v458_v0 = vsel %vm201_vm1, %v367_v50, 0.0  ;;  %v935_v61 = vld [vmem:[%s625_s15 + $0x180] sm:$0xff]  ;;  %v376_v50 = vmul.f32 %v847_v25, %v847_v25 }
  0x4e   : > { %v262_v18 = vadd.f32 %v261_v8, %v260_v11  ;;  %v279_v8 = vsel %vm201_vm1, %v863_v31, 0.0 }
  0x4f   : > { %v443_v7 = vadd.f32 %v442_v3, %v441_v1  ;;  %v460_v3 = vsel %vm201_vm1, %v368_v57, 0.0  ;;  %v943_v1 = vld [vmem:[%s625_s15 + $0x188] sm:$0xff]  ;;  %v377_v57 = vmul.f32 %v855_v28, %v855_v28 }
  0x50   : > { %v264_v26 = vadd.f32 %v263_v15, %v262_v18  ;;  %v281_v15 = vsel %vm201_vm1, %v871_v34, 0.0 }
  0x51   : > { %v445_v17 = vadd.f32 %v444_v14, %v443_v7  ;;  %v462_v14 = vsel %vm201_vm1, %v369_v63, 0.0  ;;  %v951_v7 = vld [vmem:[%s625_s15 + $0x190] sm:$0xff]  ;;  %v378_v63 = vmul.f32 %v863_v31, %v863_v31 }
  0x52   : > { %v266_v33 = vadd.f32 %v265_v23, %v264_v26  ;;  %v283_v23 = vsel %vm201_vm1, %v879_v37, 0.0 }
  0x53   : > { %v447_v24 = vadd.f32 %v446_v21, %v445_v17  ;;  %v464_v21 = vsel %vm201_vm1, %v370_v2, 0.0  ;;  %v959_v17 = vld [vmem:[%s625_s15 + $0x198] sm:$0xff]  ;;  %v379_v2 = vmul.f32 %v871_v34, %v871_v34 }
  0x54   : > { %v268_v41 = vadd.f32 %v267_v30, %v266_v33  ;;  %v285_v30 = vsel %vm201_vm1, %v887_v40, 0.0 }
  0x55   : > { %v449_v32 = vadd.f32 %v448_v29, %v447_v24  ;;  %v466_v29 = vsel %vm201_vm1, %v371_v12, 0.0  ;;  %v967_v24 = vld [vmem:[%s625_s15 + $0x1a0] sm:$0xff]  ;;  %v380_v12 = vmul.f32 %v879_v37, %v879_v37 }
  0x56   : > { %v270_v48 = vadd.f32 %v269_v38, %v268_v41  ;;  %v287_v38 = vsel %vm201_vm1, %v895_v43, 0.0 }
  0x57   : > { %v451_v39 = vadd.f32 %v450_v36, %v449_v32  ;;  %v468_v36 = vsel %vm201_vm1, %v372_v20, 0.0  ;;  %v975_v32 = vld [vmem:[%s625_s15 + $0x1a8] sm:$0xff]  ;;  %v381_v20 = vmul.f32 %v887_v40, %v887_v40 }
  0x58   : > { %v272_v55 = vadd.f32 %v271_v45, %v270_v48  ;;  %v289_v45 = vsel %vm201_vm1, %v903_v46, 0.0 }
  0x59   : > { %v453_v47 = vadd.f32 %v452_v44, %v451_v39  ;;  %v470_v44 = vsel %vm201_vm1, %v373_v27, 0.0  ;;  %v983_v39 = vld [vmem:[%s625_s15 + $0x1b0] sm:$0xff]  ;;  %v382_v27 = vmul.f32 %v895_v43, %v895_v43 }
  0x5a   : > { %v274_v62 = vadd.f32 %v273_v53, %v272_v55  ;;  %v291_v53 = vsel %vm201_vm1, %v911_v49, 0.0  ;;  %v1047_v43 = vld [vmem:[%s625_s15 + $0x1f0] sm:$0xff] }
  0x5b   : > { %v455_v54 = vadd.f32 %v454_v51, %v453_v47  ;;  %v472_v51 = vsel %vm201_vm1, %v374_v35, 0.0  ;;  %v991_v47 = vld [vmem:[%s625_s15 + $0x1b8] sm:$0xff]  ;;  %v383_v35 = vmul.f32 %v903_v46, %v903_v46 }
  0x5c   : > { %v276_v6 = vadd.f32 %v275_v59, %v274_v62  ;;  %v293_v59 = vsel %vm201_vm1, %v919_v52, 0.0 }
  0x5d   : > { %v457_v60 = vadd.f32 %v456_v58, %v455_v54  ;;  %v474_v58 = vsel %vm201_vm1, %v375_v42, 0.0  ;;  %v999_v54 = vld [vmem:[%s625_s15 + $0x1c0] sm:$0xff]  ;;  %v384_v42 = vmul.f32 %v911_v49, %v911_v49  ;;  %v386_v49 = vmul.f32 %v927_v56, %v927_v56 }
  0x5e   : > { %v278_v11 = vadd.f32 %v277_v4, %v276_v6  ;;  %v295_v4 = vsel %vm201_vm1, %v927_v56, 0.0  ;;  %v389_v56 = vmul.f32 %v951_v7, %v951_v7 }
  0x5f   : > { %v459_v5 = vadd.f32 %v458_v0, %v457_v60  ;;  %v476_v0 = vsel %vm201_vm1, %v376_v50, 0.0  ;;  %v1007_v60 = vld [vmem:[%s625_s15 + $0x1c8] sm:$0xff]  ;;  %v385_v50 = vmul.f32 %v919_v52, %v919_v52 }
  0x60   : > { %v280_v18 = vadd.f32 %v279_v8, %v278_v11  ;;  %v297_v8 = vsel %vm201_vm1, %v935_v61, 0.0 }
  0x61   : > { %v461_v9 = vadd.f32 %v460_v3, %v459_v5  ;;  %v478_v3 = vsel %vm201_vm1, %v377_v57, 0.0  ;;  %v1015_v5 = vld [vmem:[%s625_s15 + $0x1d0] sm:$0xff]  ;;  %v492_v57 = vsel %vm201_vm1, %v384_v42, 0.0 }
  0x62   : > { %v282_v26 = vadd.f32 %v281_v15, %v280_v18  ;;  %v299_v15 = vsel %vm201_vm1, %v943_v1, 0.0 }
  0x63   : > { %v463_v10 = vadd.f32 %v462_v14, %v461_v9  ;;  %v480_v14 = vsel %vm201_vm1, %v378_v63, 0.0  ;;  %v1023_v9 = vld [vmem:[%s625_s15 + $0x1d8] sm:$0xff] }
  0x64   : > { %v284_v33 = vadd.f32 %v283_v23, %v282_v26  ;;  %v301_v23 = vsel %vm201_vm1, %v951_v7, 0.0  ;;  %v392_v7 = vmul.f32 %v975_v32, %v975_v32 }
  0x65   : > { %v465_v13 = vadd.f32 %v464_v21, %v463_v10  ;;  %v482_v21 = vsel %vm201_vm1, %v379_v2, 0.0  ;;  %v1031_v10 = vld [vmem:[%s625_s15 + $0x1e0] sm:$0xff] }
  0x66   : > { %v286_v41 = vadd.f32 %v285_v30, %v284_v33  ;;  %v303_v30 = vsel %vm201_vm1, %v959_v17, 0.0 }
  0x67   : > { %v467_v16 = vadd.f32 %v466_v29, %v465_v13  ;;  %v484_v29 = vsel %vm201_vm1, %v380_v12, 0.0  ;;  %v1039_v13 = vld [vmem:[%s625_s15 + $0x1e8] sm:$0xff] }
  0x68   : > { %v288_v48 = vadd.f32 %v287_v38, %v286_v41  ;;  %v305_v38 = vsel %vm201_vm1, %v967_v24, 0.0 }
  0x69   : > { %v469_v19 = vadd.f32 %v468_v36, %v467_v16  ;;  %v486_v36 = vsel %vm201_vm1, %v381_v20, 0.0 }
  0x6a   : > { %v290_v55 = vadd.f32 %v289_v45, %v288_v48  ;;  %v307_v45 = vsel %vm201_vm1, %v975_v32, 0.0  ;;  %v508_v32 = vsel %vm201_vm1, %v392_v7, 0.0 }
  0x6b   : > { %v471_v22 = vadd.f32 %v470_v44, %v469_v19  ;;  %v488_v44 = vsel %vm201_vm1, %v382_v27, 0.0  ;;  %v394_v27 = vmul.f32 %v991_v47, %v991_v47 }
  0x6c   : > { %v292_v62 = vadd.f32 %v291_v53, %v290_v55  ;;  %v309_v53 = vsel %vm201_vm1, %v983_v39, 0.0 }
  0x6d   : > { %v473_v25 = vadd.f32 %v472_v51, %v471_v22  ;;  %v490_v51 = vsel %vm201_vm1, %v383_v35, 0.0  ;;  %v512_v35 = vsel %vm201_vm1, %v394_v27, 0.0 }
  0x6e   : > { %v294_v6 = vadd.f32 %v293_v59, %v292_v62  ;;  %v311_v59 = vsel %vm201_vm1, %v991_v47, 0.0 }
  0x6f   : > { %v475_v28 = vadd.f32 %v474_v58, %v473_v25  ;;  %v387_v25 = vmul.f32 %v935_v61, %v935_v61  ;;  %v390_v61 = vmul.f32 %v959_v17, %v959_v17  ;;  %v200_v17 = vld [vmem:[%s1133_s1] sm:$0x1] }
  0x70   : > { %v296_v11 = vadd.f32 %v295_v4, %v294_v6  ;;  %v313_v4 = vsel %vm201_vm1, %v999_v54, 0.0 }
  0x71   : > { %v477_v31 = vadd.f32 %v476_v0, %v475_v28  ;;  %v388_v0 = vmul.f32 %v943_v1, %v943_v1  ;;  %v498_v2 = vsel %vm201_vm1, %v387_v25, 0.0  ;;  %v391_v1 = vmul.f32 %v967_v24, %v967_v24 }
  0x72   : > { %v298_v18 = vadd.f32 %v297_v8, %v296_v11  ;;  %v315_v8 = vsel %vm201_vm1, %v1007_v60, 0.0 }
  0x73   : > { %v479_v34 = vadd.f32 %v478_v3, %v477_v31  ;;  %v500_v31 = vsel %vm201_vm1, %v388_v0, 0.0  ;;  %v506_v24 = vsel %vm201_vm1, %v391_v1, 0.0 }
  0x74   : > { %v300_v26 = vadd.f32 %v299_v15, %v298_v18  ;;  %v317_v15 = vsel %vm201_vm1, %v1015_v5, 0.0 }
  0x75   : > { %v481_v37 = vadd.f32 %v480_v14, %v479_v34  ;;  %v502_v14 = vsel %vm201_vm1, %v389_v56, 0.0 }
  0x76   : > { %v302_v33 = vadd.f32 %v301_v23, %v300_v26  ;;  %v319_v23 = vsel %vm201_vm1, %v1023_v9, 0.0 }
  0x77   : > { %v483_v40 = vadd.f32 %v482_v21, %v481_v37 }
  0x78   : > { %v304_v41 = vadd.f32 %v303_v30, %v302_v33  ;;  %v321_v30 = vsel %vm201_vm1, %v1031_v10, 0.0 }
  0x79   : > { %v485_v16 = vadd.f32 %v484_v29, %v483_v40 }
  0x7a   : > { %v306_v48 = vadd.f32 %v305_v38, %v304_v41  ;;  %v323_v38 = vsel %vm201_vm1, %v1039_v13, 0.0 }
  0x7b   : > { %v487_v19 = vadd.f32 %v486_v36, %v485_v16  ;;  %v397_v36 = vmul.f32 %v1015_v5, %v1015_v5 }
  0x7c   : > { %v308_v55 = vadd.f32 %v307_v45, %v306_v48  ;;  %v325_v45 = vsel %vm201_vm1, %v1047_v43, 0.0  ;;  %v1055_v48 = vld [vmem:[%s625_s15 + $0x1f8] sm:$0xff] }
  0x7d   : > { %v489_v22 = vadd.f32 %v488_v44, %v487_v19  ;;  %v399_v44 = vmul.f32 %v1031_v10, %v1031_v10  ;;  %v400_v19 = vmul.f32 %v1039_v13, %v1039_v13 }
  0x7e   : > { %v310_v62 = vadd.f32 %v309_v53, %v308_v55  ;;  %v327_v53 = vsel %vm201_vm1, %v1055_v48, 0.0 }
  0x7f   : > { %v491_v58 = vadd.f32 %v490_v51, %v489_v22  ;;  %v524_v10 = vsel %vm201_vm1, %v400_v19, 0.0 }
  0x80   : > { %v312_v6 = vadd.f32 %v311_v59, %v310_v62  ;;  %v494_v62 = vsel %vm201_vm1, %v385_v50, 0.0  ;;  %v401_v50 = vmul.f32 %v1047_v43, %v1047_v43 }
  0x81   : > { %v493_v52 = vadd.f32 %v492_v57, %v491_v58 }
  0x82   : > { %v314_v11 = vadd.f32 %v313_v4, %v312_v6  ;;  %v496_v4 = vsel %vm201_vm1, %v386_v49, 0.0 }
  0x83   : > { %v495_v28 = vadd.f32 %v494_v62, %v493_v52 }
  0x84   : > { %v316_v18 = vadd.f32 %v315_v8, %v314_v11 }
  0x85   : > { %v497_v3 = vadd.f32 %v496_v4, %v495_v28 }
  0x86   : > { %v318_v26 = vadd.f32 %v317_v15, %v316_v18  ;;  %v504_v18 = vsel %vm201_vm1, %v390_v61, 0.0 }
  0x87   : > { %v499_v11 = vadd.f32 %v498_v2, %v497_v3 }
  0x88   : > { %v320_v33 = vadd.f32 %v319_v23, %v318_v26  ;;  %v393_v23 = vmul.f32 %v983_v39, %v983_v39 }
  0x89   : > { %v501_v15 = vadd.f32 %v500_v31, %v499_v11 }
  0x8a   : > { %v322_v41 = vadd.f32 %v321_v30, %v320_v33  ;;  %v395_v30 = vmul.f32 %v999_v54, %v999_v54  ;;  %v510_v39 = vsel %vm201_vm1, %v393_v23, 0.0  ;;  %v396_v33 = vmul.f32 %v1007_v60, %v1007_v60 }
  0x8b   : > { %v503_v20 = vadd.f32 %v502_v14, %v501_v15  ;;  %v518_v60 = vsel %vm201_vm1, %v397_v36, 0.0 }
  0x8c   : > { %v324_v46 = vadd.f32 %v323_v38, %v322_v41  ;;  %v514_v38 = vsel %vm201_vm1, %v395_v30, 0.0  ;;  %v398_v41 = vmul.f32 %v1023_v9, %v1023_v9  ;;  %v516_v54 = vsel %vm201_vm1, %v396_v33, 0.0 }
  0x8d   : > { %v505_v37 = vadd.f32 %v504_v18, %v503_v20  ;;  %v522_v9 = vsel %vm201_vm1, %v399_v44, 0.0 }
  0x8e   : > { %v326_v55 = vadd.f32 %v325_v45, %v324_v46  ;;  %v520_v5 = vsel %vm201_vm1, %v398_v41, 0.0 }
  0x8f   : > { %v507_v29 = vadd.f32 %v506_v24, %v505_v37 }
  0x90   : > { %v328_v59 = vadd.f32 %v327_v53, %v326_v55  ;;  %v402_v53 = vmul.f32 %v1055_v48, %v1055_v48  ;;  %v526_v55 = vsel %vm201_vm1, %v401_v50, 0.0 }
  0x91   : > { %v509_v40 = vadd.f32 %v508_v32, %v507_v29 }
  0x92   : > { %v329_v63 = vrot.slane %v328_v59, 4  ;;  %v528_v13 = vsel %vm201_vm1, %v402_v53, 0.0 }
  0x93   : > { %v511_v47 = vadd.f32 %v510_v39, %v509_v40 }
  0x94   : > { %v330_v6 = vadd.f32 %v329_v63, %v328_v59  ;;  %v338_v63 = vld [vmem:[%s1134_s2] sm:$0x1] }
  0x95   : > { %v513_v16 = vadd.f32 %v512_v35, %v511_v47 }
  0x96   : > { %v331_v8 = vrot.slane %v330_v6, 2 }
  0x97   : > { %v515_v42 = vadd.f32 %v514_v38, %v513_v16 }
  0x98   : > { %v332_v12 = vadd.f32 %v331_v8, %v330_v6 }
  0x99   : > { %v517_v45 = vadd.f32 %v516_v54, %v515_v42 }
  0x9a   : > { %v333_v34 = vrot.slane %v332_v12, 1 }
  0x9b   : > { %v519_v46 = vadd.f32 %v518_v60, %v517_v45 }
  0x9c   : > { %v334_v21 = vadd.f32 %v333_v34, %v332_v12 }
  0x9d   : > { %v521_v51 = vadd.f32 %v520_v5, %v519_v46 }
  0x9e   : > { %v335_v26 = vadd.f32 %v334_v21, %v200_v17 }
  0x9f   : > { %v523_v22 = vadd.f32 %v522_v9, %v521_v51 }
  0xa0   : > { %337 = vst.msk [vmem:[%s1133_s1] sm:$0x1] %vm336_vm2, %v335_v26 }
  0xa1   : > { %v525_v49 = vadd.f32 %v524_v10, %v523_v22 }
  0xa3   : > { %v527_v57 = vadd.f32 %v526_v55, %v525_v49 }
  0xa5   : > { %v529_v58 = vadd.f32 %v528_v13, %v527_v57 }
  0xa7   : > { %v530_v59 = vrot.slane %v529_v58, 4 }
  0xa9   : > { %v531_v25 = vadd.f32 %v530_v59, %v529_v58 }
  0xab   : > { %v532_v62 = vrot.slane %v531_v25, 2 }
  0xad   : > { %v533_v43 = vadd.f32 %v532_v62, %v531_v25 }
  0xaf   : > { %v534_v52 = vrot.slane %v533_v43, 1 }
  0xb1   : > { %v535_v48 = vadd.f32 %v534_v52, %v533_v43 }
  0xb3   : > { %v536_v0 = vadd.f32 %v535_v48, %v338_v63 }
  0xb5   : > { %537 = vst.msk [vmem:[%s1134_s2] sm:$0x1] %vm336_vm2, %v536_v0 }
  0xb6 PF: > { %s13_s9 = sadd.s32 1, %s596_s9  }
  0xb7   : > { %p10_p5 = scmp.ge.s32.totalorder %s13_s9, 6  }
  0xb9   :  { %12 = sbr.rel (!%p10_p5) target bundleno = 1 (0x1), region = 62 }

// kernel: generator_forward.18
= control target key start
LH: loop header
LB: loop body
LE: loop exit
PB: predicated region body
PF: predicated region fallthrough
CT: control target
= control target key end

     0   :  { %s1558_s15 = smov 0   ;;  %s1560_s16 = smov 0   ;;  %s1999_s0 = inlined_call_operand.vmem [shape: f32[2048,8], index: 0, kind: input, shape index: {}]   ;;  %s2000_s1 = inlined_call_operand.vmem [shape: f32[1,8], index: 1, kind: input, shape index: {}]   ;;  %s2001_s2 = inlined_call_operand.vmem [shape: f32[1,8], index: 2, kind: input, shape index: {}]   ;;  %s2002_s3 = inlined_call_operand.vmem [shape: f32[8,48], index: 3, kind: input, shape index: {}]   ;;  %s2003_s4 = inlined_call_operand.vmem [shape: f32[2048,48], index: 4, kind: output, shape index: {}]  }
   0x1   :  { %s1562_s17 = smov 0  }
   0x2 LB: > { %s26_s18 = sadd.s32 1, %s1527_s16  ;;  %p1247_p0 = scmp.ge.s32.totalorder %s1531_s17, 1  ;;  %s1531_s17 = sphi %s1562_s17, %s14_s17   ;;  %s1527_s16 = sphi %s1560_s16, %s2005_s16   ;;  %s1523_s15 = sphi %s1558_s15, %s2004_s15  }
   0x3   : > { %p28_p1 = scmp.ge.s32.totalorder %s26_s18, 4  ;;  %p186_p2 = scmp.lt.s32.totalorder %s1531_s17, 5 }
   0x5   : > { %s2007_s18 = smov (%p28_p1, %s26_s18), 0  ;;  %p187_p3 = pnand %p1247_p0, %p186_p2 }
   0x6   : > { %s1248_s21 = sshll.u32 (!%p187_p3), %s1523_s15, 6 }
   0x7   : > { %190 = sbr.rel (%p187_p3) target bundleno = 280 (0x118), region = 36  ;;  %p220_p4 = scmp.lt.s32.totalorder (!%p187_p3), %s1248_s21, 255 }
   0xc   : > { %v508_v0 = vld [vmem:[%s2002_s3] sm:$0xff]  ;;  %s2009_s21 = smov (!%p220_p4, %s1248_s21), 255  ;;  %vm509_vm0 = vcmask 64512   ;;  %vm1087_vm1 = vcmask 392192  }
   0xd   : > { %1385 = vmatprep.subr.mxu0 %v508_v0  ;;  %1483 = vmatprep.subr.mxu1 %v508_v0  ;;  %s1249_s22 = sshll.u32 %s2009_s21, 3  ;;  %v1585_v1 = vld [vmem:[%s2000_s1] ss:$0 sm:$0xff] }
   0xe   : > { %1386 = vmatpush3.msra.mxu0 %v508_v0  ;;  %1484 = vmatpush3.msra.mxu1 %v508_v0  ;;  %s1592_s27 = scalar_lea.vmem %s1999_s0, %s1249_s22  ;;  %v1597_v2 = vld [vmem:[%s2001_s2] ss:$0 sm:$0xff]  ;;  %s1860_s6 = scalar_lea.vmem %s2003_s4, %s1249_s22 }
   0xf   : > { %v238_v3 = vld [vmem:[%s1592_s27] sm:$0xff]  ;;  %v239_v5 = vld [vmem:[%s1592_s27 + $0x8] sm:$0xff]  ;;  %v240_v10 = vld [vmem:[%s1592_s27 + $0x10] sm:$0xff] }
  0x10   : > { %v270_v4 = vld [vmem:[%s1592_s27 + $0x100] sm:$0xff]  ;;  %v309_v6 = vmul.f32 %v1585_v1, %v238_v3  ;;  %v310_v8 = vmul.f32 %v1585_v1, %v239_v5  ;;  %v271_v9 = vld [vmem:[%s1592_s27 + $0x108] sm:$0xff]  ;;  %v272_v11 = vld [vmem:[%s1592_s27 + $0x110] sm:$0xff]  ;;  %v311_v13 = vmul.f32 %v1585_v1, %v240_v10 }
  0x11   : > { %v341_v7 = vmul.f32 %v1585_v1, %v270_v4  ;;  %v342_v12 = vmul.f32 %v1585_v1, %v271_v9  ;;  %v343_v14 = vmul.f32 %v1585_v1, %v272_v11  ;;  %v241_v15 = vld [vmem:[%s1592_s27 + $0x18] sm:$0xff]  ;;  %v242_v25 = vld [vmem:[%s1592_s27 + $0x20] sm:$0xff]  ;;  %v243_v27 = vld [vmem:[%s1592_s27 + $0x28] sm:$0xff] }
  0x12   : > { %v273_v16 = vld [vmem:[%s1592_s27 + $0x118] sm:$0xff]  ;;  %v380_v17 = vadd.f32 %v1597_v2, %v309_v6  ;;  %v381_v19 = vadd.f32 %v1597_v2, %v310_v8  ;;  %v312_v20 = vmul.f32 %v1585_v1, %v241_v15  ;;  %v382_v22 = vadd.f32 %v1597_v2, %v311_v13  ;;  %v274_v26 = vld [vmem:[%s1592_s27 + $0x120] sm:$0xff]  ;;  %v275_v32 = vld [vmem:[%s1592_s27 + $0x128] sm:$0xff] }
  0x13   : > { %v412_v18 = vadd.f32 %v1597_v2, %v341_v7  ;;  %v413_v21 = vadd.f32 %v1597_v2, %v342_v12  ;;  %v414_v23 = vadd.f32 %v1597_v2, %v343_v14  ;;  %v344_v24 = vmul.f32 %v1585_v1, %v273_v16  ;;  %v244_v33 = vld [vmem:[%s1592_s27 + $0x30] sm:$0xff]  ;;  %v245_v43 = vld [vmem:[%s1592_s27 + $0x38] sm:$0xff]  ;;  %v246_v56 = vld [vmem:[%s1592_s27 + $0x40] sm:$0xff] }
  0x14   : > { %v444_v28 = vmax.f32 %v380_v17, 0.0  ;;  %v445_v30 = vmax.f32 %v381_v19, 0.0  ;;  %v383_v31 = vadd.f32 %v1597_v2, %v312_v20  ;;  %v276_v34 = vld [vmem:[%s1592_s27 + $0x130] sm:$0xff]  ;;  %v446_v36 = vmax.f32 %v382_v22, 0.0  ;;  %v277_v48 = vld [vmem:[%s1592_s27 + $0x138] sm:$0xff]  ;;  %v278_v57 = vld [vmem:[%s1592_s27 + $0x140] sm:$0xff] }
  0x15   : > { %v476_v29 = vmax.f32 %v412_v18, 0.0  ;;  %v477_v35 = vmax.f32 %v413_v21, 0.0  ;;  %v478_v37 = vmax.f32 %v414_v23, 0.0  ;;  %v415_v38 = vadd.f32 %v1597_v2, %v344_v24  ;;  %v247_v61 = vld [vmem:[%s1592_s27 + $0x48] sm:$0xff]  ;;  %v248_v63 = vld [vmem:[%s1592_s27 + $0x50] sm:$0xff]  ;;  %v249_v14 = vld [vmem:[%s1592_s27 + $0x58] sm:$0xff] }
  0x16   : > { %1387 = vmatprep.mubr.msk.f32.mxu0 %vm509_vm0, %v444_v28  ;;  %v447_v39 = vmax.f32 %v383_v31, 0.0  ;;  %v313_v40 = vmul.f32 %v1585_v1, %v242_v25  ;;  %v345_v41 = vmul.f32 %v1585_v1, %v274_v26  ;;  %v314_v42 = vmul.f32 %v1585_v1, %v243_v27  ;;  %v279_v62 = vld [vmem:[%s1592_s27 + $0x148] sm:$0xff]  ;;  %v280_v6 = vld [vmem:[%s1592_s27 + $0x150] sm:$0xff]  ;;  %v281_v19 = vld [vmem:[%s1592_s27 + $0x158] sm:$0xff] }
  0x17   : > { %1435 = vmatprep.mubr.msk.f32.mxu1 %vm509_vm0, %v476_v29  ;;  %1388 = vmatmul.mubr.msk.f32.vlgmr.msra.gmra.mxu0 %vm509_vm0, %v445_v30  ;;  %v479_v44 = vmax.f32 %v415_v38, 0.0  ;;  %v346_v45 = vmul.f32 %v1585_v1, %v275_v32  ;;  %v315_v46 = vmul.f32 %v1585_v1, %v244_v33  ;;  %v347_v47 = vmul.f32 %v1585_v1, %v276_v34  ;;  %v250_v24 = vld [vmem:[%s1592_s27 + $0x60] sm:$0xff]  ;;  %v251_v30 = vld [vmem:[%s1592_s27 + $0x68] sm:$0xff]  ;;  %v252_v34 = vld [vmem:[%s1592_s27 + $0x70] sm:$0xff] }
  0x18   : > { %1436 = vmatmul.mubr.msk.f32.vlgmr.msra.gmra.mxu1 %vm509_vm0, %v477_v35  ;;  %1390 = vmatprep.mubr.msk.f32.mxu0 %vm509_vm0, %v446_v36  ;;  %v384_v49 = vadd.f32 %v1597_v2, %v313_v40  ;;  %v416_v50 = vadd.f32 %v1597_v2, %v345_v41  ;;  %v385_v51 = vadd.f32 %v1597_v2, %v314_v42  ;;  %v282_v25 = vld [vmem:[%s1592_s27 + $0x160] sm:$0xff]  ;;  %v283_v31 = vld [vmem:[%s1592_s27 + $0x168] sm:$0xff] }
  0x19   : > { %1438 = vmatprep.mubr.msk.f32.mxu1 %vm509_vm0, %v478_v37  ;;  %v417_v52 = vadd.f32 %v1597_v2, %v346_v45  ;;  %v386_v53 = vadd.f32 %v1597_v2, %v315_v46  ;;  %v418_v54 = vadd.f32 %v1597_v2, %v347_v47  ;;  %v316_v55 = vmul.f32 %v1585_v1, %v245_v43 }
  0x1a   : > { %v448_v58 = vmax.f32 %v384_v49, 0.0  ;;  %v480_v59 = vmax.f32 %v416_v50, 0.0  ;;  %v348_v60 = vmul.f32 %v1585_v1, %v277_v48  ;;  %v449_v0 = vmax.f32 %v385_v51, 0.0  ;;  %v285_v49 = vld [vmem:[%s1592_s27 + $0x178] sm:$0xff]  ;;  %v254_v51 = vld [vmem:[%s1592_s27 + $0x80] sm:$0xff] }
  0x1b   : > { %1391 = vmatmul.mubr.msk.f32.gmra.mxu0 %vm509_vm0, %v447_v39  ;;  %v481_v3 = vmax.f32 %v417_v52, 0.0  ;;  %v450_v4 = vmax.f32 %v386_v53, 0.0  ;;  %v387_v5 = vadd.f32 %v1597_v2, %v316_v55  ;;  %v482_v7 = vmax.f32 %v418_v54, 0.0  ;;  %v284_v39 = vld [vmem:[%s1592_s27 + $0x170] sm:$0xff]  ;;  %v286_v52 = vld [vmem:[%s1592_s27 + $0x180] sm:$0xff] }
  0x1c   : > { %1439 = vmatmul.mubr.msk.f32.gmra.mxu1 %vm509_vm0, %v479_v44  ;;  %1393 = vmatprep.mubr.msk.f32.mxu0 %vm509_vm0, %v448_v58  ;;  %v419_v8 = vadd.f32 %v1597_v2, %v348_v60  ;;  %v317_v9 = vmul.f32 %v1585_v1, %v246_v56  ;;  %v349_v10 = vmul.f32 %v1585_v1, %v278_v57  ;;  %v253_v44 = vld [vmem:[%s1592_s27 + $0x78] sm:$0xff] }
  0x1d   : > { %1441 = vmatprep.mubr.msk.f32.mxu1 %vm509_vm0, %v480_v59  ;;  %v318_v11 = vmul.f32 %v1585_v1, %v247_v61  ;;  %v350_v12 = vmul.f32 %v1585_v1, %v279_v62  ;;  %v319_v13 = vmul.f32 %v1585_v1, %v248_v63  ;;  %v451_v15 = vmax.f32 %v387_v5, 0.0  ;;  %v255_v61 = vld [vmem:[%s1592_s27 + $0x88] sm:$0xff]  ;;  %v256_v5 = vld [vmem:[%s1592_s27 + $0x90] sm:$0xff] }
  0x1e   : > { %v388_v16 = vadd.f32 %v1597_v2, %v317_v9  ;;  %v420_v17 = vadd.f32 %v1597_v2, %v349_v10  ;;  %v351_v18 = vmul.f32 %v1585_v1, %v280_v6  ;;  %v483_v20 = vmax.f32 %v419_v8, 0.0  ;;  %v288_v6 = vld [vmem:[%s1592_s27 + $0x190] sm:$0xff] }
  0x1f   : > { %1394 = vmatmul.mubr.msk.f32.gmra.mxu0 %vm509_vm0, %v449_v0  ;;  %v389_v21 = vadd.f32 %v1597_v2, %v318_v11  ;;  %v421_v22 = vadd.f32 %v1597_v2, %v350_v12  ;;  %v390_v23 = vadd.f32 %v1597_v2, %v319_v13  ;;  %v320_v29 = vmul.f32 %v1585_v1, %v249_v14 }
  0x20   : > { %1442 = vmatmul.mubr.msk.f32.gmra.mxu1 %vm509_vm0, %v481_v3  ;;  %1396 = vmatprep.mubr.msk.f32.mxu0 %vm509_vm0, %v450_v4  ;;  %v452_v26 = vmax.f32 %v388_v16, 0.0  ;;  %v484_v27 = vmax.f32 %v420_v17, 0.0  ;;  %v422_v28 = vadd.f32 %v1597_v2, %v351_v18  ;;  %v352_v33 = vmul.f32 %v1585_v1, %v281_v19  ;;  %v287_v4 = vld [vmem:[%s1592_s27 + $0x188] sm:$0xff]  ;;  %v289_v16 = vld [vmem:[%s1592_s27 + $0x198] sm:$0xff] }
  0x21   : > { %1444 = vmatprep.mubr.msk.f32.mxu1 %vm509_vm0, %v482_v7  ;;  %v453_v32 = vmax.f32 %v389_v21, 0.0  ;;  %v485_v35 = vmax.f32 %v421_v22, 0.0  ;;  %v391_v36 = vadd.f32 %v1597_v2, %v320_v29  ;;  %v321_v37 = vmul.f32 %v1585_v1, %v250_v24  ;;  %v258_v21 = vld [vmem:[%s1592_s27 + $0xa0] sm:$0xff] }
  0x22   : > { %v353_v38 = vmul.f32 %v1585_v1, %v282_v25  ;;  %v454_v40 = vmax.f32 %v390_v23, 0.0  ;;  %v423_v41 = vadd.f32 %v1597_v2, %v352_v33  ;;  %v322_v42 = vmul.f32 %v1585_v1, %v251_v30  ;;  %v290_v22 = vld [vmem:[%s1592_s27 + $0x1a0] sm:$0xff] }
  0x23   : > { %1397 = vmatmul.mubr.msk.f32.gmra.mxu0 %vm509_vm0, %v451_v15  ;;  %v354_v43 = vmul.f32 %v1585_v1, %v283_v31  ;;  %v486_v45 = vmax.f32 %v422_v28, 0.0  ;;  %v392_v46 = vadd.f32 %v1597_v2, %v321_v37  ;;  %v323_v48 = vmul.f32 %v1585_v1, %v252_v34  ;;  %v257_v15 = vld [vmem:[%s1592_s27 + $0x98] sm:$0xff]  ;;  %v259_v31 = vld [vmem:[%s1592_s27 + $0xa8] sm:$0xff]  ;;  %v260_v37 = vld [vmem:[%s1592_s27 + $0xb0] sm:$0xff] }
  0x24   : > { %1445 = vmatmul.mubr.msk.f32.gmra.mxu1 %vm509_vm0, %v483_v20  ;;  %1399 = vmatprep.mubr.msk.f32.mxu0 %vm509_vm0, %v452_v26  ;;  %v424_v47 = vadd.f32 %v1597_v2, %v353_v38  ;;  %v355_v50 = vmul.f32 %v1585_v1, %v284_v39  ;;  %v455_v53 = vmax.f32 %v391_v36, 0.0  ;;  %v393_v54 = vadd.f32 %v1597_v2, %v322_v42  ;;  %v291_v36 = vld [vmem:[%s1592_s27 + $0x1a8] sm:$0xff]  ;;  %v292_v38 = vld [vmem:[%s1592_s27 + $0x1b0] sm:$0xff] }
  0x25   : > { %1447 = vmatprep.mubr.msk.f32.mxu1 %vm509_vm0, %v484_v27  ;;  %v425_v55 = vadd.f32 %v1597_v2, %v354_v43  ;;  %v324_v56 = vmul.f32 %v1585_v1, %v253_v44  ;;  %v487_v57 = vmax.f32 %v423_v41, 0.0  ;;  %v456_v58 = vmax.f32 %v392_v46, 0.0 }
  0x26   : > { %v394_v59 = vadd.f32 %v1597_v2, %v323_v48  ;;  %v356_v60 = vmul.f32 %v1585_v1, %v285_v49  ;;  %v488_v62 = vmax.f32 %v424_v47, 0.0  ;;  %v426_v63 = vadd.f32 %v1597_v2, %v355_v50  ;;  %v261_v47 = vld [vmem:[%s1592_s27 + $0xb8] sm:$0xff] }
  0x27   : > { %1400 = vmatmul.mubr.msk.f32.gmra.mxu0 %vm509_vm0, %v453_v32  ;;  %v325_v0 = vmul.f32 %v1585_v1, %v254_v51  ;;  %v357_v3 = vmul.f32 %v1585_v1, %v286_v52  ;;  %v457_v7 = vmax.f32 %v393_v54, 0.0  ;;  %v489_v8 = vmax.f32 %v425_v55, 0.0  ;;  %v293_v52 = vld [vmem:[%s1592_s27 + $0x1b8] sm:$0xff]  ;;  %v294_v54 = vld [vmem:[%s1592_s27 + $0x1c0] sm:$0xff] }
  0x28   : > { %1448 = vmatmul.mubr.msk.f32.gmra.mxu1 %vm509_vm0, %v485_v35  ;;  %1402 = vmatprep.mubr.msk.f32.mxu0 %vm509_vm0, %v454_v40  ;;  %v395_v9 = vadd.f32 %v1597_v2, %v324_v56  ;;  %v326_v10 = vmul.f32 %v1585_v1, %v255_v61  ;;  %v458_v11 = vmax.f32 %v394_v59, 0.0  ;;  %v427_v12 = vadd.f32 %v1597_v2, %v356_v60 }
  0x29   : > { %1450 = vmatprep.mubr.msk.f32.mxu1 %vm509_vm0, %v486_v45  ;;  %v396_v13 = vadd.f32 %v1597_v2, %v325_v0  ;;  %v358_v14 = vmul.f32 %v1585_v1, %v287_v4  ;;  %v490_v17 = vmax.f32 %v426_v63, 0.0  ;;  %v428_v18 = vadd.f32 %v1597_v2, %v357_v3  ;;  %v263_v63 = vld [vmem:[%s1592_s27 + $0xc8] sm:$0xff] }
  0x2a   : > { %v327_v19 = vmul.f32 %v1585_v1, %v256_v5  ;;  %v359_v20 = vmul.f32 %v1585_v1, %v288_v6  ;;  %v459_v23 = vmax.f32 %v395_v9, 0.0  ;;  %v397_v24 = vadd.f32 %v1597_v2, %v326_v10  ;;  %v295_v0 = vld [vmem:[%s1592_s27 + $0x1c8] sm:$0xff] }
  0x2b   : > { %1403 = vmatmul.mubr.msk.f32.gmra.mxu0 %vm509_vm0, %v455_v53  ;;  %v328_v25 = vmul.f32 %v1585_v1, %v257_v15  ;;  %v360_v26 = vmul.f32 %v1585_v1, %v289_v16  ;;  %v491_v27 = vmax.f32 %v427_v12, 0.0  ;;  %v460_v28 = vmax.f32 %v396_v13, 0.0  ;;  %v262_v53 = vld [vmem:[%s1592_s27 + $0xc0] sm:$0xff] }
  0x2c   : > { %1451 = vmatmul.mubr.msk.f32.gmra.mxu1 %vm509_vm0, %v487_v57  ;;  %1405 = vmatprep.mubr.msk.f32.mxu0 %vm509_vm0, %v456_v58  ;;  %v429_v29 = vadd.f32 %v1597_v2, %v358_v14  ;;  %v329_v30 = vmul.f32 %v1585_v1, %v258_v21  ;;  %v492_v32 = vmax.f32 %v428_v18, 0.0  ;;  %v398_v33 = vadd.f32 %v1597_v2, %v327_v19 }
  0x2d   : > { %1453 = vmatprep.mubr.msk.f32.mxu1 %vm509_vm0, %v488_v62  ;;  %v430_v34 = vadd.f32 %v1597_v2, %v359_v20  ;;  %v361_v35 = vmul.f32 %v1585_v1, %v290_v22  ;;  %v461_v39 = vmax.f32 %v397_v24, 0.0  ;;  %v399_v40 = vadd.f32 %v1597_v2, %v328_v25  ;;  %v297_v22 = vld [vmem:[%s1592_s27 + $0x1d8] sm:$0xff]  ;;  %v298_v24 = vld [vmem:[%s1592_s27 + $0x1e0] sm:$0xff] }
  0x2e   : > { %v431_v41 = vadd.f32 %v1597_v2, %v360_v26  ;;  %v330_v42 = vmul.f32 %v1585_v1, %v259_v31  ;;  %v493_v43 = vmax.f32 %v429_v29, 0.0  ;;  %v400_v44 = vadd.f32 %v1597_v2, %v329_v30 }
  0x2f   : > { %1406 = vmatmul.mubr.msk.f32.gmra.mxu0 %vm509_vm0, %v457_v7  ;;  %v362_v45 = vmul.f32 %v1585_v1, %v291_v36  ;;  %v331_v46 = vmul.f32 %v1585_v1, %v260_v37  ;;  %v462_v48 = vmax.f32 %v398_v33, 0.0  ;;  %v494_v49 = vmax.f32 %v430_v34, 0.0  ;;  %v264_v7 = vld [vmem:[%s1592_s27 + $0xd0] sm:$0xff]  ;;  %v267_v33 = vld [vmem:[%s1592_s27 + $0xe8] sm:$0xff] }
  0x30   : > { %1454 = vmatmul.mubr.msk.f32.gmra.mxu1 %vm509_vm0, %v489_v8  ;;  %1408 = vmatprep.mubr.msk.f32.mxu0 %vm509_vm0, %v458_v11  ;;  %v432_v50 = vadd.f32 %v1597_v2, %v361_v35  ;;  %v363_v51 = vmul.f32 %v1585_v1, %v292_v38  ;;  %v463_v55 = vmax.f32 %v399_v40, 0.0  ;;  %v495_v56 = vmax.f32 %v431_v41, 0.0  ;;  %v296_v8 = vld [vmem:[%s1592_s27 + $0x1d0] sm:$0xff]  ;;  %v299_v38 = vld [vmem:[%s1592_s27 + $0x1e8] sm:$0xff] }
  0x31   : > { %1456 = vmatprep.mubr.msk.f32.mxu1 %vm509_vm0, %v490_v17  ;;  %v401_v57 = vadd.f32 %v1597_v2, %v330_v42  ;;  %v332_v58 = vmul.f32 %v1585_v1, %v261_v47  ;;  %v464_v59 = vmax.f32 %v400_v44, 0.0  ;;  %v433_v60 = vadd.f32 %v1597_v2, %v362_v45  ;;  %v265_v17 = vld [vmem:[%s1592_s27 + $0xd8] sm:$0xff]  ;;  %v300_v40 = vld [vmem:[%s1592_s27 + $0x1f0] sm:$0xff] }
  0x32   : > { %v402_v61 = vadd.f32 %v1597_v2, %v331_v46  ;;  %v364_v62 = vmul.f32 %v1585_v1, %v293_v52  ;;  %v496_v3 = vmax.f32 %v432_v50, 0.0  ;;  %v434_v4 = vadd.f32 %v1597_v2, %v363_v51 }
  0x33   : > { %1409 = vmatmul.mubr.msk.f32.gmra.mxu0 %vm509_vm0, %v459_v23  ;;  %v333_v5 = vmul.f32 %v1585_v1, %v262_v53  ;;  %v365_v6 = vmul.f32 %v1585_v1, %v294_v54  ;;  %v465_v9 = vmax.f32 %v401_v57, 0.0  ;;  %v403_v10 = vadd.f32 %v1597_v2, %v332_v58  ;;  %v266_v23 = vld [vmem:[%s1592_s27 + $0xe0] sm:$0xff]  ;;  %v269_v53 = vld [vmem:[%s1592_s27 + $0xf8] sm:$0xff] }
  0x34   : > { %1457 = vmatmul.mubr.msk.f32.gmra.mxu1 %vm509_vm0, %v491_v27  ;;  %1411 = vmatprep.mubr.msk.f32.mxu0 %vm509_vm0, %v460_v28  ;;  %v334_v11 = vmul.f32 %v1585_v1, %v263_v63  ;;  %v366_v12 = vmul.f32 %v1585_v1, %v295_v0  ;;  %v497_v13 = vmax.f32 %v433_v60, 0.0  ;;  %v466_v14 = vmax.f32 %v402_v61, 0.0  ;;  %v301_v54 = vld [vmem:[%s1592_s27 + $0x1f8] sm:$0xff] }
  0x35   : > { %1459 = vmatprep.mubr.msk.f32.mxu1 %vm509_vm0, %v492_v32  ;;  %v435_v15 = vadd.f32 %v1597_v2, %v364_v62  ;;  %v335_v16 = vmul.f32 %v1585_v1, %v264_v7  ;;  %v498_v18 = vmax.f32 %v434_v4, 0.0  ;;  %v404_v19 = vadd.f32 %v1597_v2, %v333_v5 }
  0x36   : > { %v436_v20 = vadd.f32 %v1597_v2, %v365_v6  ;;  %v367_v21 = vmul.f32 %v1585_v1, %v296_v8  ;;  %v467_v25 = vmax.f32 %v403_v10, 0.0  ;;  %v405_v26 = vadd.f32 %v1597_v2, %v334_v11 }
  0x37   : > { %1412 = vmatmul.mubr.msk.f32.gmra.mxu0 %vm509_vm0, %v461_v39  ;;  %v437_v27 = vadd.f32 %v1597_v2, %v366_v12  ;;  %v336_v28 = vmul.f32 %v1585_v1, %v265_v17  ;;  %v499_v29 = vmax.f32 %v435_v15, 0.0  ;;  %v406_v30 = vadd.f32 %v1597_v2, %v335_v16  ;;  %v268_v39 = vld [vmem:[%s1592_s27 + $0xf0] sm:$0xff] }
  0x38   : > { %1460 = vmatmul.mubr.msk.f32.gmra.mxu1 %vm509_vm0, %v493_v43  ;;  %1414 = vmatprep.mubr.msk.f32.mxu0 %vm509_vm0, %v462_v48  ;;  %v368_v31 = vmul.f32 %v1585_v1, %v297_v22  ;;  %v337_v32 = vmul.f32 %v1585_v1, %v266_v23  ;;  %v468_v34 = vmax.f32 %v404_v19, 0.0  ;;  %v500_v35 = vmax.f32 %v436_v20, 0.0 }
  0x39   : > { %1462 = vmatprep.mubr.msk.f32.mxu1 %vm509_vm0, %v494_v49  ;;  %v438_v36 = vadd.f32 %v1597_v2, %v367_v21  ;;  %v369_v37 = vmul.f32 %v1585_v1, %v298_v24  ;;  %v469_v41 = vmax.f32 %v405_v26, 0.0  ;;  %v501_v42 = vmax.f32 %v437_v27, 0.0 }
  0x3a   : > { %v407_v43 = vadd.f32 %v1597_v2, %v336_v28  ;;  %v338_v44 = vmul.f32 %v1585_v1, %v267_v33  ;;  %v470_v45 = vmax.f32 %v406_v30, 0.0  ;;  %v439_v46 = vadd.f32 %v1597_v2, %v368_v31 }
  0x3b   : > { %1415 = vmatmul.mubr.msk.f32.gmra.mxu0 %vm509_vm0, %v463_v55  ;;  %v408_v47 = vadd.f32 %v1597_v2, %v337_v32  ;;  %v370_v48 = vmul.f32 %v1585_v1, %v299_v38  ;;  %v502_v49 = vmax.f32 %v438_v36, 0.0  ;;  %v440_v50 = vadd.f32 %v1597_v2, %v369_v37 }
  0x3c   : > { %1463 = vmatmul.mubr.msk.f32.gmra.mxu1 %vm509_vm0, %v495_v56  ;;  %1417 = vmatprep.mubr.msk.f32.mxu0 %vm509_vm0, %v464_v59  ;;  %v339_v51 = vmul.f32 %v1585_v1, %v268_v39  ;;  %v371_v52 = vmul.f32 %v1585_v1, %v300_v40  ;;  %v471_v55 = vmax.f32 %v407_v43, 0.0  ;;  %v409_v56 = vadd.f32 %v1597_v2, %v338_v44 }
  0x3d   : > { %1465 = vmatprep.mubr.msk.f32.mxu1 %vm509_vm0, %v496_v3  ;;  %v503_v57 = vmax.f32 %v439_v46, 0.0  ;;  %v441_v58 = vadd.f32 %v1597_v2, %v370_v48  ;;  %v340_v59 = vmul.f32 %v1585_v1, %v269_v53  ;;  %v372_v60 = vmul.f32 %v1585_v1, %v301_v54 }
  0x3e   : > { %v472_v61 = vmax.f32 %v408_v47, 0.0  ;;  %v504_v62 = vmax.f32 %v440_v50, 0.0  ;;  %v410_v63 = vadd.f32 %v1597_v2, %v339_v51  ;;  %v442_v0 = vadd.f32 %v1597_v2, %v371_v52 }
  0x3f   : > { %1418 = vmatmul.mubr.msk.f32.gmra.mxu0 %vm509_vm0, %v465_v9  ;;  %v473_v3 = vmax.f32 %v409_v56, 0.0  ;;  %v505_v4 = vmax.f32 %v441_v58, 0.0  ;;  %v411_v5 = vadd.f32 %v1597_v2, %v340_v59  ;;  %v443_v1 = vadd.f32 %v1597_v2, %v372_v60 }
  0x40   : > { %1466 = vmatmul.mubr.msk.f32.gmra.mxu1 %vm509_vm0, %v497_v13  ;;  %1420 = vmatprep.mubr.msk.f32.mxu0 %vm509_vm0, %v466_v14  ;;  %v474_v6 = vmax.f32 %v410_v63, 0.0  ;;  %v506_v7 = vmax.f32 %v442_v0, 0.0 }
  0x41   : > { %1468 = vmatprep.mubr.msk.f32.mxu1 %vm509_vm0, %v498_v18  ;;  %v475_v8 = vmax.f32 %v411_v5, 0.0  ;;  %v507_v9 = vmax.f32 %v443_v1, 0.0 }
  0x43   : > { %1421 = vmatmul.mubr.msk.f32.gmra.mxu0 %vm509_vm0, %v467_v25 }
  0x44   : > { %1469 = vmatmul.mubr.msk.f32.gmra.mxu1 %vm509_vm0, %v499_v29  ;;  %1423 = vmatprep.mubr.msk.f32.mxu0 %vm509_vm0, %v468_v34 }
  0x45   : > { %1471 = vmatprep.mubr.msk.f32.mxu1 %vm509_vm0, %v500_v35 }
  0x47   : > { %1424 = vmatmul.mubr.msk.f32.gmra.mxu0 %vm509_vm0, %v469_v41 }
  0x48   : > { %1472 = vmatmul.mubr.msk.f32.gmra.mxu1 %vm509_vm0, %v501_v42  ;;  %1426 = vmatprep.mubr.msk.f32.mxu0 %vm509_vm0, %v470_v45 }
  0x49   : > { %1474 = vmatprep.mubr.msk.f32.mxu1 %vm509_vm0, %v502_v49 }
  0x4b   : > { %1427 = vmatmul.mubr.msk.f32.gmra.mxu0 %vm509_vm0, %v471_v55 }
  0x4c   : > { %1475 = vmatmul.mubr.msk.f32.gmra.mxu1 %vm509_vm0, %v503_v57  ;;  %1429 = vmatprep.mubr.msk.f32.mxu0 %vm509_vm0, %v472_v61 }
  0x4d   : > { %1477 = vmatprep.mubr.msk.f32.mxu1 %vm509_vm0, %v504_v62 }
  0x4f   : > { %1430 = vmatmul.mubr.msk.f32.gmra.mxu0 %vm509_vm0, %v473_v3 }
  0x50   : > { %1478 = vmatmul.mubr.msk.f32.gmra.mxu1 %vm509_vm0, %v505_v4  ;;  %1432 = vmatprep.mubr.msk.f32.mxu0 %vm509_vm0, %v474_v6 }
  0x51   : > { %1480 = vmatprep.mubr.msk.f32.mxu1 %vm509_vm0, %v506_v7 }
  0x53   : > { %1433 = vmatmul.mubr.msk.f32.gmra.mxu0 %vm509_vm0, %v475_v8 }
  0x54   : > { %1481 = vmatmul.mubr.msk.f32.gmra.mxu1 %vm509_vm0, %v507_v9 }
  0xd7   : > { %v1389_v2 = vpop.f32.mrf.mxu0 }
  0xd8   : > { %v1437_v10 = vpop.f32.mrf.mxu1  ;;  %1089 = vst.msk [vmem:[%s1860_s6 + $0x8] sm:$0xff] %vm1087_vm1, %v1389_v2 }
  0xd9   : > { %1121 = vst.msk [vmem:[%s1860_s6 + $0x108] sm:$0xff] %vm1087_vm1, %v1437_v10  ;;  %v768_v11 = vpop.f32.mrf.mxu0 }
  0xda   : > { %v928_v12 = vpop.f32.mrf.mxu1  ;;  %1088 = vst.msk [vmem:[%s1860_s6] sm:$0xff] %vm1087_vm1, %v768_v11 }
  0xdb   : > { %1120 = vst.msk [vmem:[%s1860_s6 + $0x100] sm:$0xff] %vm1087_vm1, %v928_v12  ;;  %v1392_v13 = vpop.f32.mrf.mxu0 }
  0xdc   : > { %v1440_v14 = vpop.f32.mrf.mxu1  ;;  %1091 = vst.msk [vmem:[%s1860_s6 + $0x18] sm:$0xff] %vm1087_vm1, %v1392_v13 }
  0xdd   : > { %1123 = vst.msk [vmem:[%s1860_s6 + $0x118] sm:$0xff] %vm1087_vm1, %v1440_v14  ;;  %v778_v15 = vpop.f32.mrf.mxu0 }
  0xde   : > { %v938_v16 = vpop.f32.mrf.mxu1  ;;  %1090 = vst.msk [vmem:[%s1860_s6 + $0x10] sm:$0xff] %vm1087_vm1, %v778_v15 }
  0xdf   : > { %1122 = vst.msk [vmem:[%s1860_s6 + $0x110] sm:$0xff] %vm1087_vm1, %v938_v16  ;;  %v1395_v17 = vpop.f32.mrf.mxu0 }
  0xe0   : > { %v1443_v18 = vpop.f32.mrf.mxu1  ;;  %1093 = vst.msk [vmem:[%s1860_s6 + $0x28] sm:$0xff] %vm1087_vm1, %v1395_v17 }
  0xe1   : > { %1125 = vst.msk [vmem:[%s1860_s6 + $0x128] sm:$0xff] %vm1087_vm1, %v1443_v18  ;;  %v788_v19 = vpop.f32.mrf.mxu0 }
  0xe2   : > { %v948_v20 = vpop.f32.mrf.mxu1  ;;  %1092 = vst.msk [vmem:[%s1860_s6 + $0x20] sm:$0xff] %vm1087_vm1, %v788_v19 }
  0xe3   : > { %1124 = vst.msk [vmem:[%s1860_s6 + $0x120] sm:$0xff] %vm1087_vm1, %v948_v20  ;;  %v1398_v21 = vpop.f32.mrf.mxu0 }
  0xe4   : > { %v1446_v22 = vpop.f32.mrf.mxu1  ;;  %1095 = vst.msk [vmem:[%s1860_s6 + $0x38] sm:$0xff] %vm1087_vm1, %v1398_v21 }
  0xe5   : > { %1127 = vst.msk [vmem:[%s1860_s6 + $0x138] sm:$0xff] %vm1087_vm1, %v1446_v22  ;;  %v798_v23 = vpop.f32.mrf.mxu0 }
  0xe6   : > { %v958_v24 = vpop.f32.mrf.mxu1  ;;  %1094 = vst.msk [vmem:[%s1860_s6 + $0x30] sm:$0xff] %vm1087_vm1, %v798_v23 }
  0xe7   : > { %1126 = vst.msk [vmem:[%s1860_s6 + $0x130] sm:$0xff] %vm1087_vm1, %v958_v24  ;;  %v1401_v25 = vpop.f32.mrf.mxu0 }
  0xe8   : > { %v1449_v26 = vpop.f32.mrf.mxu1  ;;  %1097 = vst.msk [vmem:[%s1860_s6 + $0x48] sm:$0xff] %vm1087_vm1, %v1401_v25 }
  0xe9   : > { %1129 = vst.msk [vmem:[%s1860_s6 + $0x148] sm:$0xff] %vm1087_vm1, %v1449_v26  ;;  %v808_v27 = vpop.f32.mrf.mxu0 }
  0xea   : > { %v968_v28 = vpop.f32.mrf.mxu1  ;;  %1096 = vst.msk [vmem:[%s1860_s6 + $0x40] sm:$0xff] %vm1087_vm1, %v808_v27 }
  0xeb   : > { %1128 = vst.msk [vmem:[%s1860_s6 + $0x140] sm:$0xff] %vm1087_vm1, %v968_v28  ;;  %v1404_v29 = vpop.f32.mrf.mxu0 }
  0xec   : > { %v1452_v30 = vpop.f32.mrf.mxu1  ;;  %1099 = vst.msk [vmem:[%s1860_s6 + $0x58] sm:$0xff] %vm1087_vm1, %v1404_v29 }
  0xed   : > { %1131 = vst.msk [vmem:[%s1860_s6 + $0x158] sm:$0xff] %vm1087_vm1, %v1452_v30  ;;  %v818_v31 = vpop.f32.mrf.mxu0 }
  0xee   : > { %v978_v32 = vpop.f32.mrf.mxu1  ;;  %1098 = vst.msk [vmem:[%s1860_s6 + $0x50] sm:$0xff] %vm1087_vm1, %v818_v31 }
  0xef   : > { %1130 = vst.msk [vmem:[%s1860_s6 + $0x150] sm:$0xff] %vm1087_vm1, %v978_v32  ;;  %v1407_v33 = vpop.f32.mrf.mxu0 }
  0xf0   : > { %v1455_v34 = vpop.f32.mrf.mxu1  ;;  %1101 = vst.msk [vmem:[%s1860_s6 + $0x68] sm:$0xff] %vm1087_vm1, %v1407_v33 }
  0xf1   : > { %1133 = vst.msk [vmem:[%s1860_s6 + $0x168] sm:$0xff] %vm1087_vm1, %v1455_v34  ;;  %v828_v35 = vpop.f32.mrf.mxu0 }
  0xf2   : > { %v988_v36 = vpop.f32.mrf.mxu1  ;;  %1100 = vst.msk [vmem:[%s1860_s6 + $0x60] sm:$0xff] %vm1087_vm1, %v828_v35 }
  0xf3   : > { %1132 = vst.msk [vmem:[%s1860_s6 + $0x160] sm:$0xff] %vm1087_vm1, %v988_v36  ;;  %v1410_v37 = vpop.f32.mrf.mxu0 }
  0xf4   : > { %v1458_v38 = vpop.f32.mrf.mxu1  ;;  %1103 = vst.msk [vmem:[%s1860_s6 + $0x78] sm:$0xff] %vm1087_vm1, %v1410_v37 }
  0xf5   : > { %1135 = vst.msk [vmem:[%s1860_s6 + $0x178] sm:$0xff] %vm1087_vm1, %v1458_v38  ;;  %v838_v39 = vpop.f32.mrf.mxu0 }
  0xf6   : > { %v998_v40 = vpop.f32.mrf.mxu1  ;;  %1102 = vst.msk [vmem:[%s1860_s6 + $0x70] sm:$0xff] %vm1087_vm1, %v838_v39 }
  0xf7   : > { %1134 = vst.msk [vmem:[%s1860_s6 + $0x170] sm:$0xff] %vm1087_vm1, %v998_v40  ;;  %v1413_v41 = vpop.f32.mrf.mxu0 }
  0xf8   : > { %v1461_v42 = vpop.f32.mrf.mxu1  ;;  %1105 = vst.msk [vmem:[%s1860_s6 + $0x88] sm:$0xff] %vm1087_vm1, %v1413_v41 }
  0xf9   : > { %1137 = vst.msk [vmem:[%s1860_s6 + $0x188] sm:$0xff] %vm1087_vm1, %v1461_v42  ;;  %v848_v43 = vpop.f32.mrf.mxu0 }
  0xfa   : > { %v1008_v44 = vpop.f32.mrf.mxu1  ;;  %1104 = vst.msk [vmem:[%s1860_s6 + $0x80] sm:$0xff] %vm1087_vm1, %v848_v43 }
  0xfb   : > { %1136 = vst.msk [vmem:[%s1860_s6 + $0x180] sm:$0xff] %vm1087_vm1, %v1008_v44  ;;  %v1416_v45 = vpop.f32.mrf.mxu0 }
  0xfc   : > { %v1464_v46 = vpop.f32.mrf.mxu1  ;;  %1107 = vst.msk [vmem:[%s1860_s6 + $0x98] sm:$0xff] %vm1087_vm1, %v1416_v45 }
  0xfd   : > { %1139 = vst.msk [vmem:[%s1860_s6 + $0x198] sm:$0xff] %vm1087_vm1, %v1464_v46  ;;  %v858_v47 = vpop.f32.mrf.mxu0 }
  0xfe   : > { %v1018_v48 = vpop.f32.mrf.mxu1  ;;  %1106 = vst.msk [vmem:[%s1860_s6 + $0x90] sm:$0xff] %vm1087_vm1, %v858_v47 }
  0xff   : > { %1138 = vst.msk [vmem:[%s1860_s6 + $0x190] sm:$0xff] %vm1087_vm1, %v1018_v48  ;;  %v1419_v49 = vpop.f32.mrf.mxu0 }
 0x100   : > { %v1467_v50 = vpop.f32.mrf.mxu1  ;;  %1109 = vst.msk [vmem:[%s1860_s6 + $0xa8] sm:$0xff] %vm1087_vm1, %v1419_v49 }
 0x101   : > { %1141 = vst.msk [vmem:[%s1860_s6 + $0x1a8] sm:$0xff] %vm1087_vm1, %v1467_v50  ;;  %v868_v51 = vpop.f32.mrf.mxu0 }
 0x102   : > { %v1028_v52 = vpop.f32.mrf.mxu1  ;;  %1108 = vst.msk [vmem:[%s1860_s6 + $0xa0] sm:$0xff] %vm1087_vm1, %v868_v51 }
 0x103   : > { %1140 = vst.msk [vmem:[%s1860_s6 + $0x1a0] sm:$0xff] %vm1087_vm1, %v1028_v52  ;;  %v1422_v53 = vpop.f32.mrf.mxu0 }
 0x104   : > { %v1470_v54 = vpop.f32.mrf.mxu1  ;;  %1111 = vst.msk [vmem:[%s1860_s6 + $0xb8] sm:$0xff] %vm1087_vm1, %v1422_v53 }
 0x105   : > { %1143 = vst.msk [vmem:[%s1860_s6 + $0x1b8] sm:$0xff] %vm1087_vm1, %v1470_v54  ;;  %v878_v55 = vpop.f32.mrf.mxu0 }
 0x106   : > { %v1038_v56 = vpop.f32.mrf.mxu1  ;;  %1110 = vst.msk [vmem:[%s1860_s6 + $0xb0] sm:$0xff] %vm1087_vm1, %v878_v55 }
 0x107   : > { %1142 = vst.msk [vmem:[%s1860_s6 + $0x1b0] sm:$0xff] %vm1087_vm1, %v1038_v56  ;;  %v1425_v57 = vpop.f32.mrf.mxu0 }
 0x108   : > { %v1473_v58 = vpop.f32.mrf.mxu1  ;;  %1113 = vst.msk [vmem:[%s1860_s6 + $0xc8] sm:$0xff] %vm1087_vm1, %v1425_v57 }
 0x109   : > { %1145 = vst.msk [vmem:[%s1860_s6 + $0x1c8] sm:$0xff] %vm1087_vm1, %v1473_v58  ;;  %v888_v59 = vpop.f32.mrf.mxu0 }
 0x10a   : > { %v1048_v60 = vpop.f32.mrf.mxu1  ;;  %1112 = vst.msk [vmem:[%s1860_s6 + $0xc0] sm:$0xff] %vm1087_vm1, %v888_v59 }
 0x10b   : > { %1144 = vst.msk [vmem:[%s1860_s6 + $0x1c0] sm:$0xff] %vm1087_vm1, %v1048_v60  ;;  %v1428_v61 = vpop.f32.mrf.mxu0 }
 0x10c   : > { %v1476_v62 = vpop.f32.mrf.mxu1  ;;  %1115 = vst.msk [vmem:[%s1860_s6 + $0xd8] sm:$0xff] %vm1087_vm1, %v1428_v61 }
 0x10d   : > { %1147 = vst.msk [vmem:[%s1860_s6 + $0x1d8] sm:$0xff] %vm1087_vm1, %v1476_v62  ;;  %v898_v63 = vpop.f32.mrf.mxu0 }
 0x10e   : > { %v1058_v0 = vpop.f32.mrf.mxu1  ;;  %1114 = vst.msk [vmem:[%s1860_s6 + $0xd0] sm:$0xff] %vm1087_vm1, %v898_v63 }
 0x10f   : > { %1146 = vst.msk [vmem:[%s1860_s6 + $0x1d0] sm:$0xff] %vm1087_vm1, %v1058_v0  ;;  %v1431_v3 = vpop.f32.mrf.mxu0 }
 0x110   : > { %v1479_v4 = vpop.f32.mrf.mxu1  ;;  %1117 = vst.msk [vmem:[%s1860_s6 + $0xe8] sm:$0xff] %vm1087_vm1, %v1431_v3 }
 0x111   : > { %1149 = vst.msk [vmem:[%s1860_s6 + $0x1e8] sm:$0xff] %vm1087_vm1, %v1479_v4  ;;  %v908_v5 = vpop.f32.mrf.mxu0 }
 0x112   : > { %v1068_v1 = vpop.f32.mrf.mxu1  ;;  %1116 = vst.msk [vmem:[%s1860_s6 + $0xe0] sm:$0xff] %vm1087_vm1, %v908_v5 }
 0x113   : > { %1148 = vst.msk [vmem:[%s1860_s6 + $0x1e0] sm:$0xff] %vm1087_vm1, %v1068_v1  ;;  %v1434_v6 = vpop.f32.mrf.mxu0 }
 0x114   : > { %v1482_v7 = vpop.f32.mrf.mxu1  ;;  %1119 = vst.msk [vmem:[%s1860_s6 + $0xf8] sm:$0xff] %vm1087_vm1, %v1434_v6 }
 0x115   : > { %1151 = vst.msk [vmem:[%s1860_s6 + $0x1f8] sm:$0xff] %vm1087_vm1, %v1482_v7  ;;  %v918_v8 = vpop.f32.mrf.mxu0 }
 0x116   : > { %v1078_v9 = vpop.f32.mrf.mxu1  ;;  %1118 = vst.msk [vmem:[%s1860_s6 + $0xf0] sm:$0xff] %vm1087_vm1, %v918_v8 }
 0x117   : > { %1150 = vst.msk [vmem:[%s1860_s6 + $0x1f0] sm:$0xff] %vm1087_vm1, %v1078_v9 }
 0x118 PF: > { %s14_s17 = sadd.s32 1, %s1531_s17   ;;  %s2004_s15 = smov %s1527_s16 }
 0x119   : > { %p11_p5 = scmp.ge.s32.totalorder %s14_s17, 6   ;;  %s2005_s16 = smov %s2007_s18 }
 0x11b   :  { %13 = sbr.rel (!%p11_p5) target bundleno = 2 (0x2), region = 69 }

// kernel: generator_forward.19
= control target key start
LH: loop header
LB: loop body
LE: loop exit
PB: predicated region body
PF: predicated region fallthrough
CT: control target
= control target key end

     0   :  { %s286_s0 = inlined_call_operand.vmem [shape: f32[192,128], index: 0, kind: input, shape index: {}]   ;;  %s287_s1 = inlined_call_operand.vmem [shape: f32[192,128], index: 1, kind: output, shape index: {}]  }
   0x1   :  { %v8_v0 = vld [vmem:[%s286_s0] sm:$0xff]  ;;  %v9_v1 = vld [vmem:[%s286_s0 + $0x8] sm:$0xff]  ;;  %v10_v2 = vld [vmem:[%s286_s0 + $0x10] sm:$0xff] }
   0x2   :  { %84 = vtanh.f32 %v8_v0  ;;  %v11_v3 = vld [vmem:[%s286_s0 + $0x18] sm:$0xff]  ;;  %v12_v4 = vld [vmem:[%s286_s0 + $0x20] sm:$0xff]  ;;  %v13_v5 = vld [vmem:[%s286_s0 + $0x28] sm:$0xff] }
   0x3   :  { %86 = vtanh.f32 %v9_v1  ;;  %v14_v6 = vld [vmem:[%s286_s0 + $0x30] sm:$0xff]  ;;  %v15_v7 = vld [vmem:[%s286_s0 + $0x38] sm:$0xff]  ;;  %v16_v8 = vld [vmem:[%s286_s0 + $0x40] sm:$0xff] }
   0x4   :  { %88 = vtanh.f32 %v10_v2  ;;  %v17_v9 = vld [vmem:[%s286_s0 + $0x48] sm:$0xff]  ;;  %v18_v10 = vld [vmem:[%s286_s0 + $0x50] sm:$0xff]  ;;  %v19_v11 = vld [vmem:[%s286_s0 + $0x58] sm:$0xff] }
   0x5   :  { %90 = vtanh.f32 %v11_v3  ;;  %v20_v12 = vld [vmem:[%s286_s0 + $0x60] sm:$0xff]  ;;  %v21_v13 = vld [vmem:[%s286_s0 + $0x68] sm:$0xff]  ;;  %v22_v14 = vld [vmem:[%s286_s0 + $0x70] sm:$0xff] }
   0x6   :  { %92 = vtanh.f32 %v12_v4  ;;  %v23_v15 = vld [vmem:[%s286_s0 + $0x78] sm:$0xff]  ;;  %v24_v17 = vld [vmem:[%s286_s0 + $0x80] sm:$0xff]  ;;  %v25_v19 = vld [vmem:[%s286_s0 + $0x88] sm:$0xff] }
   0x7   :  { %94 = vtanh.f32 %v13_v5  ;;  %v26_v21 = vld [vmem:[%s286_s0 + $0x90] sm:$0xff]  ;;  %v27_v23 = vld [vmem:[%s286_s0 + $0x98] sm:$0xff]  ;;  %v28_v25 = vld [vmem:[%s286_s0 + $0xa0] sm:$0xff] }
   0x8   :  { %96 = vtanh.f32 %v14_v6  ;;  %v29_v27 = vld [vmem:[%s286_s0 + $0xa8] sm:$0xff]  ;;  %v30_v29 = vld [vmem:[%s286_s0 + $0xb0] sm:$0xff]  ;;  %v31_v31 = vld [vmem:[%s286_s0 + $0xb8] sm:$0xff] }
   0x9   :  { %98 = vtanh.f32 %v15_v7 }
   0xa   :  { %100 = vtanh.f32 %v16_v8 }
   0xb   :  { %102 = vtanh.f32 %v17_v9 }
   0xc   :  { %104 = vtanh.f32 %v18_v10 }
   0xd   :  { %106 = vtanh.f32 %v19_v11 }
   0xe   :  { %108 = vtanh.f32 %v20_v12 }
   0xf   :  { %v85_v16 = vpop.eup %84  ;;  %110 = vtanh.f32 %v21_v13 }
  0x10   :  { %v87_v18 = vpop.eup %86  ;;  %56 = vst [vmem:[%s287_s1] sm:$0xff] %v85_v16  ;;  %112 = vtanh.f32 %v22_v14 }
  0x11   :  { %v89_v20 = vpop.eup %88  ;;  %57 = vst [vmem:[%s287_s1 + $0x8] sm:$0xff] %v87_v18  ;;  %114 = vtanh.f32 %v23_v15 }
  0x12   :  { %v91_v22 = vpop.eup %90  ;;  %58 = vst [vmem:[%s287_s1 + $0x10] sm:$0xff] %v89_v20  ;;  %116 = vtanh.f32 %v24_v17 }
  0x13   :  { %v93_v24 = vpop.eup %92  ;;  %59 = vst [vmem:[%s287_s1 + $0x18] sm:$0xff] %v91_v22  ;;  %118 = vtanh.f32 %v25_v19 }
  0x14   :  { %v95_v26 = vpop.eup %94  ;;  %60 = vst [vmem:[%s287_s1 + $0x20] sm:$0xff] %v93_v24  ;;  %120 = vtanh.f32 %v26_v21 }
  0x15   :  { %v97_v28 = vpop.eup %96  ;;  %61 = vst [vmem:[%s287_s1 + $0x28] sm:$0xff] %v95_v26  ;;  %122 = vtanh.f32 %v27_v23 }
  0x16   :  { %v99_v30 = vpop.eup %98  ;;  %62 = vst [vmem:[%s287_s1 + $0x30] sm:$0xff] %v97_v28  ;;  %124 = vtanh.f32 %v28_v25 }
  0x17   :  { %v101_v32 = vpop.eup %100  ;;  %63 = vst [vmem:[%s287_s1 + $0x38] sm:$0xff] %v99_v30  ;;  %126 = vtanh.f32 %v29_v27 }
  0x18   :  { %v103_v33 = vpop.eup %102  ;;  %64 = vst [vmem:[%s287_s1 + $0x40] sm:$0xff] %v101_v32  ;;  %128 = vtanh.f32 %v30_v29 }
  0x19   :  { %v105_v34 = vpop.eup %104  ;;  %65 = vst [vmem:[%s287_s1 + $0x48] sm:$0xff] %v103_v33  ;;  %130 = vtanh.f32 %v31_v31 }
  0x1a   :  { %v107_v35 = vpop.eup %106  ;;  %66 = vst [vmem:[%s287_s1 + $0x50] sm:$0xff] %v105_v34 }
  0x1b   :  { %v109_v36 = vpop.eup %108  ;;  %67 = vst [vmem:[%s287_s1 + $0x58] sm:$0xff] %v107_v35 }
  0x1c   :  { %v111_v37 = vpop.eup %110  ;;  %68 = vst [vmem:[%s287_s1 + $0x60] sm:$0xff] %v109_v36 }
  0x1d   :  { %v113_v38 = vpop.eup %112  ;;  %69 = vst [vmem:[%s287_s1 + $0x68] sm:$0xff] %v111_v37 }
  0x1e   :  { %v115_v39 = vpop.eup %114  ;;  %70 = vst [vmem:[%s287_s1 + $0x70] sm:$0xff] %v113_v38 }
  0x1f   :  { %v117_v40 = vpop.eup %116  ;;  %71 = vst [vmem:[%s287_s1 + $0x78] sm:$0xff] %v115_v39 }
  0x20   :  { %v119_v41 = vpop.eup %118  ;;  %72 = vst [vmem:[%s287_s1 + $0x80] sm:$0xff] %v117_v40 }
  0x21   :  { %v121_v42 = vpop.eup %120  ;;  %73 = vst [vmem:[%s287_s1 + $0x88] sm:$0xff] %v119_v41 }
  0x22   :  { %v123_v43 = vpop.eup %122  ;;  %74 = vst [vmem:[%s287_s1 + $0x90] sm:$0xff] %v121_v42 }
  0x23   :  { %v125_v44 = vpop.eup %124  ;;  %75 = vst [vmem:[%s287_s1 + $0x98] sm:$0xff] %v123_v43 }
  0x24   :  { %v127_v45 = vpop.eup %126  ;;  %76 = vst [vmem:[%s287_s1 + $0xa0] sm:$0xff] %v125_v44 }
  0x25   :  { %v129_v46 = vpop.eup %128  ;;  %77 = vst [vmem:[%s287_s1 + $0xa8] sm:$0xff] %v127_v45 }
  0x26   :  { %v131_v47 = vpop.eup %130  ;;  %78 = vst [vmem:[%s287_s1 + $0xb0] sm:$0xff] %v129_v46 }
  0x27   :  { %79 = vst [vmem:[%s287_s1 + $0xb8] sm:$0xff] %v131_v47 }

</bundles_post_ra>
